<compile_context>
chip_gen: v7x
topology: tpu7x:2x2x1
jax: 0.10.0
libtpu: 0.0.40
codegen_flags: <defaults>
</compile_context>

<pallas_src>
import jax
import jax.numpy as jnp
from jax.experimental import pallas as pl
from jax.experimental.pallas import tpu as pltpu

# ----------------------------- model config ---------------------------------
B = 2            # batch
S = 8            # sequence length
H = 128          # hidden size (stand-in for 768)
N_LAYERS = 2
N_HEADS = 4
D_HEAD = H // N_HEADS
INTERMEDIATE = 4 * H
VOCAB = 100
TYPE_VOCAB = 2
MAX_POS = 32
LN_EPS = 1e-12
HEAD_PAD = 128   # Linear(H, 2) output padded to 128 lanes for dense stores

_VMEM_SPEC = pl.BlockSpec(memory_space=pltpu.MemorySpace.VMEM)


# ------------------------------ fused kernel ---------------------------------
def _layernorm(x, g, b):
    mu = jnp.mean(x, axis=-1, keepdims=True)
    xc = x - mu
    var = jnp.mean(xc * xc, axis=-1, keepdims=True)
    return xc * jax.lax.rsqrt(var + LN_EPS) * g + b


def _bert_fused_kernel(emb_ref, mask_ref, emb_g_ref, emb_b_ref,
                       wqkv_ref, bqkv_ref, wo_ref, bo_ref,
                       ln1_g_ref, ln1_b_ref,
                       wi_ref, bi_ref, wf_ref, bf_ref,
                       ln2_g_ref, ln2_b_ref,
                       head_w_ref, head_b_ref,
                       out_ref):
    # emb: (B*S, H) summed embeddings; mask: (B, S, S) additive bias.
    x = _layernorm(emb_ref[...], emb_g_ref[...], emb_b_ref[...])
    mask_bias = mask_ref[...]                      # (B, S, S), hoisted, reused
    scale = 1.0 / (D_HEAD ** 0.5)

    for l in range(N_LAYERS):                      # static unroll (L = 2)
        wqkv = wqkv_ref[l]                         # (H, 3H)
        bqkv = bqkv_ref[l]                         # (1, 3H)
        wo = wo_ref[l]                             # (H, H)
        bo = bo_ref[l]                             # (1, H)
        wi = wi_ref[l]                             # (H, 4H)
        bi = bi_ref[l]                             # (1, 4H)
        wf = wf_ref[l]                             # (4H, H)
        bf = bf_ref[l]                             # (1, H)

        # ---- fused QKV projection (one wide MXU matmul) ----
        qkv = jnp.dot(x, wqkv, preferred_element_type=jnp.float32) + bqkv
        q3 = qkv[:, 0:H].reshape(B, S, H)
        k3 = qkv[:, H:2 * H].reshape(B, S, H)
        v3 = qkv[:, 2 * H:3 * H].reshape(B, S, H)

        # ---- multi-head self-attention; heads are static lane slices ----
        attn = jnp.zeros((B * S, H), jnp.float32)
        for h in range(N_HEADS):                   # static unroll (4 heads)
            sl = slice(h * D_HEAD, (h + 1) * D_HEAD)
            qh = q3[:, :, sl]                      # (B, S, Dh)
            kh = k3[:, :, sl]
            vh = v3[:, :, sl]
            s = jnp.einsum("bqd,bkd->bqk", qh, kh,
                           preferred_element_type=jnp.float32)
            s = s * scale + mask_bias              # BERT extended attn mask
            s = s - jnp.max(s, axis=-1, keepdims=True)
            p = jnp.exp(s)
            p = p * pl.reciprocal(jnp.sum(p, axis=-1, keepdims=True),
                                  approx=True)
            ctx_h = jnp.einsum("bqk,bkd->bqd", p, vh,
                               preferred_element_type=jnp.float32)
            # fold the head directly into the output projection:
            # ctx @ wo == sum_h ctx_h @ wo[h*Dh:(h+1)*Dh, :]
            attn = attn + jnp.dot(ctx_h.reshape(B * S, D_HEAD), wo[sl, :],
                                  preferred_element_type=jnp.float32)
        attn = attn + bo

        # ---- add & LayerNorm ----
        x = _layernorm(attn + x, ln1_g_ref[l], ln1_b_ref[l])

        # ---- feed forward ----
        inter = jnp.dot(x, wi, preferred_element_type=jnp.float32) + bi
        # TODO(synk): HF BERT default is erf-based gelu; tanh approximation used here.
        inter = jax.nn.gelu(inter, approximate=True)
        ffn = jnp.dot(inter, wf, preferred_element_type=jnp.float32) + bf
        x = _layernorm(ffn + x, ln2_g_ref[l], ln2_b_ref[l])

    # ---- head: Linear(H, 2) padded to 128 lanes (dense output store) ----
    logits = jnp.dot(x, head_w_ref[...],
                     preferred_element_type=jnp.float32) + head_b_ref[...]
    out_ref[...] = logits.astype(out_ref.dtype)


# --------------------------- parameter construction --------------------------
def init_params(key):
    def normal(k, shape, scale=0.02):
        return (scale * jax.random.normal(k, shape)).astype(jnp.float32)

    k = jax.random.split(key, 8)
    head_w = normal(k[7], (H, 2))
    head_w_padded = jnp.zeros((H, HEAD_PAD), jnp.float32).at[:, :2].set(head_w)
    return {
        "word_emb": normal(k[0], (VOCAB, H)),
        "pos_emb": normal(k[1], (MAX_POS, H)),
        "type_emb": normal(k[2], (TYPE_VOCAB, H)),
        "emb_ln_g": jnp.ones((1, H), jnp.float32),
        "emb_ln_b": jnp.zeros((1, H), jnp.float32),
        # per-layer weights stacked along a leading axis, QKV fused:
        "wqkv": normal(k[3], (N_LAYERS, H, 3 * H)),
        "bqkv": jnp.zeros((N_LAYERS, 1, 3 * H), jnp.float32),
        "wo": normal(k[4], (N_LAYERS, H, H)),
        "bo": jnp.zeros((N_LAYERS, 1, H), jnp.float32),
        "ln1_g": jnp.ones((N_LAYERS, 1, H), jnp.float32),
        "ln1_b": jnp.zeros((N_LAYERS, 1, H), jnp.float32),
        "wi": normal(k[5], (N_LAYERS, H, INTERMEDIATE)),
        "bi": jnp.zeros((N_LAYERS, 1, INTERMEDIATE), jnp.float32),
        "wf": normal(k[6], (N_LAYERS, INTERMEDIATE, H)),
        "bf": jnp.zeros((N_LAYERS, 1, H), jnp.float32),
        "ln2_g": jnp.ones((N_LAYERS, 1, H), jnp.float32),
        "ln2_b": jnp.zeros((N_LAYERS, 1, H), jnp.float32),
        "head_w": head_w_padded,
        "head_b": jnp.zeros((1, HEAD_PAD), jnp.float32),
    }


# -------------------------------- forward ------------------------------------
def bert_based_uncased_forward(params, ids, mask, token_type_ids):
    # --- embeddings (gathers = plain-JAX glue; everything else in one kernel) ---
    positions = jnp.arange(S, dtype=jnp.int32)
    emb = (params["word_emb"][ids]
           + params["pos_emb"][positions][None, :, :]
           + params["type_emb"][token_type_ids])                  # (B, S, H)
    emb2d = emb.reshape(B * S, H)

    # additive attention-mask bias, computed ONCE, reused by all layers/heads
    mask_bias = (1.0 - mask.astype(jnp.float32)) * (-10000.0)     # (B, S)
    mask_bias = jnp.broadcast_to(mask_bias[:, None, :], (B, S, S))

    logits_padded = pl.pallas_call(
        _bert_fused_kernel,
        out_shape=jax.ShapeDtypeStruct((B * S, HEAD_PAD), jnp.float32),
        in_specs=[_VMEM_SPEC] * 18,
        out_specs=_VMEM_SPEC,
    )(emb2d, mask_bias,
      params["emb_ln_g"], params["emb_ln_b"],
      params["wqkv"], params["bqkv"], params["wo"], params["bo"],
      params["ln1_g"], params["ln1_b"],
      params["wi"], params["bi"], params["wf"], params["bf"],
      params["ln2_g"], params["ln2_b"],
      params["head_w"], params["head_b"])

    # NOTE: BertModel's pooled_output is unused by the head, so it is not computed.
    logits = logits_padded.reshape(B, S, HEAD_PAD)
    start_logits = logits[..., 0]                                 # (B, S)
    end_logits = logits[..., 1]                                   # (B, S)
    return start_logits, end_logits


# ---------------------------------- main --------------------------------------
if __name__ == "__main__":
    key = jax.random.PRNGKey(0)
    pkey, ikey = jax.random.split(key)
    params = init_params(pkey)

    ids = jax.random.randint(ikey, (B, S), 0, VOCAB, dtype=jnp.int32)
    mask = jnp.ones((B, S), dtype=jnp.int32).at[:, S - 2:].set(0)   # pad last 2 tokens
    token_type_ids = jnp.zeros((B, S), dtype=jnp.int32)

    start_logits, end_logits = jax.jit(bert_based_uncased_forward)(
        params, ids, mask, token_type_ids)
    jax.block_until_ready((start_logits, end_logits))
    assert start_logits.shape == (B, S) and end_logits.shape == (B, S)
    assert bool(jnp.all(jnp.isfinite(start_logits))) and bool(jnp.all(jnp.isfinite(end_logits)))
    print("KERNEL_OK")
</pallas_src>

<mosaic_0001>
module attributes {stable_mosaic.version = 11 : i64} {
  func.func @_bert_fused_kernel(%arg0: memref<16x128xf32, #tpu.memory_space<vmem>>, %arg1: memref<2x8x8xf32, #tpu.memory_space<vmem>>, %arg2: memref<1x128xf32, #tpu.memory_space<vmem>>, %arg3: memref<1x128xf32, #tpu.memory_space<vmem>>, %arg4: memref<2x128x384xf32, #tpu.memory_space<vmem>>, %arg5: memref<2x1x384xf32, #tpu.memory_space<vmem>>, %arg6: memref<2x128x128xf32, #tpu.memory_space<vmem>>, %arg7: memref<2x1x128xf32, #tpu.memory_space<vmem>>, %arg8: memref<2x1x128xf32, #tpu.memory_space<vmem>>, %arg9: memref<2x1x128xf32, #tpu.memory_space<vmem>>, %arg10: memref<2x128x512xf32, #tpu.memory_space<vmem>>, %arg11: memref<2x1x512xf32, #tpu.memory_space<vmem>>, %arg12: memref<2x512x128xf32, #tpu.memory_space<vmem>>, %arg13: memref<2x1x128xf32, #tpu.memory_space<vmem>>, %arg14: memref<2x1x128xf32, #tpu.memory_space<vmem>>, %arg15: memref<2x1x128xf32, #tpu.memory_space<vmem>>, %arg16: memref<128x128xf32, #tpu.memory_space<vmem>>, %arg17: memref<1x128xf32, #tpu.memory_space<vmem>>, %arg18: memref<16x128xf32, #tpu.memory_space<vmem>>) attributes {dimension_semantics = [], scalar_prefetch = 0 : i64, scratch_operands = 0 : i64, tpu.core_type = #tpu.core_type<tc>} {
    %c0 = arith.constant 0 : index
    %c0_0 = arith.constant 0 : index
    %0 = vector.load %arg0[%c0, %c0_0] : memref<16x128xf32, #tpu.memory_space<vmem>>, vector<16x128xf32>
    %c0_1 = arith.constant 0 : index
    %c0_2 = arith.constant 0 : index
    %1 = vector.load %arg2[%c0_1, %c0_2] : memref<1x128xf32, #tpu.memory_space<vmem>>, vector<1x128xf32>
    %c0_3 = arith.constant 0 : index
    %c0_4 = arith.constant 0 : index
    %2 = vector.load %arg3[%c0_3, %c0_4] : memref<1x128xf32, #tpu.memory_space<vmem>>, vector<1x128xf32>
    %cst = arith.constant dense<0.000000e+00> : vector<16xf32>
    %3 = vector.multi_reduction <add>, %0, %cst [1] : vector<16x128xf32> to vector<16xf32>
    %4 = vector.shape_cast %3 : vector<16xf32> to vector<16x1xf32>
    %cst_5 = arith.constant 1.280000e+02 : f32
    %5 = vector.broadcast %cst_5 : f32 to vector<16x1xf32>
    %6 = arith.divf %4, %5 : vector<16x1xf32>
    %7 = vector.broadcast %6 : vector<16x1xf32> to vector<16x128xf32>
    %8 = arith.subf %0, %7 : vector<16x128xf32>
    %9 = arith.mulf %8, %8 : vector<16x128xf32>
    %cst_6 = arith.constant dense<0.000000e+00> : vector<16xf32>
    %10 = vector.multi_reduction <add>, %9, %cst_6 [1] : vector<16x128xf32> to vector<16xf32>
    %11 = vector.shape_cast %10 : vector<16xf32> to vector<16x1xf32>
    %cst_7 = arith.constant 1.280000e+02 : f32
    %12 = vector.broadcast %cst_7 : f32 to vector<16x1xf32>
    %13 = arith.divf %11, %12 : vector<16x1xf32>
    %cst_8 = arith.constant 9.99999996E-13 : f32
    %14 = vector.broadcast %cst_8 : f32 to vector<16x1xf32>
    %15 = arith.addf %13, %14 : vector<16x1xf32>
    %16 = math.rsqrt %15 : vector<16x1xf32>
    %17 = vector.broadcast %16 : vector<16x1xf32> to vector<16x128xf32>
    %18 = arith.mulf %8, %17 : vector<16x128xf32>
    %19 = vector.broadcast %1 : vector<1x128xf32> to vector<16x128xf32>
    %20 = arith.mulf %18, %19 : vector<16x128xf32>
    %21 = vector.broadcast %2 : vector<1x128xf32> to vector<16x128xf32>
    %22 = arith.addf %20, %21 : vector<16x128xf32>
    %c0_9 = arith.constant 0 : index
    %c0_10 = arith.constant 0 : index
    %c0_11 = arith.constant 0 : index
    %23 = vector.load %arg1[%c0_9, %c0_10, %c0_11] : memref<2x8x8xf32, #tpu.memory_space<vmem>>, vector<2x8x8xf32>
    %c0_12 = arith.constant 0 : index
    %c0_13 = arith.constant 0 : index
    %c0_14 = arith.constant 0 : index
    %24 = vector.load %arg4[%c0_12, %c0_13, %c0_14] : memref<2x128x384xf32, #tpu.memory_space<vmem>>, vector<1x128x384xf32>
    %25 = vector.shape_cast %24 : vector<1x128x384xf32> to vector<128x384xf32>
    %c0_15 = arith.constant 0 : index
    %c0_16 = arith.constant 0 : index
    %c0_17 = arith.constant 0 : index
    %26 = vector.load %arg5[%c0_15, %c0_16, %c0_17] : memref<2x1x384xf32, #tpu.memory_space<vmem>>, vector<1x1x384xf32>
    %27 = vector.shape_cast %26 : vector<1x1x384xf32> to vector<1x384xf32>
    %c0_18 = arith.constant 0 : index
    %c0_19 = arith.constant 0 : index
    %c0_20 = arith.constant 0 : index
    %28 = vector.load %arg6[%c0_18, %c0_19, %c0_20] : memref<2x128x128xf32, #tpu.memory_space<vmem>>, vector<1x128x128xf32>
    %29 = vector.shape_cast %28 : vector<1x128x128xf32> to vector<128x128xf32>
    %c0_21 = arith.constant 0 : index
    %c0_22 = arith.constant 0 : index
    %c0_23 = arith.constant 0 : index
    %30 = vector.load %arg7[%c0_21, %c0_22, %c0_23] : memref<2x1x128xf32, #tpu.memory_space<vmem>>, vector<1x1x128xf32>
    %31 = vector.shape_cast %30 : vector<1x1x128xf32> to vector<1x128xf32>
    %c0_24 = arith.constant 0 : index
    %c0_25 = arith.constant 0 : index
    %c0_26 = arith.constant 0 : index
    %32 = vector.load %arg10[%c0_24, %c0_25, %c0_26] : memref<2x128x512xf32, #tpu.memory_space<vmem>>, vector<1x128x512xf32>
    %33 = vector.shape_cast %32 : vector<1x128x512xf32> to vector<128x512xf32>
    %c0_27 = arith.constant 0 : index
    %c0_28 = arith.constant 0 : index
    %c0_29 = arith.constant 0 : index
    %34 = vector.load %arg11[%c0_27, %c0_28, %c0_29] : memref<2x1x512xf32, #tpu.memory_space<vmem>>, vector<1x1x512xf32>
    %35 = vector.shape_cast %34 : vector<1x1x512xf32> to vector<1x512xf32>
    %c0_30 = arith.constant 0 : index
    %c0_31 = arith.constant 0 : index
    %c0_32 = arith.constant 0 : index
    %36 = vector.load %arg12[%c0_30, %c0_31, %c0_32] : memref<2x512x128xf32, #tpu.memory_space<vmem>>, vector<1x512x128xf32>
    %37 = vector.shape_cast %36 : vector<1x512x128xf32> to vector<512x128xf32>
    %c0_33 = arith.constant 0 : index
    %c0_34 = arith.constant 0 : index
    %c0_35 = arith.constant 0 : index
    %38 = vector.load %arg13[%c0_33, %c0_34, %c0_35] : memref<2x1x128xf32, #tpu.memory_space<vmem>>, vector<1x1x128xf32>
    %39 = vector.shape_cast %38 : vector<1x1x128xf32> to vector<1x128xf32>
    %cst_36 = arith.constant dense<0.000000e+00> : vector<16x384xf32>
    %40 = tpu.matmul %22, %25, %cst_36 {dimension_numbers = #tpu.dot_dimension_numbers<[1], [0], [0], [1], [0, 0, 1, 1], [], []>} : vector<16x128xf32>, vector<128x384xf32>, vector<16x384xf32> -> vector<16x384xf32>
    %41 = vector.broadcast %27 : vector<1x384xf32> to vector<16x384xf32>
    %42 = arith.addf %40, %41 : vector<16x384xf32>
    %43 = vector.extract_strided_slice %42 {offsets = [0, 0], sizes = [16, 128], strides = [1, 1]} : vector<16x384xf32> to vector<16x128xf32>
    %44 = vector.shape_cast %43 : vector<16x128xf32> to vector<2x8x128xf32>
    %45 = vector.extract_strided_slice %42 {offsets = [0, 128], sizes = [16, 128], strides = [1, 1]} : vector<16x384xf32> to vector<16x128xf32>
    %46 = vector.shape_cast %45 : vector<16x128xf32> to vector<2x8x128xf32>
    %47 = vector.extract_strided_slice %42 {offsets = [0, 256], sizes = [16, 128], strides = [1, 1]} : vector<16x384xf32> to vector<16x128xf32>
    %48 = vector.shape_cast %47 : vector<16x128xf32> to vector<2x8x128xf32>
    %cst_37 = arith.constant 0.000000e+00 : f32
    %49 = vector.broadcast %cst_37 : f32 to vector<16x128xf32>
    %50 = vector.extract_strided_slice %44 {offsets = [0, 0, 0], sizes = [2, 8, 32], strides = [1, 1, 1]} : vector<2x8x128xf32> to vector<2x8x32xf32>
    %51 = vector.extract_strided_slice %46 {offsets = [0, 0, 0], sizes = [2, 8, 32], strides = [1, 1, 1]} : vector<2x8x128xf32> to vector<2x8x32xf32>
    %52 = vector.extract_strided_slice %48 {offsets = [0, 0, 0], sizes = [2, 8, 32], strides = [1, 1, 1]} : vector<2x8x128xf32> to vector<2x8x32xf32>
    "tpu.trace_start"() <{level = 10 : i32, message = "bqd,bkd->bqk"}> : () -> ()
    %cst_38 = arith.constant dense<0.000000e+00> : vector<2x8x8xf32>
    %53 = tpu.matmul %50, %51, %cst_38 {dimension_numbers = #tpu.dot_dimension_numbers<[2], [2], [1], [1], [0, 0, 0, 1, 1, 1], [0], [0]>} : vector<2x8x32xf32>, vector<2x8x32xf32>, vector<2x8x8xf32> -> vector<2x8x8xf32>
    "tpu.trace_stop"() : () -> ()
    %cst_39 = arith.constant 0.176776692 : f32
    %54 = vector.broadcast %cst_39 : f32 to vector<2x8x8xf32>
    %55 = arith.mulf %53, %54 : vector<2x8x8xf32>
    %56 = arith.addf %55, %23 : vector<2x8x8xf32>
    %cst_40 = arith.constant dense<0xFF800000> : vector<2x8xf32>
    %57 = vector.multi_reduction <maximumf>, %56, %cst_40 [2] : vector<2x8x8xf32> to vector<2x8xf32>
    %58 = vector.shape_cast %57 : vector<2x8xf32> to vector<2x8x1xf32>
    %59 = vector.broadcast %58 : vector<2x8x1xf32> to vector<2x8x8xf32>
    %60 = arith.subf %56, %59 : vector<2x8x8xf32>
    %61 = math.exp %60 : vector<2x8x8xf32>
    %cst_41 = arith.constant dense<0.000000e+00> : vector<2x8xf32>
    %62 = vector.multi_reduction <add>, %61, %cst_41 [2] : vector<2x8x8xf32> to vector<2x8xf32>
    %63 = vector.shape_cast %62 : vector<2x8xf32> to vector<2x8x1xf32>
    %64 = tpu.reciprocal %63 {approx = true} : vector<2x8x1xf32> -> vector<2x8x1xf32>
    %65 = vector.broadcast %64 : vector<2x8x1xf32> to vector<2x8x8xf32>
    %66 = arith.mulf %61, %65 : vector<2x8x8xf32>
    "tpu.trace_start"() <{level = 10 : i32, message = "bqk,bkd->bqd"}> : () -> ()
    %cst_42 = arith.constant dense<0.000000e+00> : vector<2x8x32xf32>
    %67 = tpu.matmul %66, %52, %cst_42 {dimension_numbers = #tpu.dot_dimension_numbers<[2], [1], [1], [2], [0, 0, 0, 1, 1, 2], [0], [0]>} : vector<2x8x8xf32>, vector<2x8x32xf32>, vector<2x8x32xf32> -> vector<2x8x32xf32>
    "tpu.trace_stop"() : () -> ()
    %68 = vector.shape_cast %67 : vector<2x8x32xf32> to vector<16x32xf32>
    %69 = vector.extract_strided_slice %29 {offsets = [0, 0], sizes = [32, 128], strides = [1, 1]} : vector<128x128xf32> to vector<32x128xf32>
    %cst_43 = arith.constant dense<0.000000e+00> : vector<16x128xf32>
    %70 = tpu.matmul %68, %69, %cst_43 {dimension_numbers = #tpu.dot_dimension_numbers<[1], [0], [0], [1], [0, 0, 1, 1], [], []>} : vector<16x32xf32>, vector<32x128xf32>, vector<16x128xf32> -> vector<16x128xf32>
    %71 = arith.addf %49, %70 : vector<16x128xf32>
    %72 = vector.extract_strided_slice %44 {offsets = [0, 0, 32], sizes = [2, 8, 32], strides = [1, 1, 1]} : vector<2x8x128xf32> to vector<2x8x32xf32>
    %73 = vector.extract_strided_slice %46 {offsets = [0, 0, 32], sizes = [2, 8, 32], strides = [1, 1, 1]} : vector<2x8x128xf32> to vector<2x8x32xf32>
    %74 = vector.extract_strided_slice %48 {offsets = [0, 0, 32], sizes = [2, 8, 32], strides = [1, 1, 1]} : vector<2x8x128xf32> to vector<2x8x32xf32>
    "tpu.trace_start"() <{level = 10 : i32, message = "bqd,bkd->bqk"}> : () -> ()
    %cst_44 = arith.constant dense<0.000000e+00> : vector<2x8x8xf32>
    %75 = tpu.matmul %72, %73, %cst_44 {dimension_numbers = #tpu.dot_dimension_numbers<[2], [2], [1], [1], [0, 0, 0, 1, 1, 1], [0], [0]>} : vector<2x8x32xf32>, vector<2x8x32xf32>, vector<2x8x8xf32> -> vector<2x8x8xf32>
    "tpu.trace_stop"() : () -> ()
    %cst_45 = arith.constant 0.176776692 : f32
    %76 = vector.broadcast %cst_45 : f32 to vector<2x8x8xf32>
    %77 = arith.mulf %75, %76 : vector<2x8x8xf32>
    %78 = arith.addf %77, %23 : vector<2x8x8xf32>
    %cst_46 = arith.constant dense<0xFF800000> : vector<2x8xf32>
    %79 = vector.multi_reduction <maximumf>, %78, %cst_46 [2] : vector<2x8x8xf32> to vector<2x8xf32>
    %80 = vector.shape_cast %79 : vector<2x8xf32> to vector<2x8x1xf32>
    %81 = vector.broadcast %80 : vector<2x8x1xf32> to vector<2x8x8xf32>
    %82 = arith.subf %78, %81 : vector<2x8x8xf32>
    %83 = math.exp %82 : vector<2x8x8xf32>
    %cst_47 = arith.constant dense<0.000000e+00> : vector<2x8xf32>
    %84 = vector.multi_reduction <add>, %83, %cst_47 [2] : vector<2x8x8xf32> to vector<2x8xf32>
    %85 = vector.shape_cast %84 : vector<2x8xf32> to vector<2x8x1xf32>
    %86 = tpu.reciprocal %85 {approx = true} : vector<2x8x1xf32> -> vector<2x8x1xf32>
    %87 = vector.broadcast %86 : vector<2x8x1xf32> to vector<2x8x8xf32>
    %88 = arith.mulf %83, %87 : vector<2x8x8xf32>
    "tpu.trace_start"() <{level = 10 : i32, message = "bqk,bkd->bqd"}> : () -> ()
    %cst_48 = arith.constant dense<0.000000e+00> : vector<2x8x32xf32>
    %89 = tpu.matmul %88, %74, %cst_48 {dimension_numbers = #tpu.dot_dimension_numbers<[2], [1], [1], [2], [0, 0, 0, 1, 1, 2], [0], [0]>} : vector<2x8x8xf32>, vector<2x8x32xf32>, vector<2x8x32xf32> -> vector<2x8x32xf32>
    "tpu.trace_stop"() : () -> ()
    %90 = vector.shape_cast %89 : vector<2x8x32xf32> to vector<16x32xf32>
    %91 = vector.extract_strided_slice %29 {offsets = [32, 0], sizes = [32, 128], strides = [1, 1]} : vector<128x128xf32> to vector<32x128xf32>
    %cst_49 = arith.constant dense<0.000000e+00> : vector<16x128xf32>
    %92 = tpu.matmul %90, %91, %cst_49 {dimension_numbers = #tpu.dot_dimension_numbers<[1], [0], [0], [1], [0, 0, 1, 1], [], []>} : vector<16x32xf32>, vector<32x128xf32>, vector<16x128xf32> -> vector<16x128xf32>
    %93 = arith.addf %71, %92 : vector<16x128xf32>
    %94 = vector.extract_strided_slice %44 {offsets = [0, 0, 64], sizes = [2, 8, 32], strides = [1, 1, 1]} : vector<2x8x128xf32> to vector<2x8x32xf32>
    %95 = vector.extract_strided_slice %46 {offsets = [0, 0, 64], sizes = [2, 8, 32], strides = [1, 1, 1]} : vector<2x8x128xf32> to vector<2x8x32xf32>
    %96 = vector.extract_strided_slice %48 {offsets = [0, 0, 64], sizes = [2, 8, 32], strides = [1, 1, 1]} : vector<2x8x128xf32> to vector<2x8x32xf32>
    "tpu.trace_start"() <{level = 10 : i32, message = "bqd,bkd->bqk"}> : () -> ()
    %cst_50 = arith.constant dense<0.000000e+00> : vector<2x8x8xf32>
    %97 = tpu.matmul %94, %95, %cst_50 {dimension_numbers = #tpu.dot_dimension_numbers<[2], [2], [1], [1], [0, 0, 0, 1, 1, 1], [0], [0]>} : vector<2x8x32xf32>, vector<2x8x32xf32>, vector<2x8x8xf32> -> vector<2x8x8xf32>
    "tpu.trace_stop"() : () -> ()
    %cst_51 = arith.constant 0.176776692 : f32
    %98 = vector.broadcast %cst_51 : f32 to vector<2x8x8xf32>
    %99 = arith.mulf %97, %98 : vector<2x8x8xf32>
    %100 = arith.addf %99, %23 : vector<2x8x8xf32>
    %cst_52 = arith.constant dense<0xFF800000> : vector<2x8xf32>
    %101 = vector.multi_reduction <maximumf>, %100, %cst_52 [2] : vector<2x8x8xf32> to vector<2x8xf32>
    %102 = vector.shape_cast %101 : vector<2x8xf32> to vector<2x8x1xf32>
    %103 = vector.broadcast %102 : vector<2x8x1xf32> to vector<2x8x8xf32>
    %104 = arith.subf %100, %103 : vector<2x8x8xf32>
    %105 = math.exp %104 : vector<2x8x8xf32>
    %cst_53 = arith.constant dense<0.000000e+00> : vector<2x8xf32>
    %106 = vector.multi_reduction <add>, %105, %cst_53 [2] : vector<2x8x8xf32> to vector<2x8xf32>
    %107 = vector.shape_cast %106 : vector<2x8xf32> to vector<2x8x1xf32>
    %108 = tpu.reciprocal %107 {approx = true} : vector<2x8x1xf32> -> vector<2x8x1xf32>
    %109 = vector.broadcast %108 : vector<2x8x1xf32> to vector<2x8x8xf32>
    %110 = arith.mulf %105, %109 : vector<2x8x8xf32>
    "tpu.trace_start"() <{level = 10 : i32, message = "bqk,bkd->bqd"}> : () -> ()
    %cst_54 = arith.constant dense<0.000000e+00> : vector<2x8x32xf32>
    %111 = tpu.matmul %110, %96, %cst_54 {dimension_numbers = #tpu.dot_dimension_numbers<[2], [1], [1], [2], [0, 0, 0, 1, 1, 2], [0], [0]>} : vector<2x8x8xf32>, vector<2x8x32xf32>, vector<2x8x32xf32> -> vector<2x8x32xf32>
    "tpu.trace_stop"() : () -> ()
    %112 = vector.shape_cast %111 : vector<2x8x32xf32> to vector<16x32xf32>
    %113 = vector.extract_strided_slice %29 {offsets = [64, 0], sizes = [32, 128], strides = [1, 1]} : vector<128x128xf32> to vector<32x128xf32>
    %cst_55 = arith.constant dense<0.000000e+00> : vector<16x128xf32>
    %114 = tpu.matmul %112, %113, %cst_55 {dimension_numbers = #tpu.dot_dimension_numbers<[1], [0], [0], [1], [0, 0, 1, 1], [], []>} : vector<16x32xf32>, vector<32x128xf32>, vector<16x128xf32> -> vector<16x128xf32>
    %115 = arith.addf %93, %114 : vector<16x128xf32>
    %116 = vector.extract_strided_slice %44 {offsets = [0, 0, 96], sizes = [2, 8, 32], strides = [1, 1, 1]} : vector<2x8x128xf32> to vector<2x8x32xf32>
    %117 = vector.extract_strided_slice %46 {offsets = [0, 0, 96], sizes = [2, 8, 32], strides = [1, 1, 1]} : vector<2x8x128xf32> to vector<2x8x32xf32>
    %118 = vector.extract_strided_slice %48 {offsets = [0, 0, 96], sizes = [2, 8, 32], strides = [1, 1, 1]} : vector<2x8x128xf32> to vector<2x8x32xf32>
    "tpu.trace_start"() <{level = 10 : i32, message = "bqd,bkd->bqk"}> : () -> ()
    %cst_56 = arith.constant dense<0.000000e+00> : vector<2x8x8xf32>
    %119 = tpu.matmul %116, %117, %cst_56 {dimension_numbers = #tpu.dot_dimension_numbers<[2], [2], [1], [1], [0, 0, 0, 1, 1, 1], [0], [0]>} : vector<2x8x32xf32>, vector<2x8x32xf32>, vector<2x8x8xf32> -> vector<2x8x8xf32>
    "tpu.trace_stop"() : () -> ()
    %cst_57 = arith.constant 0.176776692 : f32
    %120 = vector.broadcast %cst_57 : f32 to vector<2x8x8xf32>
    %121 = arith.mulf %119, %120 : vector<2x8x8xf32>
    %122 = arith.addf %121, %23 : vector<2x8x8xf32>
    %cst_58 = arith.constant dense<0xFF800000> : vector<2x8xf32>
    %123 = vector.multi_reduction <maximumf>, %122, %cst_58 [2] : vector<2x8x8xf32> to vector<2x8xf32>
    %124 = vector.shape_cast %123 : vector<2x8xf32> to vector<2x8x1xf32>
    %125 = vector.broadcast %124 : vector<2x8x1xf32> to vector<2x8x8xf32>
    %126 = arith.subf %122, %125 : vector<2x8x8xf32>
    %127 = math.exp %126 : vector<2x8x8xf32>
    %cst_59 = arith.constant dense<0.000000e+00> : vector<2x8xf32>
    %128 = vector.multi_reduction <add>, %127, %cst_59 [2] : vector<2x8x8xf32> to vector<2x8xf32>
    %129 = vector.shape_cast %128 : vector<2x8xf32> to vector<2x8x1xf32>
    %130 = tpu.reciprocal %129 {approx = true} : vector<2x8x1xf32> -> vector<2x8x1xf32>
    %131 = vector.broadcast %130 : vector<2x8x1xf32> to vector<2x8x8xf32>
    %132 = arith.mulf %127, %131 : vector<2x8x8xf32>
    "tpu.trace_start"() <{level = 10 : i32, message = "bqk,bkd->bqd"}> : () -> ()
    %cst_60 = arith.constant dense<0.000000e+00> : vector<2x8x32xf32>
    %133 = tpu.matmul %132, %118, %cst_60 {dimension_numbers = #tpu.dot_dimension_numbers<[2], [1], [1], [2], [0, 0, 0, 1, 1, 2], [0], [0]>} : vector<2x8x8xf32>, vector<2x8x32xf32>, vector<2x8x32xf32> -> vector<2x8x32xf32>
    "tpu.trace_stop"() : () -> ()
    %134 = vector.shape_cast %133 : vector<2x8x32xf32> to vector<16x32xf32>
    %135 = vector.extract_strided_slice %29 {offsets = [96, 0], sizes = [32, 128], strides = [1, 1]} : vector<128x128xf32> to vector<32x128xf32>
    %cst_61 = arith.constant dense<0.000000e+00> : vector<16x128xf32>
    %136 = tpu.matmul %134, %135, %cst_61 {dimension_numbers = #tpu.dot_dimension_numbers<[1], [0], [0], [1], [0, 0, 1, 1], [], []>} : vector<16x32xf32>, vector<32x128xf32>, vector<16x128xf32> -> vector<16x128xf32>
    %137 = arith.addf %115, %136 : vector<16x128xf32>
    %138 = vector.broadcast %31 : vector<1x128xf32> to vector<16x128xf32>
    %139 = arith.addf %137, %138 : vector<16x128xf32>
    %140 = arith.addf %139, %22 : vector<16x128xf32>
    %c0_62 = arith.constant 0 : index
    %c0_63 = arith.constant 0 : index
    %c0_64 = arith.constant 0 : index
    %141 = vector.load %arg8[%c0_62, %c0_63, %c0_64] : memref<2x1x128xf32, #tpu.memory_space<vmem>>, vector<1x1x128xf32>
    %142 = vector.shape_cast %141 : vector<1x1x128xf32> to vector<1x128xf32>
    %c0_65 = arith.constant 0 : index
    %c0_66 = arith.constant 0 : index
    %c0_67 = arith.constant 0 : index
    %143 = vector.load %arg9[%c0_65, %c0_66, %c0_67] : memref<2x1x128xf32, #tpu.memory_space<vmem>>, vector<1x1x128xf32>
    %144 = vector.shape_cast %143 : vector<1x1x128xf32> to vector<1x128xf32>
    %cst_68 = arith.constant dense<0.000000e+00> : vector<16xf32>
    %145 = vector.multi_reduction <add>, %140, %cst_68 [1] : vector<16x128xf32> to vector<16xf32>
    %146 = vector.shape_cast %145 : vector<16xf32> to vector<16x1xf32>
    %cst_69 = arith.constant 1.280000e+02 : f32
    %147 = vector.broadcast %cst_69 : f32 to vector<16x1xf32>
    %148 = arith.divf %146, %147 : vector<16x1xf32>
    %149 = vector.broadcast %148 : vector<16x1xf32> to vector<16x128xf32>
    %150 = arith.subf %140, %149 : vector<16x128xf32>
    %151 = arith.mulf %150, %150 : vector<16x128xf32>
    %cst_70 = arith.constant dense<0.000000e+00> : vector<16xf32>
    %152 = vector.multi_reduction <add>, %151, %cst_70 [1] : vector<16x128xf32> to vector<16xf32>
    %153 = vector.shape_cast %152 : vector<16xf32> to vector<16x1xf32>
    %cst_71 = arith.constant 1.280000e+02 : f32
    %154 = vector.broadcast %cst_71 : f32 to vector<16x1xf32>
    %155 = arith.divf %153, %154 : vector<16x1xf32>
    %cst_72 = arith.constant 9.99999996E-13 : f32
    %156 = vector.broadcast %cst_72 : f32 to vector<16x1xf32>
    %157 = arith.addf %155, %156 : vector<16x1xf32>
    %158 = math.rsqrt %157 : vector<16x1xf32>
    %159 = vector.broadcast %158 : vector<16x1xf32> to vector<16x128xf32>
    %160 = arith.mulf %150, %159 : vector<16x128xf32>
    %161 = vector.broadcast %142 : vector<1x128xf32> to vector<16x128xf32>
    %162 = arith.mulf %160, %161 : vector<16x128xf32>
    %163 = vector.broadcast %144 : vector<1x128xf32> to vector<16x128xf32>
    %164 = arith.addf %162, %163 : vector<16x128xf32>
    %cst_73 = arith.constant dense<0.000000e+00> : vector<16x512xf32>
    %165 = tpu.matmul %164, %33, %cst_73 {dimension_numbers = #tpu.dot_dimension_numbers<[1], [0], [0], [1], [0, 0, 1, 1], [], []>} : vector<16x128xf32>, vector<128x512xf32>, vector<16x512xf32> -> vector<16x512xf32>
    %166 = vector.broadcast %35 : vector<1x512xf32> to vector<16x512xf32>
    %167 = arith.addf %165, %166 : vector<16x512xf32>
    %168 = arith.mulf %167, %167 : vector<16x512xf32>
    %169 = arith.mulf %167, %168 : vector<16x512xf32>
    %cst_74 = arith.constant 4.471500e-02 : f32
    %170 = vector.broadcast %cst_74 : f32 to vector<16x512xf32>
    %171 = arith.mulf %170, %169 : vector<16x512xf32>
    %172 = arith.addf %167, %171 : vector<16x512xf32>
    %cst_75 = arith.constant 0.797884583 : f32
    %173 = vector.broadcast %cst_75 : f32 to vector<16x512xf32>
    %174 = arith.mulf %173, %172 : vector<16x512xf32>
    %175 = math.tanh %174 : vector<16x512xf32>
    %cst_76 = arith.constant 1.000000e+00 : f32
    %176 = vector.broadcast %cst_76 : f32 to vector<16x512xf32>
    %177 = arith.addf %176, %175 : vector<16x512xf32>
    %cst_77 = arith.constant 5.000000e-01 : f32
    %178 = vector.broadcast %cst_77 : f32 to vector<16x512xf32>
    %179 = arith.mulf %178, %177 : vector<16x512xf32>
    %180 = arith.mulf %167, %179 : vector<16x512xf32>
    %cst_78 = arith.constant dense<0.000000e+00> : vector<16x128xf32>
    %181 = tpu.matmul %180, %37, %cst_78 {dimension_numbers = #tpu.dot_dimension_numbers<[1], [0], [0], [1], [0, 0, 1, 1], [], []>} : vector<16x512xf32>, vector<512x128xf32>, vector<16x128xf32> -> vector<16x128xf32>
    %182 = vector.broadcast %39 : vector<1x128xf32> to vector<16x128xf32>
    %183 = arith.addf %181, %182 : vector<16x128xf32>
    %184 = arith.addf %183, %164 : vector<16x128xf32>
    %c0_79 = arith.constant 0 : index
    %c0_80 = arith.constant 0 : index
    %c0_81 = arith.constant 0 : index
    %185 = vector.load %arg14[%c0_79, %c0_80, %c0_81] : memref<2x1x128xf32, #tpu.memory_space<vmem>>, vector<1x1x128xf32>
    %186 = vector.shape_cast %185 : vector<1x1x128xf32> to vector<1x128xf32>
    %c0_82 = arith.constant 0 : index
    %c0_83 = arith.constant 0 : index
    %c0_84 = arith.constant 0 : index
    %187 = vector.load %arg15[%c0_82, %c0_83, %c0_84] : memref<2x1x128xf32, #tpu.memory_space<vmem>>, vector<1x1x128xf32>
    %188 = vector.shape_cast %187 : vector<1x1x128xf32> to vector<1x128xf32>
    %cst_85 = arith.constant dense<0.000000e+00> : vector<16xf32>
    %189 = vector.multi_reduction <add>, %184, %cst_85 [1] : vector<16x128xf32> to vector<16xf32>
    %190 = vector.shape_cast %189 : vector<16xf32> to vector<16x1xf32>
    %cst_86 = arith.constant 1.280000e+02 : f32
    %191 = vector.broadcast %cst_86 : f32 to vector<16x1xf32>
    %192 = arith.divf %190, %191 : vector<16x1xf32>
    %193 = vector.broadcast %192 : vector<16x1xf32> to vector<16x128xf32>
    %194 = arith.subf %184, %193 : vector<16x128xf32>
    %195 = arith.mulf %194, %194 : vector<16x128xf32>
    %cst_87 = arith.constant dense<0.000000e+00> : vector<16xf32>
    %196 = vector.multi_reduction <add>, %195, %cst_87 [1] : vector<16x128xf32> to vector<16xf32>
    %197 = vector.shape_cast %196 : vector<16xf32> to vector<16x1xf32>
    %cst_88 = arith.constant 1.280000e+02 : f32
    %198 = vector.broadcast %cst_88 : f32 to vector<16x1xf32>
    %199 = arith.divf %197, %198 : vector<16x1xf32>
    %cst_89 = arith.constant 9.99999996E-13 : f32
    %200 = vector.broadcast %cst_89 : f32 to vector<16x1xf32>
    %201 = arith.addf %199, %200 : vector<16x1xf32>
    %202 = math.rsqrt %201 : vector<16x1xf32>
    %203 = vector.broadcast %202 : vector<16x1xf32> to vector<16x128xf32>
    %204 = arith.mulf %194, %203 : vector<16x128xf32>
    %205 = vector.broadcast %186 : vector<1x128xf32> to vector<16x128xf32>
    %206 = arith.mulf %204, %205 : vector<16x128xf32>
    %207 = vector.broadcast %188 : vector<1x128xf32> to vector<16x128xf32>
    %208 = arith.addf %206, %207 : vector<16x128xf32>
    %c1 = arith.constant 1 : index
    %c0_90 = arith.constant 0 : index
    %c0_91 = arith.constant 0 : index
    %209 = vector.load %arg4[%c1, %c0_90, %c0_91] : memref<2x128x384xf32, #tpu.memory_space<vmem>>, vector<1x128x384xf32>
    %210 = vector.shape_cast %209 : vector<1x128x384xf32> to vector<128x384xf32>
    %c1_92 = arith.constant 1 : index
    %c0_93 = arith.constant 0 : index
    %c0_94 = arith.constant 0 : index
    %211 = vector.load %arg5[%c1_92, %c0_93, %c0_94] : memref<2x1x384xf32, #tpu.memory_space<vmem>>, vector<1x1x384xf32>
    %212 = vector.shape_cast %211 : vector<1x1x384xf32> to vector<1x384xf32>
    %c1_95 = arith.constant 1 : index
    %c0_96 = arith.constant 0 : index
    %c0_97 = arith.constant 0 : index
    %213 = vector.load %arg6[%c1_95, %c0_96, %c0_97] : memref<2x128x128xf32, #tpu.memory_space<vmem>>, vector<1x128x128xf32>
    %214 = vector.shape_cast %213 : vector<1x128x128xf32> to vector<128x128xf32>
    %c1_98 = arith.constant 1 : index
    %c0_99 = arith.constant 0 : index
    %c0_100 = arith.constant 0 : index
    %215 = vector.load %arg7[%c1_98, %c0_99, %c0_100] : memref<2x1x128xf32, #tpu.memory_space<vmem>>, vector<1x1x128xf32>
    %216 = vector.shape_cast %215 : vector<1x1x128xf32> to vector<1x128xf32>
    %c1_101 = arith.constant 1 : index
    %c0_102 = arith.constant 0 : index
    %c0_103 = arith.constant 0 : index
    %217 = vector.load %arg10[%c1_101, %c0_102, %c0_103] : memref<2x128x512xf32, #tpu.memory_space<vmem>>, vector<1x128x512xf32>
    %218 = vector.shape_cast %217 : vector<1x128x512xf32> to vector<128x512xf32>
    %c1_104 = arith.constant 1 : index
    %c0_105 = arith.constant 0 : index
    %c0_106 = arith.constant 0 : index
    %219 = vector.load %arg11[%c1_104, %c0_105, %c0_106] : memref<2x1x512xf32, #tpu.memory_space<vmem>>, vector<1x1x512xf32>
    %220 = vector.shape_cast %219 : vector<1x1x512xf32> to vector<1x512xf32>
    %c1_107 = arith.constant 1 : index
    %c0_108 = arith.constant 0 : index
    %c0_109 = arith.constant 0 : index
    %221 = vector.load %arg12[%c1_107, %c0_108, %c0_109] : memref<2x512x128xf32, #tpu.memory_space<vmem>>, vector<1x512x128xf32>
    %222 = vector.shape_cast %221 : vector<1x512x128xf32> to vector<512x128xf32>
    %c1_110 = arith.constant 1 : index
    %c0_111 = arith.constant 0 : index
    %c0_112 = arith.constant 0 : index
    %223 = vector.load %arg13[%c1_110, %c0_111, %c0_112] : memref<2x1x128xf32, #tpu.memory_space<vmem>>, vector<1x1x128xf32>
    %224 = vector.shape_cast %223 : vector<1x1x128xf32> to vector<1x128xf32>
    %cst_113 = arith.constant dense<0.000000e+00> : vector<16x384xf32>
    %225 = tpu.matmul %208, %210, %cst_113 {dimension_numbers = #tpu.dot_dimension_numbers<[1], [0], [0], [1], [0, 0, 1, 1], [], []>} : vector<16x128xf32>, vector<128x384xf32>, vector<16x384xf32> -> vector<16x384xf32>
    %226 = vector.broadcast %212 : vector<1x384xf32> to vector<16x384xf32>
    %227 = arith.addf %225, %226 : vector<16x384xf32>
    %228 = vector.extract_strided_slice %227 {offsets = [0, 0], sizes = [16, 128], strides = [1, 1]} : vector<16x384xf32> to vector<16x128xf32>
    %229 = vector.shape_cast %228 : vector<16x128xf32> to vector<2x8x128xf32>
    %230 = vector.extract_strided_slice %227 {offsets = [0, 128], sizes = [16, 128], strides = [1, 1]} : vector<16x384xf32> to vector<16x128xf32>
    %231 = vector.shape_cast %230 : vector<16x128xf32> to vector<2x8x128xf32>
    %232 = vector.extract_strided_slice %227 {offsets = [0, 256], sizes = [16, 128], strides = [1, 1]} : vector<16x384xf32> to vector<16x128xf32>
    %233 = vector.shape_cast %232 : vector<16x128xf32> to vector<2x8x128xf32>
    %cst_114 = arith.constant 0.000000e+00 : f32
    %234 = vector.broadcast %cst_114 : f32 to vector<16x128xf32>
    %235 = vector.extract_strided_slice %229 {offsets = [0, 0, 0], sizes = [2, 8, 32], strides = [1, 1, 1]} : vector<2x8x128xf32> to vector<2x8x32xf32>
    %236 = vector.extract_strided_slice %231 {offsets = [0, 0, 0], sizes = [2, 8, 32], strides = [1, 1, 1]} : vector<2x8x128xf32> to vector<2x8x32xf32>
    %237 = vector.extract_strided_slice %233 {offsets = [0, 0, 0], sizes = [2, 8, 32], strides = [1, 1, 1]} : vector<2x8x128xf32> to vector<2x8x32xf32>
    "tpu.trace_start"() <{level = 10 : i32, message = "bqd,bkd->bqk"}> : () -> ()
    %cst_115 = arith.constant dense<0.000000e+00> : vector<2x8x8xf32>
    %238 = tpu.matmul %235, %236, %cst_115 {dimension_numbers = #tpu.dot_dimension_numbers<[2], [2], [1], [1], [0, 0, 0, 1, 1, 1], [0], [0]>} : vector<2x8x32xf32>, vector<2x8x32xf32>, vector<2x8x8xf32> -> vector<2x8x8xf32>
    "tpu.trace_stop"() : () -> ()
    %cst_116 = arith.constant 0.176776692 : f32
    %239 = vector.broadcast %cst_116 : f32 to vector<2x8x8xf32>
    %240 = arith.mulf %238, %239 : vector<2x8x8xf32>
    %241 = arith.addf %240, %23 : vector<2x8x8xf32>
    %cst_117 = arith.constant dense<0xFF800000> : vector<2x8xf32>
    %242 = vector.multi_reduction <maximumf>, %241, %cst_117 [2] : vector<2x8x8xf32> to vector<2x8xf32>
    %243 = vector.shape_cast %242 : vector<2x8xf32> to vector<2x8x1xf32>
    %244 = vector.broadcast %243 : vector<2x8x1xf32> to vector<2x8x8xf32>
    %245 = arith.subf %241, %244 : vector<2x8x8xf32>
    %246 = math.exp %245 : vector<2x8x8xf32>
    %cst_118 = arith.constant dense<0.000000e+00> : vector<2x8xf32>
    %247 = vector.multi_reduction <add>, %246, %cst_118 [2] : vector<2x8x8xf32> to vector<2x8xf32>
    %248 = vector.shape_cast %247 : vector<2x8xf32> to vector<2x8x1xf32>
    %249 = tpu.reciprocal %248 {approx = true} : vector<2x8x1xf32> -> vector<2x8x1xf32>
    %250 = vector.broadcast %249 : vector<2x8x1xf32> to vector<2x8x8xf32>
    %251 = arith.mulf %246, %250 : vector<2x8x8xf32>
    "tpu.trace_start"() <{level = 10 : i32, message = "bqk,bkd->bqd"}> : () -> ()
    %cst_119 = arith.constant dense<0.000000e+00> : vector<2x8x32xf32>
    %252 = tpu.matmul %251, %237, %cst_119 {dimension_numbers = #tpu.dot_dimension_numbers<[2], [1], [1], [2], [0, 0, 0, 1, 1, 2], [0], [0]>} : vector<2x8x8xf32>, vector<2x8x32xf32>, vector<2x8x32xf32> -> vector<2x8x32xf32>
    "tpu.trace_stop"() : () -> ()
    %253 = vector.shape_cast %252 : vector<2x8x32xf32> to vector<16x32xf32>
    %254 = vector.extract_strided_slice %214 {offsets = [0, 0], sizes = [32, 128], strides = [1, 1]} : vector<128x128xf32> to vector<32x128xf32>
    %cst_120 = arith.constant dense<0.000000e+00> : vector<16x128xf32>
    %255 = tpu.matmul %253, %254, %cst_120 {dimension_numbers = #tpu.dot_dimension_numbers<[1], [0], [0], [1], [0, 0, 1, 1], [], []>} : vector<16x32xf32>, vector<32x128xf32>, vector<16x128xf32> -> vector<16x128xf32>
    %256 = arith.addf %234, %255 : vector<16x128xf32>
    %257 = vector.extract_strided_slice %229 {offsets = [0, 0, 32], sizes = [2, 8, 32], strides = [1, 1, 1]} : vector<2x8x128xf32> to vector<2x8x32xf32>
    %258 = vector.extract_strided_slice %231 {offsets = [0, 0, 32], sizes = [2, 8, 32], strides = [1, 1, 1]} : vector<2x8x128xf32> to vector<2x8x32xf32>
    %259 = vector.extract_strided_slice %233 {offsets = [0, 0, 32], sizes = [2, 8, 32], strides = [1, 1, 1]} : vector<2x8x128xf32> to vector<2x8x32xf32>
    "tpu.trace_start"() <{level = 10 : i32, message = "bqd,bkd->bqk"}> : () -> ()
    %cst_121 = arith.constant dense<0.000000e+00> : vector<2x8x8xf32>
    %260 = tpu.matmul %257, %258, %cst_121 {dimension_numbers = #tpu.dot_dimension_numbers<[2], [2], [1], [1], [0, 0, 0, 1, 1, 1], [0], [0]>} : vector<2x8x32xf32>, vector<2x8x32xf32>, vector<2x8x8xf32> -> vector<2x8x8xf32>
    "tpu.trace_stop"() : () -> ()
    %cst_122 = arith.constant 0.176776692 : f32
    %261 = vector.broadcast %cst_122 : f32 to vector<2x8x8xf32>
    %262 = arith.mulf %260, %261 : vector<2x8x8xf32>
    %263 = arith.addf %262, %23 : vector<2x8x8xf32>
    %cst_123 = arith.constant dense<0xFF800000> : vector<2x8xf32>
    %264 = vector.multi_reduction <maximumf>, %263, %cst_123 [2] : vector<2x8x8xf32> to vector<2x8xf32>
    %265 = vector.shape_cast %264 : vector<2x8xf32> to vector<2x8x1xf32>
    %266 = vector.broadcast %265 : vector<2x8x1xf32> to vector<2x8x8xf32>
    %267 = arith.subf %263, %266 : vector<2x8x8xf32>
    %268 = math.exp %267 : vector<2x8x8xf32>
    %cst_124 = arith.constant dense<0.000000e+00> : vector<2x8xf32>
    %269 = vector.multi_reduction <add>, %268, %cst_124 [2] : vector<2x8x8xf32> to vector<2x8xf32>
    %270 = vector.shape_cast %269 : vector<2x8xf32> to vector<2x8x1xf32>
    %271 = tpu.reciprocal %270 {approx = true} : vector<2x8x1xf32> -> vector<2x8x1xf32>
    %272 = vector.broadcast %271 : vector<2x8x1xf32> to vector<2x8x8xf32>
    %273 = arith.mulf %268, %272 : vector<2x8x8xf32>
    "tpu.trace_start"() <{level = 10 : i32, message = "bqk,bkd->bqd"}> : () -> ()
    %cst_125 = arith.constant dense<0.000000e+00> : vector<2x8x32xf32>
    %274 = tpu.matmul %273, %259, %cst_125 {dimension_numbers = #tpu.dot_dimension_numbers<[2], [1], [1], [2], [0, 0, 0, 1, 1, 2], [0], [0]>} : vector<2x8x8xf32>, vector<2x8x32xf32>, vector<2x8x32xf32> -> vector<2x8x32xf32>
    "tpu.trace_stop"() : () -> ()
    %275 = vector.shape_cast %274 : vector<2x8x32xf32> to vector<16x32xf32>
    %276 = vector.extract_strided_slice %214 {offsets = [32, 0], sizes = [32, 128], strides = [1, 1]} : vector<128x128xf32> to vector<32x128xf32>
    %cst_126 = arith.constant dense<0.000000e+00> : vector<16x128xf32>
    %277 = tpu.matmul %275, %276, %cst_126 {dimension_numbers = #tpu.dot_dimension_numbers<[1], [0], [0], [1], [0, 0, 1, 1], [], []>} : vector<16x32xf32>, vector<32x128xf32>, vector<16x128xf32> -> vector<16x128xf32>
    %278 = arith.addf %256, %277 : vector<16x128xf32>
    %279 = vector.extract_strided_slice %229 {offsets = [0, 0, 64], sizes = [2, 8, 32], strides = [1, 1, 1]} : vector<2x8x128xf32> to vector<2x8x32xf32>
    %280 = vector.extract_strided_slice %231 {offsets = [0, 0, 64], sizes = [2, 8, 32], strides = [1, 1, 1]} : vector<2x8x128xf32> to vector<2x8x32xf32>
    %281 = vector.extract_strided_slice %233 {offsets = [0, 0, 64], sizes = [2, 8, 32], strides = [1, 1, 1]} : vector<2x8x128xf32> to vector<2x8x32xf32>
    "tpu.trace_start"() <{level = 10 : i32, message = "bqd,bkd->bqk"}> : () -> ()
    %cst_127 = arith.constant dense<0.000000e+00> : vector<2x8x8xf32>
    %282 = tpu.matmul %279, %280, %cst_127 {dimension_numbers = #tpu.dot_dimension_numbers<[2], [2], [1], [1], [0, 0, 0, 1, 1, 1], [0], [0]>} : vector<2x8x32xf32>, vector<2x8x32xf32>, vector<2x8x8xf32> -> vector<2x8x8xf32>
    "tpu.trace_stop"() : () -> ()
    %cst_128 = arith.constant 0.176776692 : f32
    %283 = vector.broadcast %cst_128 : f32 to vector<2x8x8xf32>
    %284 = arith.mulf %282, %283 : vector<2x8x8xf32>
    %285 = arith.addf %284, %23 : vector<2x8x8xf32>
    %cst_129 = arith.constant dense<0xFF800000> : vector<2x8xf32>
    %286 = vector.multi_reduction <maximumf>, %285, %cst_129 [2] : vector<2x8x8xf32> to vector<2x8xf32>
    %287 = vector.shape_cast %286 : vector<2x8xf32> to vector<2x8x1xf32>
    %288 = vector.broadcast %287 : vector<2x8x1xf32> to vector<2x8x8xf32>
    %289 = arith.subf %285, %288 : vector<2x8x8xf32>
    %290 = math.exp %289 : vector<2x8x8xf32>
    %cst_130 = arith.constant dense<0.000000e+00> : vector<2x8xf32>
    %291 = vector.multi_reduction <add>, %290, %cst_130 [2] : vector<2x8x8xf32> to vector<2x8xf32>
    %292 = vector.shape_cast %291 : vector<2x8xf32> to vector<2x8x1xf32>
    %293 = tpu.reciprocal %292 {approx = true} : vector<2x8x1xf32> -> vector<2x8x1xf32>
    %294 = vector.broadcast %293 : vector<2x8x1xf32> to vector<2x8x8xf32>
    %295 = arith.mulf %290, %294 : vector<2x8x8xf32>
    "tpu.trace_start"() <{level = 10 : i32, message = "bqk,bkd->bqd"}> : () -> ()
    %cst_131 = arith.constant dense<0.000000e+00> : vector<2x8x32xf32>
    %296 = tpu.matmul %295, %281, %cst_131 {dimension_numbers = #tpu.dot_dimension_numbers<[2], [1], [1], [2], [0, 0, 0, 1, 1, 2], [0], [0]>} : vector<2x8x8xf32>, vector<2x8x32xf32>, vector<2x8x32xf32> -> vector<2x8x32xf32>
    "tpu.trace_stop"() : () -> ()
    %297 = vector.shape_cast %296 : vector<2x8x32xf32> to vector<16x32xf32>
    %298 = vector.extract_strided_slice %214 {offsets = [64, 0], sizes = [32, 128], strides = [1, 1]} : vector<128x128xf32> to vector<32x128xf32>
    %cst_132 = arith.constant dense<0.000000e+00> : vector<16x128xf32>
    %299 = tpu.matmul %297, %298, %cst_132 {dimension_numbers = #tpu.dot_dimension_numbers<[1], [0], [0], [1], [0, 0, 1, 1], [], []>} : vector<16x32xf32>, vector<32x128xf32>, vector<16x128xf32> -> vector<16x128xf32>
    %300 = arith.addf %278, %299 : vector<16x128xf32>
    %301 = vector.extract_strided_slice %229 {offsets = [0, 0, 96], sizes = [2, 8, 32], strides = [1, 1, 1]} : vector<2x8x128xf32> to vector<2x8x32xf32>
    %302 = vector.extract_strided_slice %231 {offsets = [0, 0, 96], sizes = [2, 8, 32], strides = [1, 1, 1]} : vector<2x8x128xf32> to vector<2x8x32xf32>
    %303 = vector.extract_strided_slice %233 {offsets = [0, 0, 96], sizes = [2, 8, 32], strides = [1, 1, 1]} : vector<2x8x128xf32> to vector<2x8x32xf32>
    "tpu.trace_start"() <{level = 10 : i32, message = "bqd,bkd->bqk"}> : () -> ()
    %cst_133 = arith.constant dense<0.000000e+00> : vector<2x8x8xf32>
    %304 = tpu.matmul %301, %302, %cst_133 {dimension_numbers = #tpu.dot_dimension_numbers<[2], [2], [1], [1], [0, 0, 0, 1, 1, 1], [0], [0]>} : vector<2x8x32xf32>, vector<2x8x32xf32>, vector<2x8x8xf32> -> vector<2x8x8xf32>
    "tpu.trace_stop"() : () -> ()
    %cst_134 = arith.constant 0.176776692 : f32
    %305 = vector.broadcast %cst_134 : f32 to vector<2x8x8xf32>
    %306 = arith.mulf %304, %305 : vector<2x8x8xf32>
    %307 = arith.addf %306, %23 : vector<2x8x8xf32>
    %cst_135 = arith.constant dense<0xFF800000> : vector<2x8xf32>
    %308 = vector.multi_reduction <maximumf>, %307, %cst_135 [2] : vector<2x8x8xf32> to vector<2x8xf32>
    %309 = vector.shape_cast %308 : vector<2x8xf32> to vector<2x8x1xf32>
    %310 = vector.broadcast %309 : vector<2x8x1xf32> to vector<2x8x8xf32>
    %311 = arith.subf %307, %310 : vector<2x8x8xf32>
    %312 = math.exp %311 : vector<2x8x8xf32>
    %cst_136 = arith.constant dense<0.000000e+00> : vector<2x8xf32>
    %313 = vector.multi_reduction <add>, %312, %cst_136 [2] : vector<2x8x8xf32> to vector<2x8xf32>
    %314 = vector.shape_cast %313 : vector<2x8xf32> to vector<2x8x1xf32>
    %315 = tpu.reciprocal %314 {approx = true} : vector<2x8x1xf32> -> vector<2x8x1xf32>
    %316 = vector.broadcast %315 : vector<2x8x1xf32> to vector<2x8x8xf32>
    %317 = arith.mulf %312, %316 : vector<2x8x8xf32>
    "tpu.trace_start"() <{level = 10 : i32, message = "bqk,bkd->bqd"}> : () -> ()
    %cst_137 = arith.constant dense<0.000000e+00> : vector<2x8x32xf32>
    %318 = tpu.matmul %317, %303, %cst_137 {dimension_numbers = #tpu.dot_dimension_numbers<[2], [1], [1], [2], [0, 0, 0, 1, 1, 2], [0], [0]>} : vector<2x8x8xf32>, vector<2x8x32xf32>, vector<2x8x32xf32> -> vector<2x8x32xf32>
    "tpu.trace_stop"() : () -> ()
    %319 = vector.shape_cast %318 : vector<2x8x32xf32> to vector<16x32xf32>
    %320 = vector.extract_strided_slice %214 {offsets = [96, 0], sizes = [32, 128], strides = [1, 1]} : vector<128x128xf32> to vector<32x128xf32>
    %cst_138 = arith.constant dense<0.000000e+00> : vector<16x128xf32>
    %321 = tpu.matmul %319, %320, %cst_138 {dimension_numbers = #tpu.dot_dimension_numbers<[1], [0], [0], [1], [0, 0, 1, 1], [], []>} : vector<16x32xf32>, vector<32x128xf32>, vector<16x128xf32> -> vector<16x128xf32>
    %322 = arith.addf %300, %321 : vector<16x128xf32>
    %323 = vector.broadcast %216 : vector<1x128xf32> to vector<16x128xf32>
    %324 = arith.addf %322, %323 : vector<16x128xf32>
    %325 = arith.addf %324, %208 : vector<16x128xf32>
    %c1_139 = arith.constant 1 : index
    %c0_140 = arith.constant 0 : index
    %c0_141 = arith.constant 0 : index
    %326 = vector.load %arg8[%c1_139, %c0_140, %c0_141] : memref<2x1x128xf32, #tpu.memory_space<vmem>>, vector<1x1x128xf32>
    %327 = vector.shape_cast %326 : vector<1x1x128xf32> to vector<1x128xf32>
    %c1_142 = arith.constant 1 : index
    %c0_143 = arith.constant 0 : index
    %c0_144 = arith.constant 0 : index
    %328 = vector.load %arg9[%c1_142, %c0_143, %c0_144] : memref<2x1x128xf32, #tpu.memory_space<vmem>>, vector<1x1x128xf32>
    %329 = vector.shape_cast %328 : vector<1x1x128xf32> to vector<1x128xf32>
    %cst_145 = arith.constant dense<0.000000e+00> : vector<16xf32>
    %330 = vector.multi_reduction <add>, %325, %cst_145 [1] : vector<16x128xf32> to vector<16xf32>
    %331 = vector.shape_cast %330 : vector<16xf32> to vector<16x1xf32>
    %cst_146 = arith.constant 1.280000e+02 : f32
    %332 = vector.broadcast %cst_146 : f32 to vector<16x1xf32>
    %333 = arith.divf %331, %332 : vector<16x1xf32>
    %334 = vector.broadcast %333 : vector<16x1xf32> to vector<16x128xf32>
    %335 = arith.subf %325, %334 : vector<16x128xf32>
    %336 = arith.mulf %335, %335 : vector<16x128xf32>
    %cst_147 = arith.constant dense<0.000000e+00> : vector<16xf32>
    %337 = vector.multi_reduction <add>, %336, %cst_147 [1] : vector<16x128xf32> to vector<16xf32>
    %338 = vector.shape_cast %337 : vector<16xf32> to vector<16x1xf32>
    %cst_148 = arith.constant 1.280000e+02 : f32
    %339 = vector.broadcast %cst_148 : f32 to vector<16x1xf32>
    %340 = arith.divf %338, %339 : vector<16x1xf32>
    %cst_149 = arith.constant 9.99999996E-13 : f32
    %341 = vector.broadcast %cst_149 : f32 to vector<16x1xf32>
    %342 = arith.addf %340, %341 : vector<16x1xf32>
    %343 = math.rsqrt %342 : vector<16x1xf32>
    %344 = vector.broadcast %343 : vector<16x1xf32> to vector<16x128xf32>
    %345 = arith.mulf %335, %344 : vector<16x128xf32>
    %346 = vector.broadcast %327 : vector<1x128xf32> to vector<16x128xf32>
    %347 = arith.mulf %345, %346 : vector<16x128xf32>
    %348 = vector.broadcast %329 : vector<1x128xf32> to vector<16x128xf32>
    %349 = arith.addf %347, %348 : vector<16x128xf32>
    %cst_150 = arith.constant dense<0.000000e+00> : vector<16x512xf32>
    %350 = tpu.matmul %349, %218, %cst_150 {dimension_numbers = #tpu.dot_dimension_numbers<[1], [0], [0], [1], [0, 0, 1, 1], [], []>} : vector<16x128xf32>, vector<128x512xf32>, vector<16x512xf32> -> vector<16x512xf32>
    %351 = vector.broadcast %220 : vector<1x512xf32> to vector<16x512xf32>
    %352 = arith.addf %350, %351 : vector<16x512xf32>
    %353 = arith.mulf %352, %352 : vector<16x512xf32>
    %354 = arith.mulf %352, %353 : vector<16x512xf32>
    %cst_151 = arith.constant 4.471500e-02 : f32
    %355 = vector.broadcast %cst_151 : f32 to vector<16x512xf32>
    %356 = arith.mulf %355, %354 : vector<16x512xf32>
    %357 = arith.addf %352, %356 : vector<16x512xf32>
    %cst_152 = arith.constant 0.797884583 : f32
    %358 = vector.broadcast %cst_152 : f32 to vector<16x512xf32>
    %359 = arith.mulf %358, %357 : vector<16x512xf32>
    %360 = math.tanh %359 : vector<16x512xf32>
    %cst_153 = arith.constant 1.000000e+00 : f32
    %361 = vector.broadcast %cst_153 : f32 to vector<16x512xf32>
    %362 = arith.addf %361, %360 : vector<16x512xf32>
    %cst_154 = arith.constant 5.000000e-01 : f32
    %363 = vector.broadcast %cst_154 : f32 to vector<16x512xf32>
    %364 = arith.mulf %363, %362 : vector<16x512xf32>
    %365 = arith.mulf %352, %364 : vector<16x512xf32>
    %cst_155 = arith.constant dense<0.000000e+00> : vector<16x128xf32>
    %366 = tpu.matmul %365, %222, %cst_155 {dimension_numbers = #tpu.dot_dimension_numbers<[1], [0], [0], [1], [0, 0, 1, 1], [], []>} : vector<16x512xf32>, vector<512x128xf32>, vector<16x128xf32> -> vector<16x128xf32>
    %367 = vector.broadcast %224 : vector<1x128xf32> to vector<16x128xf32>
    %368 = arith.addf %366, %367 : vector<16x128xf32>
    %369 = arith.addf %368, %349 : vector<16x128xf32>
    %c1_156 = arith.constant 1 : index
    %c0_157 = arith.constant 0 : index
    %c0_158 = arith.constant 0 : index
    %370 = vector.load %arg14[%c1_156, %c0_157, %c0_158] : memref<2x1x128xf32, #tpu.memory_space<vmem>>, vector<1x1x128xf32>
    %371 = vector.shape_cast %370 : vector<1x1x128xf32> to vector<1x128xf32>
    %c1_159 = arith.constant 1 : index
    %c0_160 = arith.constant 0 : index
    %c0_161 = arith.constant 0 : index
    %372 = vector.load %arg15[%c1_159, %c0_160, %c0_161] : memref<2x1x128xf32, #tpu.memory_space<vmem>>, vector<1x1x128xf32>
    %373 = vector.shape_cast %372 : vector<1x1x128xf32> to vector<1x128xf32>
    %cst_162 = arith.constant dense<0.000000e+00> : vector<16xf32>
    %374 = vector.multi_reduction <add>, %369, %cst_162 [1] : vector<16x128xf32> to vector<16xf32>
    %375 = vector.shape_cast %374 : vector<16xf32> to vector<16x1xf32>
    %cst_163 = arith.constant 1.280000e+02 : f32
    %376 = vector.broadcast %cst_163 : f32 to vector<16x1xf32>
    %377 = arith.divf %375, %376 : vector<16x1xf32>
    %378 = vector.broadcast %377 : vector<16x1xf32> to vector<16x128xf32>
    %379 = arith.subf %369, %378 : vector<16x128xf32>
    %380 = arith.mulf %379, %379 : vector<16x128xf32>
    %cst_164 = arith.constant dense<0.000000e+00> : vector<16xf32>
    %381 = vector.multi_reduction <add>, %380, %cst_164 [1] : vector<16x128xf32> to vector<16xf32>
    %382 = vector.shape_cast %381 : vector<16xf32> to vector<16x1xf32>
    %cst_165 = arith.constant 1.280000e+02 : f32
    %383 = vector.broadcast %cst_165 : f32 to vector<16x1xf32>
    %384 = arith.divf %382, %383 : vector<16x1xf32>
    %cst_166 = arith.constant 9.99999996E-13 : f32
    %385 = vector.broadcast %cst_166 : f32 to vector<16x1xf32>
    %386 = arith.addf %384, %385 : vector<16x1xf32>
    %387 = math.rsqrt %386 : vector<16x1xf32>
    %388 = vector.broadcast %387 : vector<16x1xf32> to vector<16x128xf32>
    %389 = arith.mulf %379, %388 : vector<16x128xf32>
    %390 = vector.broadcast %371 : vector<1x128xf32> to vector<16x128xf32>
    %391 = arith.mulf %389, %390 : vector<16x128xf32>
    %392 = vector.broadcast %373 : vector<1x128xf32> to vector<16x128xf32>
    %393 = arith.addf %391, %392 : vector<16x128xf32>
    %c0_167 = arith.constant 0 : index
    %c0_168 = arith.constant 0 : index
    %394 = vector.load %arg16[%c0_167, %c0_168] : memref<128x128xf32, #tpu.memory_space<vmem>>, vector<128x128xf32>
    %cst_169 = arith.constant dense<0.000000e+00> : vector<16x128xf32>
    %395 = tpu.matmul %393, %394, %cst_169 {dimension_numbers = #tpu.dot_dimension_numbers<[1], [0], [0], [1], [0, 0, 1, 1], [], []>} : vector<16x128xf32>, vector<128x128xf32>, vector<16x128xf32> -> vector<16x128xf32>
    %c0_170 = arith.constant 0 : index
    %c0_171 = arith.constant 0 : index
    %396 = vector.load %arg17[%c0_170, %c0_171] : memref<1x128xf32, #tpu.memory_space<vmem>>, vector<1x128xf32>
    %397 = vector.broadcast %396 : vector<1x128xf32> to vector<16x128xf32>
    %398 = arith.addf %395, %397 : vector<16x128xf32>
    %c0_172 = arith.constant 0 : index
    %c0_173 = arith.constant 0 : index
    %399 = vector.load %arg18[%c0_172, %c0_173] : memref<16x128xf32, #tpu.memory_space<vmem>>, vector<16x128xf32>
    tpu.vector_store %arg18[%c0_172, %c0_173], %398 {strides = array<i32>} : memref<16x128xf32, #tpu.memory_space<vmem>>, vector<16x128xf32>,
    return
  }
}

</mosaic_0001>

<bundles_post_ra>
// kernel: bert_based_uncased_forward.1
= control target key start
LH: loop header
LB: loop body
LE: loop exit
PB: predicated region body
PF: predicated region fallthrough
CT: control target
= control target key end

     0   :  { %s7709_s0 = inlined_call_operand.vmem [shape: f32[16,128], index: 0, kind: input, shape index: {}]   ;;  %s7710_s1 = inlined_call_operand.vmem [shape: f32[2,8,8], index: 1, kind: input, shape index: {}]   ;;  %s7711_s2 = inlined_call_operand.vmem [shape: f32[1,128], index: 2, kind: input, shape index: {}]   ;;  %s7712_s3 = inlined_call_operand.vmem [shape: f32[1,128], index: 3, kind: input, shape index: {}]   ;;  %s7713_s4 = inlined_call_operand.hbm [shape: f32[2,128,384], index: 4, kind: input, shape index: {}]   ;;  %s7714_s5 = inlined_call_operand.vmem [shape: f32[2,1,384], index: 5, kind: input, shape index: {}]   ;;  %s7715_s6 = inlined_call_operand.vmem [shape: f32[2,128,128], index: 6, kind: input, shape index: {}]   ;;  %s7716_s7 = inlined_call_operand.vmem [shape: f32[2,1,128], index: 7, kind: input, shape index: {}]   ;;  %s7717_s8 = inlined_call_operand.vmem [shape: f32[2,1,128], index: 8, kind: input, shape index: {}]   ;;  %s7718_s9 = inlined_call_operand.vmem [shape: f32[2,1,128], index: 9, kind: input, shape index: {}]   ;;  %s7719_s10 = inlined_call_operand.hbm [shape: f32[2,128,512], index: 10, kind: input, shape index: {}]   ;;  %s7720_s11 = inlined_call_operand.vmem [shape: f32[2,1,512], index: 11, kind: input, shape index: {}]   ;;  %s7721_s12 = inlined_call_operand.hbm [shape: f32[2,512,128], index: 12, kind: input, shape index: {}]   ;;  %s7722_s13 = inlined_call_operand.vmem [shape: f32[2,1,128], index: 13, kind: input, shape index: {}]   ;;  %s7723_s14 = inlined_call_operand.vmem [shape: f32[2,1,128], index: 14, kind: input, shape index: {}]   ;;  %s7724_s15 = inlined_call_operand.vmem [shape: f32[2,1,128], index: 15, kind: input, shape index: {}]   ;;  %s7725_s16 = inlined_call_operand.vmem [shape: f32[128,128], index: 16, kind: input, shape index: {}]   ;;  %s7726_s17 = inlined_call_operand.vmem [shape: f32[1,128], index: 17, kind: input, shape index: {}]   ;;  %s7727_s18 = inlined_call_operand.vmem [shape: f32[16,128], index: 18, kind: output, shape index: {}]  }
   0x1   :  { %7730 = sst [smem:[#allocation9_spill]] %s7709_s0 }
   0x2   :  { %7731 = sst [smem:[#allocation10_spill]] %s7710_s1 }
   0x3   :  { %7732 = sst [smem:[#allocation11_spill]] %s7711_s2 }
   0x4   :  { %23 = vsyncpa [#allocation3], 0 }
   0x5   :  { %24 = vsyncpa [#allocation5], 0  ;;  %s6762_s27 = smov [#allocation4]   ;;  %s6692_s0 = scalar_lea.hbm %s7719_s10, 16384 }
   0x6   :  { %s60_s28 = sshll.u32 %s6762_s27, 4  ;;  %p6693_p0 = scmp.ne.s32.totalorder %s7719_s10, %s6692_s0  ;;  %s61_s28 = int_to_ptr.vmem [resolvable:$true] %s60_s28 }
   0x7   :  { %p6696_p1 = scmp.lt.u32.totalorder %s6692_s0, %s7719_s10 }
   0x9   :  { %p6698_p2 = pnand %p6696_p1, %p6693_p0 }
   0xb   :  { %6701 = shalt.err (!%p6698_p2)
}
   0xc   :  { %s6702_s22 = scalar_lea.vmem %s61_s28, 16384  ;;  %p6707_p4 = scmp.lt.s32.totalorder %s61_s28, %s61_s28 }
   0xd   :  { %p6703_p3 = scmp.ne.s32.totalorder %s61_s28, %s6702_s22  ;;  %p6708_p5 = scmp.lt.s32.totalorder %s6702_s22, %s6702_s22 }
   0xf   :  { %p6709_p6 = por %p6708_p5, %p6707_p4 }
  0x11   :  { %p6710_p7 = pnand %p6709_p6, %p6703_p3 }
  0x13   :  { %6713 = shalt.err (!%p6710_p7)
}
  0x14   :  { %s6763_s2 = smov 512   ;;  %s6764_s23 = smov 32  }
  0x15   :  { %66 = dma.hbm_to_vmem [thread:$0]  %s7719_s10, 16384, %s61_s28, [#allocation5], %s6763_s2, %s6763_s2, %s6764_s23  }
  0x16   :  { %s6765_s26 = smov [#allocation2]   ;;  %s6714_s0 = scalar_lea.hbm %s7713_s4, 12288 }
  0x17   :  { %s38_s27 = sshll.u32 %s6765_s26, 4  ;;  %p6715_p8 = scmp.ne.s32.totalorder %s7713_s4, %s6714_s0  ;;  %s39_s27 = int_to_ptr.vmem [resolvable:$true] %s38_s27 }
  0x18   :  { %p6718_p9 = scmp.lt.u32.totalorder %s6714_s0, %s7713_s4 }
  0x1a   :  { %p6720_p10 = pnand %p6718_p9, %p6715_p8 }
  0x1c   :  { %6723 = shalt.err (!%p6720_p10)
}
  0x1d   :  { %s6724_s22 = scalar_lea.vmem %s39_s27, 12288  ;;  %p6729_p12 = scmp.lt.s32.totalorder %s39_s27, %s39_s27 }
  0x1e   :  { %p6725_p11 = scmp.ne.s32.totalorder %s39_s27, %s6724_s22  ;;  %p6730_p13 = scmp.lt.s32.totalorder %s6724_s22, %s6724_s22 }
  0x20   :  { %p6731_p0 = por %p6730_p13, %p6729_p12 }
  0x22   :  { %p6732_p1 = pnand %p6731_p0, %p6725_p11 }
  0x24   :  { %6735 = shalt.err (!%p6732_p1)
}
  0x25   :  { %s6766_s10 = smov 384   ;;  %s6767_s28 = smov 24  }
  0x26   :  { %44 = dma.hbm_to_vmem [thread:$0]  %s7713_s4, 12288, %s39_s27, [#allocation3], %s6766_s10, %s6766_s10, %s6767_s28  }
  0x27   :  { %s6768_s25 = smov [#allocation6]   ;;  %s6736_s0 = scalar_lea.hbm %s7721_s12, 16384 }
  0x28   :  { %s74_s26 = sshll.u32 %s6768_s25, 4  ;;  %p6737_p2 = scmp.ne.s32.totalorder %s7721_s12, %s6736_s0  ;;  %s75_s26 = int_to_ptr.vmem [resolvable:$true] %s74_s26 }
  0x29   :  { %p6740_p3 = scmp.lt.u32.totalorder %s6736_s0, %s7721_s12 }
  0x2b   :  { %p6742_p4 = pnand %p6740_p3, %p6737_p2 }
  0x2d   :  { %6745 = shalt.err (!%p6742_p4)
}
  0x2e   :  { %s6746_s22 = scalar_lea.vmem %s75_s26, 16384  ;;  %p6751_p6 = scmp.lt.s32.totalorder %s75_s26, %s75_s26 }
  0x2f   :  { %p6747_p5 = scmp.ne.s32.totalorder %s75_s26, %s6746_s22  ;;  %p6752_p7 = scmp.lt.s32.totalorder %s6746_s22, %s6746_s22 }
  0x31   :  { %p6753_p8 = por %p6752_p7, %p6751_p6 }
  0x33   :  { %p6754_p9 = pnand %p6753_p8, %p6747_p5 }
  0x35   :  { %6757 = shalt.err (!%p6754_p9)
}
  0x36   :  { %s6769_s4 = smov 128   ;;  %s6770_s27 = smov 8  }
  0x37   :  { %80 = dma.hbm_to_vmem [thread:$0]  %s7721_s12, 16384, %s75_s26, [#allocation5], %s6769_s4, %s6769_s4, %s6770_s27  }
  0x38   :  { %6758 = dma.done.wait [#allocation3], 12288  }
  0x39   :  { %6759 = vsyncadd [#allocation3], 4294955008 }
  0x3a   :  { %6760 = dma.done.wait [#allocation5], 32768  }
  0x3b   :  { %6761 = vsyncadd [#allocation5], 4294934528  ;;  %s7733_s25 = sld [smem:[#allocation9_spill]]  ;;  %v146_v2 = vld [vmem:[#allocation2 + $0x8] sm:$0xff]  ;;  %v149_v3 = vld [vmem:[#allocation2 + $0x20] sm:$0xff]  ;;  %s7734_s0 = sld [smem:[#allocation11_spill]] }
  0x3c   :  { %v145_v4 = vld [vmem:[#allocation2] sm:$0xff]  ;;  %v6069_v5 = vpack.c.bf16 %v149_v3, %v146_v2  ;;  %v148_v6 = vld [vmem:[#allocation2 + $0x18] sm:$0xff]  ;;  %v155_v8 = vld [vmem:[#allocation2 + $0x50] sm:$0xff]  ;;  %vm6772_vm0 = vmmov 0   ;;  %vm509_vm1 = vcmask 261120   ;;  %s7735_s4 = sld [smem:[#allocation10_spill]] }
  0x3d   :  { %v152_v7 = vld [vmem:[#allocation2 + $0x38] sm:$0xff]  ;;  %v6071_v9 = vpack.c.bf16 %v148_v6, %v145_v4  ;;  %v147_v11 = vld [vmem:[#allocation2 + $0x10] sm:$0xff]  ;;  %v150_v12 = vld [vmem:[#allocation2 + $0x28] sm:$0xff]  ;;  %v6771_v4 = vmov 0.0   ;;  %vm666_vm2 = vcmask 64512   ;;  %s6773_s28 = smov 96  }
  0x3e   :  { %v6073_v10 = vpack.c.bf16 %v155_v8, %v152_v7  ;;  %v151_v13 = vld [vmem:[#allocation2 + $0x30] sm:$0xff]  ;;  %6070 = vmatprep.subr.bf16.mxu0 %v6069_v5  ;;  %v6101_v14 = vpack.c.bf16 %v150_v12, %v147_v11  ;;  %v154_v15 = vld [vmem:[#allocation2 + $0x48] sm:$0xff]  ;;  %v161_v17 = vld [vmem:[#allocation2 + $0x80] sm:$0xff]  ;;  %421 = vmatprep.mubr.f32.mxu0 %v6771_v4  ;;  %s6774_s2 = smov 64  }
  0x3f   :  { %v158_v16 = vld [vmem:[#allocation2 + $0x68] sm:$0xff]  ;;  %6072 = vmatpush1.bf16.msra.mxu0 %v6071_v9  ;;  %v6075_v18 = vpack.c.bf16 %v154_v15, %v151_v13  ;;  %v153_v19 = vld [vmem:[#allocation2 + $0x40] sm:$0xff]  ;;  %v156_v20 = vld [vmem:[#allocation2 + $0x58] sm:$0xff] }
  0x40   :  { %6074 = vmatprep.subr.bf16.mxu0 %v6073_v10  ;;  %6102 = vmatprep.subr.bf16.mxu1 %v6101_v14  ;;  %v6077_v21 = vpack.c.bf16 %v161_v17, %v158_v16  ;;  %v6105_v22 = vpack.c.bf16 %v156_v20, %v153_v19  ;;  %v157_v23 = vld [vmem:[#allocation2 + $0x60] sm:$0xff]  ;;  %v160_v24 = vld [vmem:[#allocation2 + $0x78] sm:$0xff]  ;;  %v167_v35 = vld [vmem:[#allocation2 + $0xb0] sm:$0xff] }
  0x41   :  { %v100_v0 = vld [vmem:[%s7733_s25] sm:$0xff]  ;;  %v101_v1 = vld [vmem:[%s7733_s25 + $0x8] sm:$0xff]  ;;  %6104 = vmatpush3.bf16.msra.mxu1 %v6101_v14  ;;  %v6079_v25 = vpack.c.bf16 %v160_v24, %v157_v23  ;;  %v164_v34 = vld [vmem:[#allocation2 + $0x98] sm:$0xff] }
  0x42   :  { %104 = vadd.xlane.f32.xlu0 %v100_v0  ;;  %6106 = vmatprep.subr.bf16.mxu1 %v6105_v22  ;;  %v159_v36 = vld [vmem:[#allocation2 + $0x70] sm:$0xff]  ;;  %v6081_v37 = vpack.c.bf16 %v167_v35, %v164_v34  ;;  %v162_v38 = vld [vmem:[#allocation2 + $0x88] sm:$0xff]  ;;  %v173_v44 = vld [vmem:[#allocation2 + $0xe0] sm:$0xff] }
  0x43   :  { %6076 = vmatpush1.bf16.msra.mxu0 %v6075_v18  ;;  %v163_v39 = vld [vmem:[#allocation2 + $0x90] sm:$0xff]  ;;  %v166_v40 = vld [vmem:[#allocation2 + $0xa8] sm:$0xff]  ;;  %v6109_v41 = vpack.c.bf16 %v162_v38, %v159_v36  ;;  %v165_v45 = vld [vmem:[#allocation2 + $0xa0] sm:$0xff] }
  0x44   :  { %6078 = vmatprep.subr.bf16.mxu0 %v6077_v21  ;;  %v6083_v42 = vpack.c.bf16 %v166_v40, %v163_v39  ;;  %v170_v43 = vld [vmem:[#allocation2 + $0xc8] sm:$0xff]  ;;  %v168_v47 = vld [vmem:[#allocation2 + $0xb8] sm:$0xff]  ;;  %v169_v48 = vld [vmem:[#allocation2 + $0xc0] sm:$0xff] }
  0x45   :  { %6108 = vmatpush3.bf16.msra.mxu1 %v6105_v22  ;;  %v6085_v46 = vpack.c.bf16 %v173_v44, %v170_v43  ;;  %v172_v49 = vld [vmem:[#allocation2 + $0xd8] sm:$0xff]  ;;  %v6113_v50 = vpack.c.bf16 %v168_v47, %v165_v45  ;;  %v179_v53 = vld [vmem:[#allocation2 + $0x110] sm:$0xff]  ;;  %v174_v56 = vld [vmem:[#allocation2 + $0xe8] sm:$0xff] }
  0x46   :  { %106 = vadd.xlane.f32.xlu0 %v101_v1  ;;  %6110 = vmatprep.subr.bf16.mxu1 %v6109_v41  ;;  %v6087_v51 = vpack.c.bf16 %v172_v49, %v169_v48  ;;  %v176_v52 = vld [vmem:[#allocation2 + $0xf8] sm:$0xff]  ;;  %v171_v54 = vld [vmem:[#allocation2 + $0xd0] sm:$0xff]  ;;  %v178_v58 = vld [vmem:[#allocation2 + $0x108] sm:$0xff] }
  0x47   :  { %6080 = vmatpush1.bf16.msra.mxu0 %v6079_v25  ;;  %v6089_v55 = vpack.c.bf16 %v179_v53, %v176_v52  ;;  %v175_v57 = vld [vmem:[#allocation2 + $0xf0] sm:$0xff]  ;;  %v6117_v59 = vpack.c.bf16 %v174_v56, %v171_v54  ;;  %v182_v61 = vld [vmem:[#allocation2 + $0x128] sm:$0xff]  ;;  %v185_v62 = vld [vmem:[#allocation2 + $0x140] sm:$0xff] }
  0x48   :  { %6082 = vmatprep.subr.bf16.mxu0 %v6081_v37  ;;  %v6091_v60 = vpack.c.bf16 %v178_v58, %v175_v57  ;;  %v177_v63 = vld [vmem:[#allocation2 + $0x100] sm:$0xff]  ;;  %v184_v3 = vld [vmem:[#allocation2 + $0x138] sm:$0xff]  ;;  %v191_v8 = vld [vmem:[#allocation2 + $0x170] sm:$0xff] }
  0x49   :  { %6112 = vmatpush3.bf16.msra.mxu1 %v6109_v41  ;;  %v181_v2 = vld [vmem:[#allocation2 + $0x120] sm:$0xff]  ;;  %v188_v7 = vld [vmem:[#allocation2 + $0x158] sm:$0xff]  ;;  %v183_v9 = vld [vmem:[#allocation2 + $0x130] sm:$0xff] }
  0x4a   :  { %6114 = vmatprep.subr.bf16.mxu1 %v6113_v50  ;;  %v6095_v6 = vpack.c.bf16 %v184_v3, %v181_v2  ;;  %v6097_v10 = vpack.c.bf16 %v191_v8, %v188_v7  ;;  %v186_v11 = vld [vmem:[#allocation2 + $0x148] sm:$0xff]  ;;  %v187_v12 = vld [vmem:[#allocation2 + $0x150] sm:$0xff]  ;;  %v189_v16 = vld [vmem:[#allocation2 + $0x160] sm:$0xff] }
  0x4b   :  { %6084 = vmatpush1.bf16.msra.mxu0 %v6083_v42  ;;  %v190_v13 = vld [vmem:[#allocation2 + $0x168] sm:$0xff]  ;;  %v6125_v14 = vpack.c.bf16 %v186_v11, %v183_v9  ;;  %v192_v17 = vld [vmem:[#allocation2 + $0x178] sm:$0xff]  ;;  %v193_v38 = vld [vmem:[%s7714_s5] sm:$0x7] }
  0x4c   :  { %6086 = vmatprep.subr.bf16.mxu0 %v6085_v46  ;;  %v6099_v15 = vpack.c.bf16 %v190_v13, %v187_v12  ;;  %v6129_v18 = vpack.c.bf16 %v192_v17, %v189_v16  ;;  %v6995_v57 = vld [vmem:[%s7735_s4] sm:$0xff] }
  0x4d   :  { %6116 = vmatpush3.bf16.msra.mxu1 %v6113_v50 }
  0x4e   :  { %6118 = vmatprep.subr.bf16.mxu1 %v6117_v59 }
  0x4f   :  { %6088 = vmatpush1.bf16.msra.mxu0 %v6087_v51 }
  0x50   :  { %6090 = vmatprep.subr.bf16.mxu0 %v6089_v55 }
  0x51   :  { %6120 = vmatpush3.bf16.msra.mxu1 %v6117_v59 }
  0x53   :  { %6092 = vmatpush1.bf16.msra.mxu0 %v6091_v60 }
  0xcf   :  { %v105_v26 = vpop.xlane.xlu0 %104 }
  0xd0   :  { %v109_v27 = vmul.f32 0.0078125, %v105_v26  ;;  %v5295_v26 = vld [vmem:[%s7734_s0] ss:$0 sm:$0xff] }
  0xd2   :  { %v6913_v28 = vsub.f32 %v100_v0, %v109_v27  ;;  %v6093_v0 = vpack.c.bf16 %v185_v62, %v182_v61  ;;  %v7001_v62 = vld [vmem:[%s7735_s4 + $0x8] sm:$0xff] }
  0xd3   :  { %v107_v29 = vpop.xlane.xlu0 %106 }
  0xd4   :  { %v110_v30 = vmul.f32 0.0078125, %v107_v29  ;;  %v113_v31 = vmul.f32 %v6913_v28, %v6913_v28  ;;  %6094 = vmatprep.subr.bf16.mxu0 %v6093_v0  ;;  %v5296_v29 = vld [vmem:[%s7712_s3] ss:$0 sm:$0xff] }
  0xd5   :  { %6096 = vmatpush1.bf16.msra.mxu0 %v6095_v6 }
  0xd6   :  { %v6917_v32 = vsub.f32 %v101_v1, %v110_v30  ;;  %115 = vadd.xlane.f32.xlu1 %v113_v31  ;;  %v180_v1 = vld [vmem:[#allocation2 + $0x118] sm:$0xff]  ;;  %6098 = vmatprep.subr.bf16.mxu0 %v6097_v10 }
  0xd7   :  { %v6121_v5 = vpack.c.bf16 %v180_v1, %v177_v63 }
  0xd8   :  { %v114_v33 = vmul.f32 %v6917_v32, %v6917_v32 }
  0xd9   :  { %6122 = vmatprep.subr.bf16.mxu1 %v6121_v5  ;;  %6100 = vmatpush1.bf16.msra.mxu0 %v6099_v15 }
  0xda   :  { %117 = vadd.xlane.f32.xlu1 %v114_v33  ;;  %6124 = vmatpush3.bf16.msra.mxu1 %v6121_v5 }
  0xdb   :  { %6126 = vmatprep.subr.bf16.mxu1 %v6125_v14  ;;  %5756 = vmatprep.subr.mxu0 %v6771_v4 }
  0xde   :  { %6128 = vmatpush3.bf16.msra.mxu1 %v6125_v14 }
  0xdf   :  { %6130 = vmatprep.subr.bf16.mxu1 %v6129_v18 }
  0xe2   :  { %6132 = vmatpush3.bf16.msra.mxu1 %v6129_v18 }
  0xe3   :  { %5751 = vmatprep.subr.mxu1 %v6771_v4 }
 0x163   :  { %v116_v19 = vpop.xlane.xlu1 %115 }
 0x164   :  { %v119_v20 = vmul.f32 0.0078125, %v116_v19 }
 0x166   :  { %v121_v21 = vadd.f32 1e-12, %v119_v20 }
 0x167   :  { %v118_v22 = vpop.xlane.xlu1 %117 }
 0x168   :  { %6574 = vrsqrt.f32 %v121_v21  ;;  %v120_v23 = vmul.f32 0.0078125, %v118_v22 }
 0x16a   :  { %v122_v24 = vadd.f32 1e-12, %v120_v23 }
 0x16c   :  { %6576 = vrsqrt.f32 %v122_v24 }
 0x172   :  { %v6575_v25 = vpop.eup %6574 }
 0x173   :  { %v125_v27 = vmul.f32 %v6575_v25, %v6913_v28  ;;  %v342_v28 = vlaneseq }
 0x175   :  { %v133_v30 = vmul.f32 %v5295_v26, %v125_v27 }
 0x176   :  { %v6577_v31 = vpop.eup %6576 }
 0x177   :  { %v6931_v33 = vadd.f32 %v5296_v29, %v133_v30  ;;  %v126_v34 = vmul.f32 %v6577_v31, %v6917_v32  ;;  %v6945_v32 = vshrl.u32 %v342_v28, 7 }
 0x179   :  { %422 = vmatmul.mubr.f32.vlgmr.msra.gmra.mrb[0].mxu0 %v6931_v33  ;;  %5748 = vmatprep.mubr.f32.mxu1 %v6931_v33  ;;  %v134_v35 = vmul.f32 %v5295_v26, %v126_v34  ;;  %v6948_v37 = vsub.s32 1, %v6945_v32  ;;  %v6954_v39 = vsub.s32 0, %v6945_v32  ;;  %v6958_v41 = vsub.s32 2, %v6945_v32 }
 0x17a   :  { %427 = vmatprep.mubr.f32.mxu0 %v6771_v4 }
 0x17b   :  { %v6937_v36 = vadd.f32 %v5296_v29, %v134_v35  ;;  %v349_v40 = vrot.slane %v193_v38, %v6948_v37  ;;  %v345_v43 = vrot.slane %v193_v38, %v6954_v39  ;;  %v353_v46 = vrot.slane %v193_v38, %v6958_v41 }
 0x17d   :  { %428 = vmatmul.mubr.f32.gmra.mrb[2].mxu0 %v6937_v36  ;;  %5749 = vmatmul.mubr.f32.vlgmr.msra.gmra.mrb[0].mxu1 %v6937_v36 }
 0x17e   :  { %5753 = vmatprep.mubr.msk.f32.mxu1 %vm6772_vm0, %v6771_v4  ;;  %5758 = vmatprep.mubr.msk.f32.mxu0 %vm6772_vm0, %v6771_v4 }
 0x24c   :  { %v423_v42 = vpop.f32.mrb[0].mxu0 }
 0x24d   :  { %v425_v44 = vpop.f32.mrb[1].mxu0  ;;  %v6966_v49 = vadd.f32 %v423_v42, %v345_v43 }
 0x24e   :  { %v6961_v45 = vadd.f32 %v425_v44, %v349_v40 }
 0x250   :  { %v429_v47 = vpop.f32.mrb[2].mxu0  ;;  %v5750_v48 = vpop.f32.mrb[0].mxu1  ;;  %5752 = vmatpush3.xpose.msk.msra.mxu1 %vm509_vm1, %v6961_v45 }
 0x251   :  { %v431_v50 = vpop.f32.mrb[3].mxu0  ;;  %v500_v51 = vpop.f32.mrb[1].mxu1  ;;  %5761 = vmatprep.subr.mxu1 %v6771_v4  ;;  %v6978_v54 = vadd.f32 %v429_v47, %v345_v43  ;;  %v6983_v55 = vadd.f32 %v5750_v48, %v353_v46 }
 0x252   :  { %v6969_v52 = vadd.f32 %v431_v50, %v349_v40  ;;  %v6971_v53 = vadd.f32 %v500_v51, %v353_v46 }
 0x253   :  { %5754 = vmatmul.mubr.msk.f32.vlgmr.msra.gmra.mrb[2].mxu1 %vm509_vm1, %v6966_v49 }
 0x254   :  { %5757 = vmatpush3.xpose.msk.msra.mxu0 %vm509_vm1, %v6969_v52  ;;  %5762 = vmatpush3.msra.mxu1 %v6971_v53 }
 0x255   :  { %5766 = vmatprep.subr.mxu0 %v6771_v4  ;;  %5763 = vmatprep.mubr.msk.f32.mxu1 %vm6772_vm0, %v6771_v4 }
 0x256   :  { %5771 = vmatprep.subr.mxu1 %v6771_v4 }
 0x257   :  { %5759 = vmatmul.mubr.msk.f32.vlgmr.msra.gmra.mrb[4].mxu0 %vm509_vm1, %v6978_v54 }
 0x258   :  { %5767 = vmatpush3.msra.mxu0 %v6983_v55  ;;  %5768 = vmatprep.mubr.msk.f32.mxu0 %vm6772_vm0, %v6771_v4 }
 0x259   :  { %5776 = vmatprep.subr.mxu0 %v6771_v4 }
 0x326   :  { %v582_v56 = vpop.f32.mrb[2].mxu1 }
 0x327   :  { %v662_v58 = vmul.f32 0.17677669, %v582_v56  ;;  %v5755_v59 = vpop.f32.mrb[3].mxu1 }
 0x329   :  { %v664_v60 = vadd.f32 %v662_v58, %v6995_v57 }
 0x32a   :  { %v658_v61 = vpop.f32.mrb[4].mxu0 }
 0x32b   :  { %v663_v63 = vmul.f32 0.17677669, %v658_v61  ;;  %v5760_v0 = vpop.f32.mrb[5].mxu0  ;;  %v667_v1 = vsel %vm666_vm2, %v664_v60, -inf }
 0x32c   :  { %668 = vmax.xlane.f32.xlu0 %v667_v1  ;;  %v198_v0 = vld [vmem:[%s7715_s6 + $0x20] sm:$0xff]  ;;  %v199_v1 = vld [vmem:[%s7715_s6 + $0x28] sm:$0xff] }
 0x32d   :  { %v665_v2 = vadd.f32 %v663_v63, %v7001_v62 }
 0x32f   :  { %v670_v3 = vsel %vm666_vm2, %v665_v2, -inf }
 0x330   :  { %671 = vmax.xlane.f32.xlu1 %v670_v3 }
 0x341   :  { %915 = vrot.lane.b32.xlu1 %v6969_v52, %s6773_s28 }
 0x345   :  { %835 = vrot.lane.b32.xlu1 %v6966_v49, %s6773_s28 }
 0x3b9   :  { %v669_v5 = vpop.xlane.xlu0 %668 }
 0x3ba   :  { %v673_v6 = vsub.f32 %v664_v60, %v669_v5  ;;  %v194_v5 = vld [vmem:[%s7715_s6] sm:$0xff] }
 0x3bc   :  { %v675_v7 = vmul.f32 1.442695, %v673_v6  ;;  %v195_v6 = vld [vmem:[%s7715_s6 + $0x8] sm:$0xff] }
 0x3bd   :  { %v672_v8 = vpop.xlane.xlu1 %671 }
 0x3be   :  { %6578 = vpow2.f32 %v675_v7  ;;  %v674_v9 = vsub.f32 %v665_v2, %v672_v8  ;;  %v6133_v2 = vpack.c.bf16 %v199_v1, %v198_v0  ;;  %v6141_v8 = vpack.c.bf16 %v195_v6, %v194_v5 }
 0x3c0   :  { %v677_v10 = vmul.f32 1.442695, %v674_v9 }
 0x3c1   :  { %v916_v15 = vpop.permute.xlu1 %915 }
 0x3c2   :  { %6580 = vpow2.f32 %v677_v10  ;;  %v196_v10 = vld [vmem:[%s7715_s6 + $0x10] sm:$0xff] }
 0x3c5   :  { %v836_v16 = vpop.permute.xlu1 %835 }
 0x3c8   :  { %v6579_v11 = vpop.eup %6578 }
 0x3c9   :  { %v679_v12 = vsel %vm666_vm2, %v6579_v11, 0.0 }
 0x3ca   :  { %680 = vadd.xlane.f32.xlu0 %v679_v12 }
 0x3cc   :  { %v6581_v13 = vpop.eup %6580 }
 0x3cd   :  { %v682_v14 = vsel %vm666_vm2, %v6581_v13, 0.0 }
 0x3ce   :  { %683 = vadd.xlane.f32.xlu1 %v682_v14 }
 0x3df   :  { %913 = vrot.lane.b32.xlu1 %v6978_v54, %s6773_s28 }
 0x3e0   :  { %837 = vrot.lane.b32.xlu0 %v6961_v45, %s6773_s28 }
 0x457   :  { %v681_v17 = vpop.xlane.xlu0 %680 }
 0x458   :  { %6582 = vrcp.f32 %v681_v17 }
 0x45b   :  { %v684_v18 = vpop.xlane.xlu1 %683  ;;  %v838_v21 = vpop.permute.xlu0 %837 }
 0x45c   :  { %6584 = vrcp.f32 %v684_v18 }
 0x45f   :  { %v914_v24 = vpop.permute.xlu1 %913 }
 0x462   :  { %v6583_v19 = vpop.eup %6582 }
 0x463   :  { %v687_v20 = vmul.f32 %v6583_v19, %v6579_v11  ;;  %v197_v11 = vld [vmem:[%s7715_s6 + $0x18] sm:$0xff] }
 0x464   :  { %v6145_v14 = vpack.c.bf16 %v197_v11, %v196_v10 }
 0x465   :  { %5764 = vmatmul.mubr.msk.f32.vlgmr.msra.gmra.mrb[4].mxu1 %vm666_vm2, %v687_v20 }
 0x466   :  { %v6585_v22 = vpop.eup %6584  ;;  %5772 = vmatpush3.xpose.msk.msra.mxu1 %vm509_vm1, %v838_v21  ;;  %5773 = vmatprep.mubr.msk.f32.mxu1 %vm6772_vm0, %v6771_v4 }
 0x467   :  { %v688_v23 = vmul.f32 %v6585_v22, %v6581_v13  ;;  %5781 = vmatprep.subr.mxu1 %v6771_v4 }
 0x469   :  { %5769 = vmatmul.mubr.msk.f32.vlgmr.msra.gmra.mrb[6].mxu0 %vm666_vm2, %v688_v23  ;;  %5774 = vmatmul.mubr.msk.f32.vlgmr.msra.gmra.mrb[6].mxu1 %vm509_vm1, %v836_v16  ;;  %v201_v16 = vld [vmem:[%s7715_s6 + $0x38] sm:$0xff] }
 0x46a   :  { %5777 = vmatpush3.xpose.msk.msra.mxu0 %vm509_vm1, %v916_v15  ;;  %5778 = vmatprep.mubr.msk.f32.mxu0 %vm6772_vm0, %v6771_v4  ;;  %v200_v15 = vld [vmem:[%s7715_s6 + $0x30] sm:$0xff] }
 0x46b   :  { %5786 = vmatprep.subr.mxu0 %v6771_v4  ;;  %5783 = vmatprep.mubr.msk.f32.mxu1 %vm6772_vm0, %v6771_v4  ;;  %v6137_v19 = vpack.c.bf16 %v201_v16, %v200_v15 }
 0x46d   :  { %5779 = vmatmul.mubr.msk.f32.vlgmr.msra.gmra.mrb[8].mxu0 %vm509_vm1, %v914_v24 }
 0x46e   :  { %5788 = vmatprep.mubr.msk.f32.mxu0 %vm6772_vm0, %v6771_v4 }
 0x538   :  { %v7032_v25 = vpop.f32.mrb[4].mxu1 }
 0x539   :  { %v5765_v26 = vpop.f32.mrb[5].mxu1 }
 0x53c   :  { %v7034_v27 = vpop.f32.mrb[6].mxu0  ;;  %v909_v29 = vpop.f32.mrb[6].mxu1 }
 0x53d   :  { %v991_v30 = vmul.f32 0.17677669, %v909_v29  ;;  %v5770_v31 = vpop.f32.mrb[7].mxu0  ;;  %v5775_v34 = vpop.f32.mrb[7].mxu1 }
 0x53f   :  { %v993_v35 = vadd.f32 %v991_v30, %v6995_v57 }
 0x540   :  { %v987_v28 = vpop.f32.mrb[8].mxu0 }
 0x541   :  { %v992_v38 = vmul.f32 0.17677669, %v987_v28  ;;  %v5780_v40 = vpop.f32.mrb[9].mxu0  ;;  %v995_v42 = vsel %vm666_vm2, %v993_v35, -inf }
 0x542   :  { %996 = vmax.xlane.f32.xlu0 %v995_v42 }
 0x543   :  { %v994_v43 = vadd.f32 %v992_v38, %v7001_v62 }
 0x545   :  { %v998_v44 = vsel %vm666_vm2, %v994_v43, -inf }
 0x546   :  { %999 = vmax.xlane.f32.xlu1 %v998_v44 }
 0x557   :  { %1095 = vrot.lane.b32.xlu1 %v6983_v55, %s6773_s28 }
 0x55b   :  { %1335 = vrot.lane.b32.xlu1 %v6961_v45, %s6774_s2 }
 0x55f   :  { %1333 = vrot.lane.b32.xlu1 %v6966_v49, %s6774_s2 }
 0x563   :  { %1411 = vrot.lane.b32.xlu1 %v6978_v54, %s6774_s2 }
 0x5cf   :  { %v997_v46 = vpop.xlane.xlu0 %996 }
 0x5d0   :  { %v1001_v47 = vsub.f32 %v993_v35, %v997_v46 }
 0x5d2   :  { %v1003_v48 = vmul.f32 1.442695, %v1001_v47 }
 0x5d3   :  { %v1000_v50 = vpop.xlane.xlu1 %999 }
 0x5d4   :  { %6586 = vpow2.f32 %v1003_v48  ;;  %v1002_v51 = vsub.f32 %v994_v43, %v1000_v50 }
 0x5d6   :  { %v1005_v56 = vmul.f32 1.442695, %v1002_v51 }
 0x5d7   :  { %v1096_v58 = vpop.permute.xlu1 %1095 }
 0x5d8   :  { %6588 = vpow2.f32 %v1005_v56  ;;  %5787 = vmatpush3.msra.mxu0 %v1096_v58 }
 0x5d9   :  { %6134 = vmatprep.subr.bf16.mxu0 %v6133_v2 }
 0x5db   :  { %v1336_v20 = vpop.permute.xlu1 %1335 }
 0x5de   :  { %v6587_v59 = vpop.eup %6586 }
 0x5df   :  { %v1007_v60 = vsel %vm666_vm2, %v6587_v59, 0.0 }
 0x5e0   :  { %1008 = vadd.xlane.f32.xlu0 %v1007_v60 }
 0x5e2   :  { %v6589_v61 = vpop.eup %6588 }
 0x5e3   :  { %v1010_v63 = vsel %vm666_vm2, %v6589_v61, 0.0 }
 0x5e4   :  { %1011 = vadd.xlane.f32.xlu0 %v1010_v63 }
 0x5fa   :  { %1018 = vrot.lane.b32.xlu0 %v6971_v53, %s6773_s28 }
 0x5fe   :  { %1413 = vrot.lane.b32.xlu0 %v6969_v52, %s6774_s2 }
 0x66d   :  { %v1009_v3 = vpop.xlane.xlu0 %1008 }
 0x66e   :  { %6590 = vrcp.f32 %v1009_v3 }
 0x671   :  { %v1012_v7 = vpop.xlane.xlu0 %1011 }
 0x672   :  { %6592 = vrcp.f32 %v1012_v7 }
 0x675   :  { %v1019_v9 = vpop.permute.xlu0 %1018 }
 0x676   :  { %5782 = vmatpush3.msra.mxu1 %v1019_v9 }
 0x677   :  { %6142 = vmatprep.subr.bf16.mxu1 %v6141_v8 }
 0x678   :  { %v6591_v12 = vpop.eup %6590 }
 0x679   :  { %v1015_v13 = vmul.f32 %v6591_v12, %v6587_v59  ;;  %v1414_v26 = vpop.permute.xlu0 %1413  ;;  %v204_v12 = vld [vmem:[%s7715_s6 + $0x50] sm:$0xff] }
 0x67b   :  { %5784 = vmatmul.mubr.msk.f32.vlgmr.msra.gmra.mrb[8].mxu1 %vm666_vm2, %v1015_v13  ;;  %v205_v13 = vld [vmem:[%s7715_s6 + $0x58] sm:$0xff] }
 0x67c   :  { %v6593_v17 = vpop.eup %6592  ;;  %6144 = vmatpush3.bf16.msra.mxu1 %v6141_v8  ;;  %5810 = vmatprep.mubr.msk.f32.mxu1 %vm509_vm1, %v7032_v25  ;;  %v1334_v25 = vpop.permute.xlu1 %1333 }
 0x67d   :  { %v1016_v18 = vmul.f32 %v6593_v17, %v6589_v61  ;;  %6146 = vmatprep.subr.bf16.mxu1 %v6145_v14 }
 0x67f   :  { %5789 = vmatmul.mubr.msk.f32.vlgmr.msra.gmra.mrb[10].mxu0 %vm666_vm2, %v1016_v18 }
 0x680   :  { %6148 = vmatpush3.bf16.msra.mxu1 %v6145_v14  ;;  %6136 = vmatpush3.bf16.msra.mxu0 %v6133_v2  ;;  %v6153_v14 = vpack.c.bf16 %v205_v13, %v204_v12  ;;  %v216_v12 = vld [vmem:[#allocation4 + $0x28] sm:$0xff]  ;;  %v214_v13 = vld [vmem:[#allocation4 + $0x18] sm:$0xff] }
 0x681   :  { %6138 = vmatprep.subr.bf16.mxu0 %v6137_v19 }
 0x683   :  { %5811 = vmatmul.mubr.msk.f32.vlgmr.msra.gmra.mrb[10].mxu1 %vm509_vm1, %v7034_v27  ;;  %v1412_v27 = vpop.permute.xlu1 %1411 }
 0x684   :  { %6140 = vmatpush3.bf16.msra.mxu0 %v6137_v19 }
 0x685   :  { %5813 = vmatprep.subr.mxu0 %v6771_v4 }
 0x74e   :  { %v1090_v21 = vpop.f32.mrb[8].mxu1 }
 0x74f   :  { %v5785_v22 = vpop.f32.mrb[9].mxu1  ;;  %5799 = vmatprep.mubr.msk.f32.mxu0 %vm509_vm1, %v1090_v21 }
 0x752   :  { %v1167_v23 = vpop.f32.mrb[10].mxu0 }
 0x753   :  { %v5790_v24 = vpop.f32.mrb[11].mxu0  ;;  %5800 = vmatmul.mubr.msk.f32.vlgmr.msra.gmra.mrb[12].mxu0 %vm509_vm1, %v1167_v23 }
 0x754   :  { %5814 = vmatpush3.xpose.msk.msra.mxu0 %vm509_vm1, %v1336_v20  ;;  %5815 = vmatprep.mubr.msk.f32.mxu0 %vm6772_vm0, %v6771_v4 }
 0x755   :  { %5818 = vmatprep.subr.mxu0 %v6771_v4 }
 0x757   :  { %5816 = vmatmul.mubr.msk.f32.vlgmr.msra.gmra.mrb[14].mxu0 %vm509_vm1, %v1334_v25 }
 0x758   :  { %5819 = vmatpush3.xpose.msk.msra.mxu0 %vm509_vm1, %v1414_v26  ;;  %5820 = vmatprep.mubr.msk.f32.mxu0 %vm6772_vm0, %v6771_v4 }
 0x759   :  { %5823 = vmatprep.subr.mxu0 %v6771_v4 }
 0x75b   :  { %5821 = vmatmul.mubr.msk.f32.vlgmr.msra.gmra.mrb[16].mxu0 %vm509_vm1, %v1412_v27 }
 0x75c   :  { %5825 = vmatprep.mubr.msk.f32.mxu0 %vm6772_vm0, %v6771_v4 }
 0x826   :  { %v7099_v29 = vpop.f32.mrb[12].mxu0 }
 0x827   :  { %v7101_v30 = vpop.f32.mrb[13].mxu0 }
 0x82a   :  { %v1407_v31 = vpop.f32.mrb[14].mxu0 }
 0x82b   :  { %v1489_v34 = vmul.f32 0.17677669, %v1407_v31  ;;  %v5817_v35 = vpop.f32.mrb[15].mxu0 }
 0x82d   :  { %v1491_v28 = vadd.f32 %v1489_v34, %v6995_v57 }
 0x82e   :  { %v1485_v38 = vpop.f32.mrb[16].mxu0 }
 0x82f   :  { %v1490_v40 = vmul.f32 0.17677669, %v1485_v38  ;;  %v5822_v42 = vpop.f32.mrb[17].mxu0  ;;  %v1493_v43 = vsel %vm666_vm2, %v1491_v28, -inf }
 0x830   :  { %1494 = vmax.xlane.f32.xlu0 %v1493_v43 }
 0x831   :  { %v1492_v44 = vadd.f32 %v1490_v40, %v7001_v62 }
 0x833   :  { %v1496_v46 = vsel %vm666_vm2, %v1492_v44, -inf }
 0x834   :  { %1497 = vmax.xlane.f32.xlu1 %v1496_v46 }
 0x845   :  { %1591 = vrot.lane.b32.xlu1 %v6983_v55, %s6774_s2 }
 0x849   :  { %1752 = vrot.lane.b32.xlu1 %v6961_v45, %s6764_s23 }
 0x84d   :  { %1750 = vrot.lane.b32.xlu1 %v6966_v49, %s6764_s23  ;;  %v202_v49 = vld [vmem:[%s7715_s6 + $0x40] sm:$0xff] }
 0x851   :  { %1828 = vrot.lane.b32.xlu1 %v6978_v54, %s6764_s23  ;;  %v203_v54 = vld [vmem:[%s7715_s6 + $0x48] sm:$0xff] }
 0x852   :  { %v6149_v63 = vpack.c.bf16 %v203_v54, %v202_v49 }
 0x854   :  { %6150 = vmatprep.subr.bf16.mxu1 %v6149_v63 }
 0x855   :  { %6152 = vmatpush3.bf16.msra.mxu1 %v6149_v63 }
 0x856   :  { %6154 = vmatprep.subr.bf16.mxu1 %v6153_v14 }
 0x859   :  { %6156 = vmatpush3.bf16.msra.mxu1 %v6153_v14 }
 0x85a   :  { %5854 = vmatprep.subr.mxu1 %v6771_v4 }
 0x8bd   :  { %v1495_v47 = vpop.xlane.xlu0 %1494 }
 0x8be   :  { %v1499_v48 = vsub.f32 %v1491_v28, %v1495_v47  ;;  %v206_v47 = vld [vmem:[%s7715_s6 + $0x60] sm:$0xff] }
 0x8c0   :  { %v1501_v50 = vmul.f32 1.442695, %v1499_v48  ;;  %v207_v48 = vld [vmem:[%s7715_s6 + $0x68] sm:$0xff] }
 0x8c1   :  { %v1498_v51 = vpop.xlane.xlu1 %1497 }
 0x8c2   :  { %6594 = vpow2.f32 %v1501_v50  ;;  %v1500_v56 = vsub.f32 %v1492_v44, %v1498_v51  ;;  %v6157_v51 = vpack.c.bf16 %v207_v48, %v206_v47 }
 0x8c4   :  { %v1503_v58 = vmul.f32 1.442695, %v1500_v56 }
 0x8c5   :  { %v1592_v3 = vpop.permute.xlu1 %1591 }
 0x8c6   :  { %6596 = vpow2.f32 %v1503_v58 }
 0x8c9   :  { %v1753_v7 = vpop.permute.xlu1 %1752 }
 0x8cc   :  { %v6595_v59 = vpop.eup %6594 }
 0x8cd   :  { %v1505_v60 = vsel %vm666_vm2, %v6595_v59, 0.0  ;;  %v1751_v9 = vpop.permute.xlu1 %1750 }
 0x8ce   :  { %1506 = vadd.xlane.f32.xlu0 %v1505_v60 }
 0x8d0   :  { %v6597_v61 = vpop.eup %6596 }
 0x8d1   :  { %v1508_v45 = vsel %vm666_vm2, %v6597_v61, 0.0  ;;  %v1829_v11 = vpop.permute.xlu1 %1828 }
 0x8d2   :  { %1509 = vadd.xlane.f32.xlu0 %v1508_v45  ;;  %v209_v45 = vld [vmem:[%s7715_s6 + $0x78] sm:$0xff] }
 0x8e8   :  { %1515 = vrot.lane.b32.xlu0 %v6971_v53, %s6774_s2 }
 0x8ec   :  { %1830 = vrot.lane.b32.xlu0 %v6969_v52, %s6764_s23 }
 0x95b   :  { %v1507_v0 = vpop.xlane.xlu0 %1506 }
 0x95c   :  { %6598 = vrcp.f32 %v1507_v0 }
 0x95f   :  { %v1510_v1 = vpop.xlane.xlu0 %1509 }
 0x960   :  { %6600 = vrcp.f32 %v1510_v1 }
 0x963   :  { %v1516_v2 = vpop.permute.xlu0 %1515 }
 0x964   :  { %5824 = vmatpush3.msra.mxu0 %v1516_v2  ;;  %v5329_v2 = vld [vmem:[%s7716_s7] ss:$0 sm:$0xff] }
 0x965   :  { %5828 = vmatprep.subr.mxu0 %v6771_v4 }
 0x966   :  { %v6599_v52 = vpop.eup %6598 }
 0x967   :  { %v1513_v5 = vmul.f32 %v6599_v52, %v6595_v59  ;;  %v1831_v10 = vpop.permute.xlu0 %1830 }
 0x969   :  { %5826 = vmatmul.mubr.msk.f32.vlgmr.msra.gmra.mrb[18].mxu0 %vm666_vm2, %v1513_v5 }
 0x96a   :  { %v6601_v6 = vpop.eup %6600  ;;  %5829 = vmatpush3.msra.mxu0 %v1592_v3  ;;  %5830 = vmatprep.mubr.msk.f32.mxu0 %vm6772_vm0, %v6771_v4 }
 0x96b   :  { %v1514_v8 = vmul.f32 %v6601_v6, %v6597_v61  ;;  %5844 = vmatprep.subr.mxu0 %v6771_v4  ;;  %v208_v61 = vld [vmem:[%s7715_s6 + $0x70] sm:$0xff] }
 0x96c   :  { %v6161_v49 = vpack.c.bf16 %v209_v45, %v208_v61  ;;  %v236_v45 = vld [vmem:[#allocation4 + $0xc8] sm:$0xff] }
 0x96d   :  { %5831 = vmatmul.mubr.msk.f32.vlgmr.msra.gmra.mrb[20].mxu0 %vm666_vm2, %v1514_v8 }
 0x96e   :  { %5846 = vmatprep.mubr.msk.f32.mxu0 %vm6772_vm0, %v6771_v4 }
 0x971   :  { %5845 = vmatpush3.xpose.msk.msra.mxu0 %vm509_vm1, %v1753_v7 }
 0x972   :  { %5849 = vmatprep.subr.mxu0 %v6771_v4 }
 0x974   :  { %5847 = vmatmul.mubr.msk.f32.vlgmr.msra.gmra.mrb[22].mxu0 %vm509_vm1, %v1751_v9 }
 0x975   :  { %5850 = vmatpush3.xpose.msk.msra.mxu0 %vm509_vm1, %v1831_v10  ;;  %5851 = vmatprep.mubr.msk.f32.mxu0 %vm6772_vm0, %v6771_v4 }
 0x976   :  { %5859 = vmatprep.subr.mxu0 %v6771_v4 }
 0x978   :  { %5852 = vmatmul.mubr.msk.f32.vlgmr.msra.gmra.mrb[24].mxu0 %vm509_vm1, %v1829_v11  ;;  %v212_v11 = vld [vmem:[#allocation4 + $0x8] sm:$0xff] }
 0x979   :  { %5861 = vmatprep.mubr.msk.f32.mxu0 %vm6772_vm0, %v6771_v4  ;;  %v6165_v14 = vpack.c.bf16 %v216_v12, %v212_v11  ;;  %v250_v12 = vld [vmem:[#allocation4 + $0x138] sm:$0xff] }
 0xa3c   :  { %v1587_v15 = vpop.f32.mrb[18].mxu0 }
 0xa3d   :  { %v5827_v16 = vpop.f32.mrb[19].mxu0  ;;  %5841 = vmatprep.mubr.msk.f32.mxu1 %vm509_vm1, %v1587_v15  ;;  %v218_v15 = vld [vmem:[#allocation4 + $0x38] sm:$0xff] }
 0xa3e   :  { %v211_v16 = vld [vmem:[#allocation4] sm:$0xff] }
 0xa40   :  { %v1663_v17 = vpop.f32.mrb[20].mxu0 }
 0xa41   :  { %v5832_v18 = vpop.f32.mrb[21].mxu0  ;;  %5842 = vmatmul.mubr.msk.f32.vlgmr.msra.gmra.mrb[10].mxu1 %vm509_vm1, %v1663_v17  ;;  %v215_v17 = vld [vmem:[#allocation4 + $0x20] sm:$0xff] }
 0xa42   :  { %5856 = vmatprep.mubr.msk.f32.mxu1 %vm6772_vm0, %v6771_v4  ;;  %v6197_v18 = vpack.c.bf16 %v218_v15, %v214_v13  ;;  %v243_v13 = vld [vmem:[#allocation4 + $0x100] sm:$0xff] }
 0xa47   :  { %v1824_v19 = vpop.f32.mrb[22].mxu0 }
 0xa48   :  { %v1906_v20 = vmul.f32 0.17677669, %v1824_v19  ;;  %v5848_v21 = vpop.f32.mrb[23].mxu0  ;;  %v213_v19 = vld [vmem:[#allocation4 + $0x10] sm:$0xff] }
 0xa4a   :  { %v1908_v22 = vadd.f32 %v1906_v20, %v6995_v57  ;;  %v217_v20 = vld [vmem:[#allocation4 + $0x30] sm:$0xff] }
 0xa4b   :  { %v1902_v23 = vpop.f32.mrb[24].mxu0  ;;  %v6199_v21 = vpack.c.bf16 %v217_v20, %v213_v19  ;;  %v256_v20 = vld [vmem:[#allocation4 + $0x168] sm:$0xff] }
 0xa4c   :  { %v1907_v24 = vmul.f32 0.17677669, %v1902_v23  ;;  %v5853_v25 = vpop.f32.mrb[25].mxu0  ;;  %v1910_v26 = vsel %vm666_vm2, %v1908_v22, -inf  ;;  %v226_v23 = vld [vmem:[#allocation4 + $0x78] sm:$0xff] }
 0xa4d   :  { %1911 = vmax.xlane.f32.xlu0 %v1910_v26  ;;  %v219_v25 = vld [vmem:[#allocation4 + $0x40] sm:$0xff] }
 0xa4e   :  { %v1909_v27 = vadd.f32 %v1907_v24, %v7001_v62  ;;  %v223_v26 = vld [vmem:[#allocation4 + $0x60] sm:$0xff] }
 0xa50   :  { %v1913_v31 = vsel %vm666_vm2, %v1909_v27, -inf }
 0xa51   :  { %1914 = vmax.xlane.f32.xlu1 %v1913_v31  ;;  %v6171_v31 = vpack.c.bf16 %v223_v26, %v219_v25  ;;  %v257_v26 = vld [vmem:[#allocation4 + $0x170] sm:$0xff] }
 0xa62   :  { %2008 = vrot.lane.b32.xlu1 %v6983_v55, %s6764_s23 }
 0xada   :  { %v1912_v34 = vpop.xlane.xlu0 %1911 }
 0xadb   :  { %v1916_v35 = vsub.f32 %v1908_v22, %v1912_v34  ;;  %v224_v22 = vld [vmem:[#allocation4 + $0x68] sm:$0xff]  ;;  %v225_v34 = vld [vmem:[#allocation4 + $0x70] sm:$0xff] }
 0xadd   :  { %v1918_v28 = vmul.f32 1.442695, %v1916_v35  ;;  %v228_v35 = vld [vmem:[#allocation4 + $0x88] sm:$0xff] }
 0xade   :  { %v1915_v38 = vpop.xlane.xlu1 %1914 }
 0xadf   :  { %6602 = vpow2.f32 %v1918_v28  ;;  %v1917_v57 = vsub.f32 %v1909_v27, %v1915_v38  ;;  %v221_v27 = vld [vmem:[#allocation4 + $0x50] sm:$0xff]  ;;  %v232_v28 = vld [vmem:[#allocation4 + $0xa8] sm:$0xff] }
 0xae0   :  { %v6203_v38 = vpack.c.bf16 %v225_v34, %v221_v27  ;;  %v260_v27 = vld [vmem:[#allocation4 + $0x188] sm:$0xff] }
 0xae1   :  { %v1920_v40 = vmul.f32 1.442695, %v1917_v57  ;;  %v6173_v57 = vpack.c.bf16 %v232_v28, %v228_v35  ;;  %v262_v28 = vld [vmem:[#allocation4 + $0x198] sm:$0xff] }
 0xae2   :  { %v2009_v42 = vpop.permute.xlu1 %2008 }
 0xae3   :  { %6604 = vpow2.f32 %v1920_v40  ;;  %5860 = vmatpush3.msra.mxu0 %v2009_v42  ;;  %v230_v40 = vld [vmem:[#allocation4 + $0x98] sm:$0xff] }
 0xae4   :  { %6166 = vmatprep.subr.bf16.mxu0 %v6165_v14  ;;  %v234_v42 = vld [vmem:[#allocation4 + $0xb8] sm:$0xff]  ;;  %v247_v14 = vld [vmem:[#allocation4 + $0x120] sm:$0xff] }
 0xae9   :  { %v6603_v43 = vpop.eup %6602 }
 0xaea   :  { %v1922_v44 = vsel %vm666_vm2, %v6603_v43, 0.0 }
 0xaeb   :  { %1923 = vadd.xlane.f32.xlu0 %v1922_v44  ;;  %v6205_v44 = vpack.c.bf16 %v234_v42, %v230_v40  ;;  %v263_v42 = vld [vmem:[#allocation4 + $0x1a0] sm:$0xff] }
 0xaed   :  { %v6605_v62 = vpop.eup %6604 }
 0xaee   :  { %v1925_v46 = vsel %vm666_vm2, %v6605_v62, 0.0 }
 0xaef   :  { %1926 = vadd.xlane.f32.xlu0 %v1925_v46  ;;  %v229_v46 = vld [vmem:[#allocation4 + $0x90] sm:$0xff] }
 0xb05   :  { %1932 = vrot.lane.b32.xlu0 %v6971_v53, %s6764_s23 }
 0xb78   :  { %v1924_v55 = vpop.xlane.xlu0 %1923 }
 0xb79   :  { %6606 = vrcp.f32 %v1924_v55  ;;  %v233_v55 = vld [vmem:[#allocation4 + $0xb0] sm:$0xff] }
 0xb7a   :  { %v6207_v48 = vpack.c.bf16 %v233_v55, %v229_v46  ;;  %v268_v46 = vld [vmem:[#allocation4 + $0x1c8] sm:$0xff] }
 0xb7b   :  { %v272_v55 = vld [vmem:[#allocation4 + $0x1e8] sm:$0xff] }
 0xb7c   :  { %v1927_v50 = vpop.xlane.xlu0 %1926 }
 0xb7d   :  { %6608 = vrcp.f32 %v1927_v50 }
 0xb80   :  { %v1933_v56 = vpop.permute.xlu0 %1932 }
 0xb81   :  { %5855 = vmatpush3.msra.mxu1 %v1933_v56 }
 0xb82   :  { %6158 = vmatprep.subr.bf16.mxu1 %v6157_v51 }
 0xb83   :  { %v6607_v58 = vpop.eup %6606 }
 0xb84   :  { %v1930_v59 = vmul.f32 %v6607_v58, %v6603_v43  ;;  %v227_v43 = vld [vmem:[#allocation4 + $0x80] sm:$0xff] }
 0xb86   :  { %5857 = vmatmul.mubr.msk.f32.vlgmr.msra.gmra.mrb[12].mxu1 %vm666_vm2, %v1930_v59 }
 0xb87   :  { %v6609_v53 = vpop.eup %6608  ;;  %6160 = vmatpush3.bf16.msra.mxu1 %v6157_v51 }
 0xb88   :  { %v1931_v60 = vmul.f32 %v6609_v53, %v6605_v62  ;;  %6162 = vmatprep.subr.bf16.mxu1 %v6161_v49  ;;  %v231_v62 = vld [vmem:[#allocation4 + $0xa0] sm:$0xff] }
 0xb89   :  { %v6175_v47 = vpack.c.bf16 %v231_v62, %v227_v43  ;;  %v261_v43 = vld [vmem:[#allocation4 + $0x190] sm:$0xff] }
 0xb8a   :  { %5862 = vmatmul.mubr.msk.f32.vlgmr.msra.gmra.mrb[26].mxu0 %vm666_vm2, %v1931_v60 }
 0xb8b   :  { %2302 = vmatprep.mubr.f32.mxu0 %v6771_v4  ;;  %6164 = vmatpush3.bf16.msra.mxu1 %v6161_v49  ;;  %v240_v49 = vld [vmem:[#allocation4 + $0xe8] sm:$0xff] }
 0xb8c   :  { %6198 = vmatprep.subr.bf16.mxu1 %v6197_v18  ;;  %v249_v18 = vld [vmem:[#allocation4 + $0x130] sm:$0xff] }
 0xc59   :  { %v2004_v54 = vpop.f32.mrb[12].mxu1 }
 0xc5a   :  { %v5858_v63 = vpop.f32.mrb[13].mxu1  ;;  %5872 = vmatprep.mubr.msk.f32.mxu1 %vm509_vm1, %v2004_v54  ;;  %v238_v54 = vld [vmem:[#allocation4 + $0xd8] sm:$0xff] }
 0xc5b   :  { %v6177_v63 = vpack.c.bf16 %v240_v49, %v236_v45  ;;  %v273_v45 = vld [vmem:[#allocation4 + $0x1f0] sm:$0xff] }
 0xc5d   :  { %v2080_v0 = vpop.f32.mrb[26].mxu0 }
 0xc5e   :  { %v5863_v1 = vpop.f32.mrb[27].mxu0  ;;  %5873 = vmatmul.mubr.msk.f32.vlgmr.msra.gmra.mrb[10].mxu1 %vm509_vm1, %v2080_v0  ;;  %v242_v0 = vld [vmem:[#allocation4 + $0xf8] sm:$0xff] }
 0xc5f   :  { %2379 = vmatprep.mubr.f32.mxu1 %v6771_v4  ;;  %6200 = vmatpush1.bf16.msra.mxu1 %v6199_v21  ;;  %v235_v1 = vld [vmem:[#allocation4 + $0xc0] sm:$0xff]  ;;  %v258_v21 = vld [vmem:[#allocation4 + $0x178] sm:$0xff] }
 0xd31   :  { %v5874_v3 = vpop.f32.mrb[10].mxu1 }
 0xd32   :  { %v6549_v52 = vadd.f32 %v5874_v3, %v7099_v29  ;;  %v2156_v5 = vpop.f32.mrb[11].mxu1  ;;  %v6167_v29 = vpack.c.bf16 %v215_v17, %v211_v16  ;;  %v6209_v3 = vpack.c.bf16 %v242_v0, %v238_v54  ;;  %v6183_v16 = vpack.c.bf16 %v247_v14, %v243_v13  ;;  %v245_v17 = vld [vmem:[#allocation4 + $0x110] sm:$0xff] }
 0xd33   :  { %v6550_v6 = vadd.f32 %v2156_v5, %v7101_v30  ;;  %v220_v30 = vld [vmem:[#allocation4 + $0x48] sm:$0xff]  ;;  %v237_v5 = vld [vmem:[#allocation4 + $0xd0] sm:$0xff]  ;;  %v6215_v19 = vpack.c.bf16 %v249_v18, %v245_v17  ;;  %v276_v18 = vld [vmem:[#allocation6] sm:$0xff] }
 0xd34   :  { %v2174_v7 = vadd.f32 %v6549_v52, %v5329_v2  ;;  %6168 = vmatpush1.bf16.msra.mxu0 %v6167_v29  ;;  %v252_v29 = vld [vmem:[#allocation4 + $0x148] sm:$0xff] }
 0xd35   :  { %v2173_v8 = vadd.f32 %v6550_v6, %v5329_v2  ;;  %v239_v2 = vld [vmem:[#allocation4 + $0xe0] sm:$0xff]  ;;  %v241_v6 = vld [vmem:[#allocation4 + $0xf0] sm:$0xff]  ;;  %v325_v17 = vld [vmem:[#allocation6 + $0x188] sm:$0xff] }
 0xd36   :  { %v2176_v9 = vadd.f32 %v2174_v7, %v6937_v36  ;;  %v222_v36 = vld [vmem:[#allocation4 + $0x58] sm:$0xff]  ;;  %v6179_v52 = vpack.c.bf16 %v239_v2, %v235_v1  ;;  %v6211_v7 = vpack.c.bf16 %v241_v6, %v237_v5 }
 0xd37   :  { %v2175_v10 = vadd.f32 %v2173_v8, %v6931_v33  ;;  %v6169_v33 = vpack.c.bf16 %v224_v22, %v220_v30  ;;  %v6201_v24 = vpack.c.bf16 %v226_v23, %v222_v36  ;;  %v244_v8 = vld [vmem:[#allocation4 + $0x108] sm:$0xff]  ;;  %v254_v30 = vld [vmem:[#allocation4 + $0x158] sm:$0xff]  ;;  %v6185_v22 = vpack.c.bf16 %v256_v20, %v252_v29  ;;  %v251_v23 = vld [vmem:[#allocation4 + $0x140] sm:$0xff] }
 0xd38   :  { %2181 = vadd.xlane.f32.xlu0 %v2176_v9  ;;  %v6217_v36 = vpack.c.bf16 %v258_v21, %v254_v30  ;;  %v277_v29 = vld [vmem:[#allocation6 + $0x8] sm:$0xff]  ;;  %v308_v30 = vld [vmem:[#allocation6 + $0x100] sm:$0xff] }
 0xd39   :  { %2179 = vadd.xlane.f32.xlu1 %v2175_v10  ;;  %6170 = vmatprep.subr.bf16.mxu0 %v6169_v33  ;;  %v255_v33 = vld [vmem:[#allocation4 + $0x160] sm:$0xff]  ;;  %v6231_v20 = vpack.c.bf16 %v277_v29, %v276_v18  ;;  %v309_v21 = vld [vmem:[#allocation6 + $0x108] sm:$0xff]  ;;  %v334_v18 = vld [vmem:[#allocation6 + $0x1d0] sm:$0xff] }
 0xd3a   :  { %6202 = vmatprep.subr.bf16.mxu1 %v6201_v24  ;;  %6172 = vmatpush1.bf16.msra.mxu0 %v6171_v31  ;;  %v253_v24 = vld [vmem:[#allocation4 + $0x150] sm:$0xff]  ;;  %v6187_v25 = vpack.c.bf16 %v255_v33, %v251_v23  ;;  %v264_v31 = vld [vmem:[#allocation4 + $0x1a8] sm:$0xff]  ;;  %v295_v23 = vld [vmem:[#allocation6 + $0x98] sm:$0xff] }
 0xd3b   :  { %6204 = vmatpush1.bf16.msra.mxu1 %v6203_v38  ;;  %6174 = vmatprep.subr.bf16.mxu0 %v6173_v57  ;;  %v6219_v34 = vpack.c.bf16 %v257_v26, %v253_v24  ;;  %v6189_v35 = vpack.c.bf16 %v264_v31, %v260_v27  ;;  %v266_v38 = vld [vmem:[#allocation4 + $0x1b8] sm:$0xff]  ;;  %v259_v57 = vld [vmem:[#allocation4 + $0x180] sm:$0xff]  ;;  %v326_v33 = vld [vmem:[#allocation6 + $0x190] sm:$0xff] }
 0xd3c   :  { %6206 = vmatprep.subr.bf16.mxu1 %v6205_v44  ;;  %v6221_v40 = vpack.c.bf16 %v266_v38, %v262_v28  ;;  %v265_v44 = vld [vmem:[#allocation4 + $0x1b0] sm:$0xff]  ;;  %v6191_v62 = vpack.c.bf16 %v263_v42, %v259_v57  ;;  %v279_v27 = vld [vmem:[#allocation6 + $0x18] sm:$0xff]  ;;  %v296_v57 = vld [vmem:[#allocation6 + $0xa0] sm:$0xff] }
 0xd3d   :  { %v278_v26 = vld [vmem:[#allocation6 + $0x10] sm:$0xff]  ;;  %v311_v28 = vld [vmem:[#allocation6 + $0x118] sm:$0xff]  ;;  %v328_v42 = vld [vmem:[#allocation6 + $0x1a0] sm:$0xff] }
 0xd3e   :  { %6176 = vmatpush1.bf16.msra.mxu0 %v6175_v47  ;;  %v270_v47 = vld [vmem:[#allocation4 + $0x1d8] sm:$0xff] }
 0xd3f   :  { %6208 = vmatpush1.bf16.msra.mxu1 %v6207_v48  ;;  %6178 = vmatprep.subr.bf16.mxu0 %v6177_v63  ;;  %v6223_v48 = vpack.c.bf16 %v265_v44, %v261_v43  ;;  %v329_v44 = vld [vmem:[#allocation6 + $0x1a8] sm:$0xff] }
 0xd40   :  { %6210 = vmatprep.subr.bf16.mxu1 %v6209_v3 }
 0xd42   :  { %6180 = vmatpush1.bf16.msra.mxu0 %v6179_v52 }
 0xd43   :  { %6212 = vmatpush1.bf16.msra.mxu1 %v6211_v7  ;;  %v5330_v7 = vld [vmem:[%s7717_s8] ss:$0 sm:$0xff] }
 0xdc5   :  { %v2182_v50 = vpop.xlane.xlu0 %2181 }
 0xdc6   :  { %v2184_v51 = vmul.f32 0.0078125, %v2182_v50  ;;  %v2180_v56 = vpop.xlane.xlu1 %2179  ;;  %v6193_v50 = vpack.c.bf16 %v272_v55, %v268_v46  ;;  %v281_v46 = vld [vmem:[#allocation6 + $0x28] sm:$0xff]  ;;  %v6269_v55 = vpack.c.bf16 %v329_v44, %v328_v42  ;;  %v307_v44 = vld [vmem:[#allocation6 + $0xf8] sm:$0xff] }
 0xdc7   :  { %v2183_v58 = vmul.f32 0.0078125, %v2180_v56  ;;  %v267_v56 = vld [vmem:[#allocation4 + $0x1c0] sm:$0xff] }
 0xdc8   :  { %v7191_v59 = vsub.f32 %v2176_v9, %v2184_v51  ;;  %v248_v9 = vld [vmem:[#allocation4 + $0x128] sm:$0xff]  ;;  %v274_v51 = vld [vmem:[#allocation4 + $0x1f8] sm:$0xff] }
 0xdc9   :  { %v7193_v53 = vsub.f32 %v2175_v10, %v2183_v58  ;;  %v246_v10 = vld [vmem:[#allocation4 + $0x118] sm:$0xff]  ;;  %v6181_v11 = vpack.c.bf16 %v248_v9, %v244_v8  ;;  %v271_v58 = vld [vmem:[#allocation4 + $0x1e0] sm:$0xff] }
 0xdca   :  { %v2188_v60 = vmul.f32 %v7191_v59, %v7191_v59  ;;  %v6213_v15 = vpack.c.bf16 %v250_v12, %v246_v10  ;;  %v6195_v49 = vpack.c.bf16 %v271_v58, %v267_v56  ;;  %v5331_v10 = vld [vmem:[%s7718_s9] ss:$0 sm:$0xff]  ;;  %v298_v56 = vld [vmem:[#allocation6 + $0xb0] sm:$0xff]  ;;  %v299_v58 = vld [vmem:[#allocation6 + $0xb8] sm:$0xff] }
 0xdcb   :  { %v2187_v61 = vmul.f32 %v7193_v53, %v7193_v53  ;;  %6182 = vmatprep.subr.bf16.mxu0 %v6181_v11 }
 0xdcc   :  { %2191 = vadd.xlane.f32.xlu1 %v2188_v60  ;;  %6214 = vmatprep.subr.bf16.mxu1 %v6213_v15  ;;  %v6225_v60 = vpack.c.bf16 %v274_v51, %v270_v47  ;;  %v324_v15 = vld [vmem:[#allocation6 + $0x180] sm:$0xff] }
 0xdcd   :  { %2189 = vadd.xlane.f32.xlu0 %v2187_v61  ;;  %6184 = vmatpush1.bf16.msra.mxu0 %v6183_v16  ;;  %v269_v61 = vld [vmem:[#allocation4 + $0x1d0] sm:$0xff] }
 0xdce   :  { %6216 = vmatpush1.bf16.msra.mxu1 %v6215_v19  ;;  %6186 = vmatprep.subr.bf16.mxu0 %v6185_v22  ;;  %v6227_v54 = vpack.c.bf16 %v273_v45, %v269_v61  ;;  %v6261_v19 = vpack.c.bf16 %v325_v17, %v324_v15  ;;  %v6263_v22 = vpack.c.bf16 %v309_v21, %v308_v30  ;;  %v331_v45 = vld [vmem:[#allocation6 + $0x1b8] sm:$0xff] }
 0xdcf   :  { %6218 = vmatprep.subr.bf16.mxu1 %v6217_v36  ;;  %v294_v36 = vld [vmem:[#allocation6 + $0x90] sm:$0xff]  ;;  %v6241_v61 = vpack.c.bf16 %v299_v58, %v298_v56  ;;  %v303_v17 = vld [vmem:[#allocation6 + $0xd8] sm:$0xff] }
 0xdd0   :  { %v6233_v24 = vpack.c.bf16 %v295_v23, %v294_v36  ;;  %v287_v30 = vld [vmem:[#allocation6 + $0x58] sm:$0xff]  ;;  %v318_v36 = vld [vmem:[#allocation6 + $0x150] sm:$0xff] }
 0xdd1   :  { %6188 = vmatpush1.bf16.msra.mxu0 %v6187_v25  ;;  %v327_v25 = vld [vmem:[#allocation6 + $0x198] sm:$0xff]  ;;  %v322_v56 = vld [vmem:[#allocation6 + $0x170] sm:$0xff] }
 0xdd2   :  { %6220 = vmatpush1.bf16.msra.mxu1 %v6219_v34  ;;  %6190 = vmatprep.subr.bf16.mxu0 %v6189_v35  ;;  %v6265_v31 = vpack.c.bf16 %v327_v25, %v326_v33  ;;  %v6235_v34 = vpack.c.bf16 %v279_v27, %v278_v26  ;;  %v310_v35 = vld [vmem:[#allocation6 + $0x110] sm:$0xff]  ;;  %v319_v23 = vld [vmem:[#allocation6 + $0x158] sm:$0xff]  ;;  %v305_v25 = vld [vmem:[#allocation6 + $0xe8] sm:$0xff] }
 0xdd3   :  { %6222 = vmatprep.subr.bf16.mxu1 %v6221_v40  ;;  %v6267_v38 = vpack.c.bf16 %v311_v28, %v310_v35  ;;  %v297_v40 = vld [vmem:[#allocation6 + $0xa8] sm:$0xff]  ;;  %v6283_v33 = vpack.c.bf16 %v319_v23, %v318_v36  ;;  %v336_v26 = vld [vmem:[#allocation6 + $0x1e0] sm:$0xff]  ;;  %v323_v58 = vld [vmem:[#allocation6 + $0x178] sm:$0xff] }
 0xdd4   :  { %v6237_v43 = vpack.c.bf16 %v297_v40, %v296_v57  ;;  %v289_v35 = vld [vmem:[#allocation6 + $0x68] sm:$0xff]  ;;  %v320_v57 = vld [vmem:[#allocation6 + $0x160] sm:$0xff] }
 0xdd5   :  { %6192 = vmatpush1.bf16.msra.mxu0 %v6191_v62  ;;  %v280_v62 = vld [vmem:[#allocation6 + $0x20] sm:$0xff]  ;;  %v321_v40 = vld [vmem:[#allocation6 + $0x168] sm:$0xff] }
 0xdd6   :  { %6224 = vmatpush1.bf16.msra.mxu1 %v6223_v48  ;;  %6194 = vmatprep.subr.bf16.mxu0 %v6193_v50  ;;  %v6239_v47 = vpack.c.bf16 %v281_v46, %v280_v62  ;;  %v312_v48 = vld [vmem:[#allocation6 + $0x120] sm:$0xff]  ;;  %v313_v50 = vld [vmem:[#allocation6 + $0x128] sm:$0xff]  ;;  %v6287_v42 = vpack.c.bf16 %v321_v40, %v320_v57  ;;  %v338_v62 = vld [vmem:[#allocation6 + $0x1f0] sm:$0xff] }
 0xdd7   :  { %6226 = vmatprep.subr.bf16.mxu1 %v6225_v60  ;;  %v6271_v51 = vpack.c.bf16 %v313_v50, %v312_v48  ;;  %v330_v60 = vld [vmem:[#allocation6 + $0x1b0] sm:$0xff]  ;;  %v291_v48 = vld [vmem:[#allocation6 + $0x78] sm:$0xff] }
 0xdd9   :  { %6196 = vmatpush1.bf16.msra.mxu0 %v6195_v49  ;;  %v282_v49 = vld [vmem:[#allocation6 + $0x30] sm:$0xff] }
 0xdda   :  { %6228 = vmatpush1.bf16.msra.mxu1 %v6227_v54  ;;  %v283_v54 = vld [vmem:[#allocation6 + $0x38] sm:$0xff] }
 0xddb   :  { %6262 = vmatprep.subr.bf16.mxu1 %v6261_v19  ;;  %v335_v19 = vld [vmem:[#allocation6 + $0x1d8] sm:$0xff] }
 0xddc   :  { %v6281_v21 = vpack.c.bf16 %v335_v19, %v334_v18 }
 0xe59   :  { %v2192_v63 = vpop.xlane.xlu1 %2191 }
 0xe5a   :  { %v2194_v0 = vmul.f32 0.0078125, %v2192_v63  ;;  %v2190_v1 = vpop.xlane.xlu0 %2189  ;;  %v6273_v63 = vpack.c.bf16 %v331_v45, %v330_v60  ;;  %v6291_v60 = vpack.c.bf16 %v323_v58, %v322_v56  ;;  %v2232_v45 = vsub.s32 3, %v6945_v32 }
 0xe5b   :  { %v2193_v2 = vmul.f32 0.0078125, %v2190_v1  ;;  %v314_v1 = vld [vmem:[#allocation6 + $0x130] sm:$0xff] }
 0xe5c   :  { %v2196_v3 = vadd.f32 1e-12, %v2194_v0  ;;  %v6243_v0 = vpack.c.bf16 %v283_v54, %v282_v49 }
 0xe5d   :  { %v2195_v52 = vadd.f32 1e-12, %v2193_v2  ;;  %v315_v2 = vld [vmem:[#allocation6 + $0x138] sm:$0xff] }
 0xe5e   :  { %6610 = vrsqrt.f32 %v2196_v3  ;;  %v6275_v3 = vpack.c.bf16 %v315_v2, %v314_v1 }
 0xe5f   :  { %6612 = vrsqrt.f32 %v2195_v52  ;;  %v300_v52 = vld [vmem:[#allocation6 + $0xc0] sm:$0xff] }
 0xe68   :  { %v6611_v5 = vpop.eup %6610 }
 0xe69   :  { %v6613_v6 = vpop.eup %6612  ;;  %v2200_v9 = vmul.f32 %v6611_v5, %v7191_v59  ;;  %v292_v59 = vld [vmem:[#allocation6 + $0x80] sm:$0xff]  ;;  %v301_v5 = vld [vmem:[#allocation6 + $0xc8] sm:$0xff] }
 0xe6a   :  { %v2199_v8 = vmul.f32 %v6613_v6, %v7193_v53  ;;  %v293_v53 = vld [vmem:[#allocation6 + $0x88] sm:$0xff]  ;;  %v332_v6 = vld [vmem:[#allocation6 + $0x1c0] sm:$0xff] }
 0xe6b   :  { %v2208_v13 = vmul.f32 %v5330_v7, %v2200_v9  ;;  %v6229_v16 = vpack.c.bf16 %v293_v53, %v292_v59  ;;  %v284_v9 = vld [vmem:[#allocation6 + $0x40] sm:$0xff]  ;;  %v317_v53 = vld [vmem:[#allocation6 + $0x148] sm:$0xff] }
 0xe6c   :  { %v2207_v11 = vmul.f32 %v5330_v7, %v2199_v8  ;;  %v6245_v7 = vpack.c.bf16 %v301_v5, %v300_v52  ;;  %v333_v8 = vld [vmem:[#allocation6 + $0x1c8] sm:$0xff]  ;;  %v316_v59 = vld [vmem:[#allocation6 + $0x140] sm:$0xff] }
 0xe6d   :  { %v7213_v14 = vadd.f32 %v5331_v10, %v2208_v13  ;;  %6230 = vmatprep.subr.bf16.mxu0 %v6229_v16  ;;  %v6279_v15 = vpack.c.bf16 %v317_v53, %v316_v59  ;;  %v302_v16 = vld [vmem:[#allocation6 + $0xd0] sm:$0xff] }
 0xe6e   :  { %v7207_v12 = vadd.f32 %v5331_v10, %v2207_v11  ;;  %v285_v10 = vld [vmem:[#allocation6 + $0x48] sm:$0xff]  ;;  %v6277_v11 = vpack.c.bf16 %v333_v8, %v332_v6  ;;  %v6249_v29 = vpack.c.bf16 %v303_v17, %v302_v16 }
 0xe6f   :  { %v6247_v13 = vpack.c.bf16 %v285_v10, %v284_v9 }
 0xe70   :  { %2303 = vmatmul.mubr.f32.vlgmr.msra.gmra.mrb[28].mxu0 %v7207_v12  ;;  %2380 = vmatmul.mubr.f32.vlgmr.msra.gmra.mrb[14].mxu1 %v7207_v12 }
 0xe71   :  { %2308 = vmatprep.mubr.f32.mxu0 %v6771_v4  ;;  %2385 = vmatprep.mubr.f32.mxu1 %v6771_v4 }
 0xe72   :  { %6232 = vmatpush3.bf16.msra.mxu0 %v6231_v20  ;;  %6264 = vmatpush3.bf16.msra.mxu1 %v6263_v22  ;;  %v286_v20 = vld [vmem:[#allocation6 + $0x50] sm:$0xff] }
 0xe73   :  { %6234 = vmatprep.subr.bf16.mxu0 %v6233_v24  ;;  %6266 = vmatprep.subr.bf16.mxu1 %v6265_v31  ;;  %v6251_v22 = vpack.c.bf16 %v287_v30, %v286_v20  ;;  %v304_v24 = vld [vmem:[#allocation6 + $0xe0] sm:$0xff]  ;;  %v337_v31 = vld [vmem:[#allocation6 + $0x1e8] sm:$0xff] }
 0xe74   :  { %2309 = vmatmul.mubr.f32.gmra.mrb[30].mxu0 %v7213_v14  ;;  %2386 = vmatmul.mubr.f32.gmra.mrb[16].mxu1 %v7213_v14  ;;  %v6253_v27 = vpack.c.bf16 %v305_v25, %v304_v24  ;;  %v6285_v28 = vpack.c.bf16 %v337_v31, %v336_v26 }
 0xe76   :  { %6236 = vmatpush3.bf16.msra.mxu0 %v6235_v34  ;;  %6268 = vmatpush3.bf16.msra.mxu1 %v6267_v38  ;;  %v288_v34 = vld [vmem:[#allocation6 + $0x60] sm:$0xff] }
 0xe77   :  { %6238 = vmatprep.subr.bf16.mxu0 %v6237_v43  ;;  %6270 = vmatprep.subr.bf16.mxu1 %v6269_v55  ;;  %v6255_v38 = vpack.c.bf16 %v289_v35, %v288_v34  ;;  %v306_v43 = vld [vmem:[#allocation6 + $0xf0] sm:$0xff]  ;;  %v339_v55 = vld [vmem:[#allocation6 + $0x1f8] sm:$0xff] }
 0xe78   :  { %v6257_v46 = vpack.c.bf16 %v307_v44, %v306_v43  ;;  %v6289_v50 = vpack.c.bf16 %v339_v55, %v338_v62 }
 0xe7a   :  { %6240 = vmatpush3.bf16.msra.mxu0 %v6239_v47  ;;  %6272 = vmatpush3.bf16.msra.mxu1 %v6271_v51  ;;  %v290_v47 = vld [vmem:[#allocation6 + $0x70] sm:$0xff] }
 0xe7b   :  { %6242 = vmatprep.subr.bf16.mxu0 %v6241_v61  ;;  %6274 = vmatprep.subr.bf16.mxu1 %v6273_v63  ;;  %v6259_v51 = vpack.c.bf16 %v291_v48, %v290_v47  ;;  %v275_v61 = vld [vmem:[%s7720_s11] sm:$0xf] }
 0xe7c   :  { %v2221_v49 = vrot.slane %v275_v61, %v6954_v39  ;;  %v2229_v54 = vrot.slane %v275_v61, %v6958_v41  ;;  %v2225_v63 = vrot.slane %v275_v61, %v6948_v37 }
 0xe7e   :  { %6244 = vmatpush3.bf16.msra.mxu0 %v6243_v0  ;;  %6276 = vmatpush3.bf16.msra.mxu1 %v6275_v3  ;;  %v2233_v0 = vrot.slane %v275_v61, %v2232_v45 }
 0xe7f   :  { %6246 = vmatprep.subr.bf16.mxu0 %v6245_v7  ;;  %6278 = vmatprep.subr.bf16.mxu1 %v6277_v11 }
 0xe82   :  { %6248 = vmatpush3.bf16.msra.mxu0 %v6247_v13  ;;  %6280 = vmatpush3.bf16.msra.mxu1 %v6279_v15 }
 0xe83   :  { %6250 = vmatprep.subr.bf16.mxu0 %v6249_v29  ;;  %6282 = vmatprep.subr.bf16.mxu1 %v6281_v21 }
 0xe86   :  { %6252 = vmatpush3.bf16.msra.mxu0 %v6251_v22  ;;  %6284 = vmatpush3.bf16.msra.mxu1 %v6283_v33 }
 0xe87   :  { %6254 = vmatprep.subr.bf16.mxu0 %v6253_v27  ;;  %6286 = vmatprep.subr.bf16.mxu1 %v6285_v28 }
 0xe8a   :  { %6256 = vmatpush3.bf16.msra.mxu0 %v6255_v38  ;;  %6288 = vmatpush3.bf16.msra.mxu1 %v6287_v42 }
 0xe8b   :  { %6258 = vmatprep.subr.bf16.mxu0 %v6257_v46  ;;  %6290 = vmatprep.subr.bf16.mxu1 %v6289_v50 }
 0xe8e   :  { %6260 = vmatpush3.bf16.msra.mxu0 %v6259_v51  ;;  %6292 = vmatpush3.bf16.msra.mxu1 %v6291_v60 }
 0xf43   :  { %v2304_v1 = vpop.f32.mrb[28].mxu0  ;;  %v2381_v2 = vpop.f32.mrb[14].mxu1 }
 0xf44   :  { %v7226_v3 = vadd.f32 %v2304_v1, %v2221_v49  ;;  %v7228_v52 = vadd.f32 %v2381_v2, %v2229_v54  ;;  %v2306_v5 = vpop.f32.mrb[29].mxu0  ;;  %v2383_v6 = vpop.f32.mrb[15].mxu1 }
 0xf45   :  { %v7230_v7 = vadd.f32 %v2306_v5, %v2225_v63  ;;  %v7232_v8 = vadd.f32 %v2383_v6, %v2233_v0 }
 0xf46   :  { %v2392_v9 = vmul.f32 %v7226_v3, %v7226_v3  ;;  %v2394_v10 = vmul.f32 %v7228_v52, %v7228_v52 }
 0xf47   :  { %v2393_v11 = vmul.f32 %v7230_v7, %v7230_v7  ;;  %v2395_v13 = vmul.f32 %v7232_v8, %v7232_v8  ;;  %v2310_v59 = vpop.f32.mrb[30].mxu0  ;;  %v2387_v53 = vpop.f32.mrb[16].mxu1 }
 0xf48   :  { %v2400_v15 = vmul.f32 %v2392_v9, %v7226_v3  ;;  %v2402_v16 = vmul.f32 %v2394_v10, %v7228_v52  ;;  %v7244_v17 = vadd.f32 %v2310_v59, %v2221_v49  ;;  %v7246_v18 = vadd.f32 %v2387_v53, %v2229_v54  ;;  %v2312_v29 = vpop.f32.mrb[31].mxu0  ;;  %v2389_v19 = vpop.f32.mrb[17].mxu1 }
 0xf49   :  { %v2401_v20 = vmul.f32 %v2393_v11, %v7230_v7  ;;  %v2403_v30 = vmul.f32 %v2395_v13, %v7232_v8  ;;  %v7250_v21 = vadd.f32 %v2312_v29, %v2225_v63  ;;  %v7252_v22 = vadd.f32 %v2389_v19, %v2233_v0 }
 0xf4a   :  { %v2408_v36 = vmul.f32 0.044715, %v2400_v15  ;;  %v2410_v23 = vmul.f32 0.044715, %v2402_v16  ;;  %v2396_v33 = vmul.f32 %v7244_v17, %v7244_v17  ;;  %v2398_v24 = vmul.f32 %v7246_v18, %v7246_v18 }
 0xf4b   :  { %v2409_v25 = vmul.f32 0.044715, %v2401_v20  ;;  %v2411_v26 = vmul.f32 0.044715, %v2403_v30  ;;  %v2397_v27 = vmul.f32 %v7250_v21, %v7250_v21  ;;  %v2399_v31 = vmul.f32 %v7252_v22, %v7252_v22 }
 0xf4c   :  { %v2416_v34 = vadd.f32 %v2408_v36, %v7226_v3  ;;  %v2418_v35 = vadd.f32 %v2410_v23, %v7228_v52  ;;  %v2404_v28 = vmul.f32 %v2396_v33, %v7244_v17  ;;  %v2406_v38 = vmul.f32 %v2398_v24, %v7246_v18 }
 0xf4d   :  { %v2417_v57 = vadd.f32 %v2409_v25, %v7230_v7  ;;  %v2419_v40 = vadd.f32 %v2411_v26, %v7232_v8  ;;  %v2405_v42 = vmul.f32 %v2397_v27, %v7250_v21  ;;  %v2407_v43 = vmul.f32 %v2399_v31, %v7252_v22 }
 0xf4e   :  { %v2424_v44 = vmul.f32 0.7978846, %v2416_v34  ;;  %v2426_v62 = vmul.f32 0.7978846, %v2418_v35  ;;  %v2412_v46 = vmul.f32 0.044715, %v2404_v28 }
 0xf4f   :  { %v2425_v55 = vmul.f32 0.7978846, %v2417_v57  ;;  %v2427_v47 = vmul.f32 0.7978846, %v2419_v40  ;;  %v2414_v48 = vmul.f32 0.044715, %v2406_v38 }
 0xf50   :  { %6614 = vtanh.f32 %v2424_v44  ;;  %v2420_v50 = vadd.f32 %v2412_v46, %v7244_v17  ;;  %v2413_v51 = vmul.f32 0.044715, %v2405_v42  ;;  %v2415_v56 = vmul.f32 0.044715, %v2407_v43  ;;  %v5332_v42 = vld [vmem:[%s7722_s13] ss:$0 sm:$0xff] }
 0xf51   :  { %6616 = vtanh.f32 %v2426_v62  ;;  %v2422_v58 = vadd.f32 %v2414_v48, %v7246_v18 }
 0xf52   :  { %v2428_v60 = vmul.f32 0.7978846, %v2420_v50  ;;  %v2421_v61 = vadd.f32 %v2413_v51, %v7250_v21  ;;  %v2423_v49 = vadd.f32 %v2415_v56, %v7252_v22  ;;  %6618 = vtanh.f32 %v2425_v55 }
 0xf53   :  { %v2430_v54 = vmul.f32 0.7978846, %v2422_v58  ;;  %6620 = vtanh.f32 %v2427_v47 }
 0xf54   :  { %v2429_v63 = vmul.f32 0.7978846, %v2421_v61  ;;  %v2431_v0 = vmul.f32 0.7978846, %v2423_v49  ;;  %6622 = vtanh.f32 %v2428_v60  ;;  %v2664_v61 = vld [vmem:[#allocation2 + $0x188] sm:$0xff]  ;;  %v2667_v49 = vld [vmem:[#allocation2 + $0x1a0] sm:$0xff] }
 0xf55   :  { %6624 = vtanh.f32 %v2430_v54  ;;  %v2663_v54 = vld [vmem:[#allocation2 + $0x180] sm:$0xff] }
 0xf56   :  { %6626 = vtanh.f32 %v2429_v63  ;;  %v6293_v63 = vpack.c.bf16 %v2667_v49, %v2664_v61  ;;  %v2700_v49 = vld [vmem:[#allocation2 + $0x2a8] sm:$0xff] }
 0xf57   :  { %6628 = vtanh.f32 %v2431_v0  ;;  %v2666_v0 = vld [vmem:[#allocation2 + $0x198] sm:$0xff] }
 0xf58   :  { %6294 = vmatprep.subr.bf16.mxu0 %v6293_v63  ;;  %v2695_v63 = vld [vmem:[#allocation2 + $0x280] sm:$0xff] }
 0xf5a   :  { %v6615_v1 = vpop.eup %6614 }
 0xf5b   :  { %v6617_v2 = vpop.eup %6616  ;;  %v2440_v5 = vadd.f32 1.0, %v6615_v1  ;;  %v2670_v1 = vld [vmem:[#allocation2 + $0x1b8] sm:$0xff] }
 0xf5c   :  { %v6619_v6 = vpop.eup %6618  ;;  %v2442_v9 = vadd.f32 1.0, %v6617_v2  ;;  %v2673_v2 = vld [vmem:[#allocation2 + $0x1d0] sm:$0xff] }
 0xf5d   :  { %v6621_v10 = vpop.eup %6620  ;;  %v2441_v11 = vadd.f32 1.0, %v6619_v6  ;;  %v2448_v59 = vmul.f32 0.5, %v2440_v5  ;;  %v6295_v5 = vpack.c.bf16 %v2666_v0, %v2663_v54  ;;  %v6297_v6 = vpack.c.bf16 %v2673_v2, %v2670_v1  ;;  %v2703_v54 = vld [vmem:[#allocation2 + $0x2c0] sm:$0xff]  ;;  %v2698_v1 = vld [vmem:[#allocation2 + $0x298] sm:$0xff] }
 0xf5e   :  { %v6623_v13 = vpop.eup %6622  ;;  %v2443_v53 = vadd.f32 1.0, %v6621_v10  ;;  %v2450_v16 = vmul.f32 0.5, %v2442_v9  ;;  %v2665_v9 = vld [vmem:[#allocation2 + $0x190] sm:$0xff]  ;;  %v2668_v10 = vld [vmem:[#allocation2 + $0x1a8] sm:$0xff]  ;;  %v6317_v0 = vpack.c.bf16 %v2703_v54, %v2700_v49  ;;  %v2699_v2 = vld [vmem:[#allocation2 + $0x2a0] sm:$0xff] }
 0xf5f   :  { %v6625_v15 = vpop.eup %6624  ;;  %v2449_v29 = vmul.f32 0.5, %v2441_v11  ;;  %v2444_v19 = vadd.f32 1.0, %v6623_v13  ;;  %v2456_v25 = vmul.f32 %v2448_v59, %v7226_v3  ;;  %v2669_v11 = vld [vmem:[#allocation2 + $0x1b0] sm:$0xff]  ;;  %v6325_v13 = vpack.c.bf16 %v2668_v10, %v2665_v9  ;;  %v2676_v59 = vld [vmem:[#allocation2 + $0x1e8] sm:$0xff]  ;;  %v2706_v10 = vld [vmem:[#allocation2 + $0x2d8] sm:$0xff] }
 0xf60   :  { %v6627_v20 = vpop.eup %6626  ;;  %v2451_v30 = vmul.f32 0.5, %v2443_v53  ;;  %v2446_v36 = vadd.f32 1.0, %v6625_v15  ;;  %v2458_v34 = vmul.f32 %v2450_v16, %v7228_v52  ;;  %v2679_v53 = vld [vmem:[#allocation2 + $0x200] sm:$0xff]  ;;  %v2674_v16 = vld [vmem:[#allocation2 + $0x1d8] sm:$0xff]  ;;  %v7358_v49 = vld [vmem:[%s7735_s4 + $0x8] sm:$0xff] }
 0xf61   :  { %v6629_v23 = vpop.eup %6628  ;;  %v2457_v33 = vmul.f32 %v2449_v29, %v7230_v7  ;;  %v2445_v24 = vadd.f32 1.0, %v6627_v20  ;;  %v2452_v31 = vmul.f32 0.5, %v2444_v19  ;;  %v2671_v15 = vld [vmem:[#allocation2 + $0x1c0] sm:$0xff]  ;;  %6326 = vmatprep.subr.bf16.mxu1 %v6325_v13  ;;  %v6301_v29 = vpack.c.bf16 %v2679_v53, %v2676_v59  ;;  %v2704_v59 = vld [vmem:[#allocation2 + $0x2c8] sm:$0xff]  ;;  %v2705_v53 = vld [vmem:[#allocation2 + $0x2d0] sm:$0xff] }
 0xf62   :  { %v2459_v26 = vmul.f32 %v2451_v30, %v7232_v8  ;;  %v2447_v27 = vadd.f32 1.0, %v6629_v23  ;;  %v2454_v28 = vmul.f32 0.5, %v2446_v36  ;;  %v6329_v19 = vpack.c.bf16 %v2674_v16, %v2671_v15  ;;  %v2675_v20 = vld [vmem:[#allocation2 + $0x1e0] sm:$0xff]  ;;  %v2678_v30 = vld [vmem:[#allocation2 + $0x1f8] sm:$0xff] }
 0xf63   :  { %2534 = vmatprep.mubr.f32.mxu0 %v2457_v33  ;;  %v2453_v35 = vmul.f32 0.5, %v2445_v24  ;;  %v2460_v40 = vmul.f32 %v2452_v31, %v7244_v17  ;;  %v6303_v36 = vpack.c.bf16 %v2678_v30, %v2675_v20 }
 0xf64   :  { %2609 = vmatprep.mubr.f32.mxu1 %v2459_v26  ;;  %2535 = vmatmul.mubr.f32.vlgmr.msra.gmra.mrb[32].mxu0 %v2456_v25  ;;  %v2455_v38 = vmul.f32 0.5, %v2447_v27  ;;  %v2462_v3 = vmul.f32 %v2454_v28, %v7246_v18  ;;  %v2685_v28 = vld [vmem:[#allocation2 + $0x230] sm:$0xff] }
 0xf65   :  { %2610 = vmatmul.mubr.f32.vlgmr.msra.gmra.mrb[18].mxu1 %v2458_v34  ;;  %v2461_v57 = vmul.f32 %v2453_v35, %v7250_v21  ;;  %6296 = vmatpush1.bf16.msra.mxu0 %v6295_v5  ;;  %v2682_v35 = vld [vmem:[#allocation2 + $0x218] sm:$0xff] }
 0xf66   :  { %v2463_v7 = vmul.f32 %v2455_v38, %v7252_v22  ;;  %6298 = vmatprep.subr.bf16.mxu0 %v6297_v6  ;;  %6328 = vmatpush3.bf16.msra.mxu1 %v6325_v13  ;;  %v2677_v38 = vld [vmem:[#allocation2 + $0x1f0] sm:$0xff]  ;;  %v2702_v5 = vld [vmem:[#allocation2 + $0x2b8] sm:$0xff]  ;;  %v6345_v6 = vpack.c.bf16 %v2698_v1, %v2695_v63 }
 0xf67   :  { %2539 = vmatprep.mubr.f32.mxu0 %v2461_v57  ;;  %6330 = vmatprep.subr.bf16.mxu1 %v6329_v19  ;;  %v6305_v57 = vpack.c.bf16 %v2685_v28, %v2682_v35  ;;  %v6319_v9 = vpack.c.bf16 %v2702_v5, %v2699_v2  ;;  %v2701_v13 = vld [vmem:[#allocation2 + $0x2b0] sm:$0xff]  ;;  %v5334_v28 = vld [vmem:[%s7724_s15] ss:$0 sm:$0xff] }
 0xf68   :  { %2614 = vmatprep.mubr.f32.mxu1 %v2463_v7  ;;  %2540 = vmatmul.mubr.f32.gmra.mrb[34].mxu0 %v2460_v40  ;;  %v2680_v7 = vld [vmem:[#allocation2 + $0x208] sm:$0xff]  ;;  %v2681_v40 = vld [vmem:[#allocation2 + $0x210] sm:$0xff]  ;;  %v6349_v15 = vpack.c.bf16 %v2704_v59, %v2701_v13 }
 0xf69   :  { %2615 = vmatmul.mubr.f32.gmra.mrb[20].mxu1 %v2462_v3  ;;  %2946 = vmatprep.mubr.f32.mxu0 %v6771_v4  ;;  %v2684_v3 = vld [vmem:[#allocation2 + $0x228] sm:$0xff] }
 0xf6a   :  { %6332 = vmatpush3.bf16.msra.mxu1 %v6329_v19  ;;  %v2710_v19 = vld [vmem:[#allocation2 + $0x2f8] sm:$0xff] }
0x1037   :  { %v5504_v52 = vpop.f32.mrb[32].mxu0 }
0x1038   :  { %v5542_v8 = vpop.f32.mrb[18].mxu1  ;;  %v5505_v43 = vpop.f32.mrb[33].mxu0 }
0x1039   :  { %v5506_v21 = vadd.f32 %v5505_v43, %v5504_v52  ;;  %v5543_v44 = vpop.f32.mrb[19].mxu1  ;;  %v6333_v52 = vpack.c.bf16 %v2680_v7, %v2677_v38  ;;  %v2691_v43 = vld [vmem:[#allocation2 + $0x260] sm:$0xff] }
0x103a   :  { %v5544_v22 = vadd.f32 %v5543_v44, %v5542_v8  ;;  %v6307_v8 = vpack.c.bf16 %v2684_v3, %v2681_v40 }
0x103b   :  { %v2537_v62 = vadd.f32 %v5506_v21, %v5332_v42  ;;  %v5507_v17 = vpop.f32.mrb[34].mxu0  ;;  %6334 = vmatprep.subr.bf16.mxu1 %v6333_v52  ;;  %v2683_v21 = vld [vmem:[#allocation2 + $0x220] sm:$0xff] }
0x103c   :  { %v5545_v46 = vpop.f32.mrb[20].mxu1  ;;  %v5508_v55 = vpop.f32.mrb[35].mxu0  ;;  %6336 = vmatpush3.bf16.msra.mxu1 %v6333_v52 }
0x103d   :  { %v2612_v18 = vadd.f32 %v5544_v22, %v2537_v62  ;;  %v5509_v47 = vadd.f32 %v5508_v55, %v5507_v17  ;;  %v5546_v48 = vpop.f32.mrb[21].mxu1  ;;  %v2686_v22 = vld [vmem:[#allocation2 + $0x238] sm:$0xff]  ;;  %v2687_v62 = vld [vmem:[#allocation2 + $0x240] sm:$0xff] }
0x103e   :  { %v5547_v50 = vadd.f32 %v5546_v48, %v5545_v46  ;;  %v2690_v17 = vld [vmem:[#allocation2 + $0x258] sm:$0xff]  ;;  %v6337_v46 = vpack.c.bf16 %v2686_v22, %v2683_v21  ;;  %v2689_v48 = vld [vmem:[#allocation2 + $0x250] sm:$0xff] }
0x103f   :  { %v2542_v51 = vadd.f32 %v5509_v47, %v5332_v42  ;;  %v2620_v56 = vadd.f32 %v2612_v18, %v7207_v12  ;;  %v2672_v12 = vld [vmem:[#allocation2 + $0x1c8] sm:$0xff]  ;;  %v6311_v55 = vpack.c.bf16 %v2690_v17, %v2687_v62  ;;  %v2694_v18 = vld [vmem:[#allocation2 + $0x278] sm:$0xff]  ;;  %v2697_v47 = vld [vmem:[#allocation2 + $0x290] sm:$0xff] }
0x1040   :  { %v2688_v42 = vld [vmem:[#allocation2 + $0x248] sm:$0xff]  ;;  %6338 = vmatprep.subr.bf16.mxu1 %v6337_v46 }
0x1041   :  { %v2617_v58 = vadd.f32 %v5547_v50, %v2542_v51  ;;  %2624 = vadd.xlane.f32.xlu0 %v2620_v56  ;;  %v6309_v44 = vpack.c.bf16 %v2691_v43, %v2688_v42  ;;  %6340 = vmatpush3.bf16.msra.mxu1 %v6337_v46  ;;  %v6313_v50 = vpack.c.bf16 %v2697_v47, %v2694_v18  ;;  %v2692_v51 = vld [vmem:[#allocation2 + $0x268] sm:$0xff] }
0x1043   :  { %v2621_v60 = vadd.f32 %v2617_v58, %v7213_v14  ;;  %v6299_v14 = vpack.c.bf16 %v2672_v12, %v2669_v11  ;;  %v2696_v58 = vld [vmem:[#allocation2 + $0x288] sm:$0xff]  ;;  %v2709_v11 = vld [vmem:[#allocation2 + $0x2f0] sm:$0xff] }
0x1044   :  { %v6321_v12 = vpack.c.bf16 %v2709_v11, %v2706_v10 }
0x1045   :  { %2626 = vadd.xlane.f32.xlu1 %v2621_v60  ;;  %6300 = vmatpush1.bf16.msra.mxu0 %v6299_v14  ;;  %v2708_v14 = vld [vmem:[#allocation2 + $0x2e8] sm:$0xff] }
0x1046   :  { %6302 = vmatprep.subr.bf16.mxu0 %v6301_v29  ;;  %v6323_v16 = vpack.c.bf16 %v2708_v14, %v2705_v53  ;;  %v2707_v29 = vld [vmem:[#allocation2 + $0x2e0] sm:$0xff] }
0x1047   :  { %v6353_v20 = vpack.c.bf16 %v2710_v19, %v2707_v29 }
0x1049   :  { %6304 = vmatpush1.bf16.msra.mxu0 %v6303_v36 }
0x104a   :  { %6306 = vmatprep.subr.bf16.mxu0 %v6305_v57 }
0x104d   :  { %6308 = vmatpush1.bf16.msra.mxu0 %v6307_v8 }
0x104e   :  { %6310 = vmatprep.subr.bf16.mxu0 %v6309_v44 }
0x1051   :  { %6312 = vmatpush1.bf16.msra.mxu0 %v6311_v55 }
0x1052   :  { %6314 = vmatprep.subr.bf16.mxu0 %v6313_v50 }
0x10ce   :  { %v2625_v23 = vpop.xlane.xlu0 %2624 }
0x10cf   :  { %v2628_v33 = vmul.f32 0.0078125, %v2625_v23 }
0x10d1   :  { %v7288_v24 = vsub.f32 %v2620_v56, %v2628_v33  ;;  %v2693_v56 = vld [vmem:[#allocation2 + $0x270] sm:$0xff] }
0x10d2   :  { %v2627_v25 = vpop.xlane.xlu1 %2626  ;;  %v6315_v61 = vpack.c.bf16 %v2696_v58, %v2693_v56 }
0x10d3   :  { %v2629_v26 = vmul.f32 0.0078125, %v2627_v25  ;;  %v2632_v27 = vmul.f32 %v7288_v24, %v7288_v24 }
0x10d4   :  { %6316 = vmatpush1.bf16.msra.mxu0 %v6315_v61 }
0x10d5   :  { %v7292_v31 = vsub.f32 %v2621_v60, %v2629_v26  ;;  %2634 = vadd.xlane.f32.xlu0 %v2632_v27  ;;  %v6341_v60 = vpack.c.bf16 %v2692_v51, %v2689_v48  ;;  %6318 = vmatprep.subr.bf16.mxu0 %v6317_v0 }
0x10d7   :  { %v2633_v34 = vmul.f32 %v7292_v31, %v7292_v31  ;;  %6342 = vmatprep.subr.bf16.mxu1 %v6341_v60 }
0x10d8   :  { %6344 = vmatpush3.bf16.msra.mxu1 %v6341_v60  ;;  %6320 = vmatpush1.bf16.msra.mxu0 %v6319_v9 }
0x10d9   :  { %2636 = vadd.xlane.f32.xlu1 %v2633_v34  ;;  %6346 = vmatprep.subr.bf16.mxu1 %v6345_v6  ;;  %v5333_v34 = vld [vmem:[%s7723_s14] ss:$0 sm:$0xff] }
0x10da   :  { %6322 = vmatprep.subr.bf16.mxu0 %v6321_v12 }
0x10dc   :  { %6348 = vmatpush3.bf16.msra.mxu1 %v6345_v6  ;;  %6324 = vmatpush1.bf16.msra.mxu0 %v6323_v16 }
0x10dd   :  { %6350 = vmatprep.subr.bf16.mxu1 %v6349_v15  ;;  %5910 = vmatprep.subr.mxu0 %v6771_v4 }
0x10e0   :  { %6352 = vmatpush3.bf16.msra.mxu1 %v6349_v15 }
0x10e1   :  { %6354 = vmatprep.subr.bf16.mxu1 %v6353_v20 }
0x10e4   :  { %6356 = vmatpush3.bf16.msra.mxu1 %v6353_v20 }
0x10e5   :  { %5915 = vmatprep.subr.mxu1 %v6771_v4 }
0x1162   :  { %v2635_v30 = vpop.xlane.xlu0 %2634 }
0x1163   :  { %v2638_v36 = vmul.f32 0.0078125, %v2635_v30  ;;  %v7388_v30 = vld [vmem:[%s7735_s4] sm:$0xff] }
0x1165   :  { %v2640_v23 = vadd.f32 1e-12, %v2638_v36 }
0x1166   :  { %v2637_v33 = vpop.xlane.xlu1 %2636 }
0x1167   :  { %6630 = vrsqrt.f32 %v2640_v23  ;;  %v2639_v25 = vmul.f32 0.0078125, %v2637_v33 }
0x1169   :  { %v2641_v26 = vadd.f32 1e-12, %v2639_v25 }
0x116b   :  { %6632 = vrsqrt.f32 %v2641_v26 }
0x1171   :  { %v6631_v27 = vpop.eup %6630 }
0x1172   :  { %v2644_v35 = vmul.f32 %v6631_v27, %v7288_v24  ;;  %v5335_v24 = vld [vmem:[%s7714_s5 + $0x3] sm:$0x7] }
0x1173   :  { %v2870_v42 = vrot.slane %v5335_v24, %v6954_v39  ;;  %v2878_v44 = vrot.slane %v5335_v24, %v6958_v41 }
0x1174   :  { %v2652_v38 = vmul.f32 %v5333_v34, %v2644_v35 }
0x1175   :  { %v6633_v57 = vpop.eup %6632 }
0x1176   :  { %v7305_v7 = vadd.f32 %v5334_v28, %v2652_v38  ;;  %v2645_v40 = vmul.f32 %v6633_v57, %v7292_v31  ;;  %v2874_v31 = vrot.slane %v5335_v24, %v6948_v37 }
0x1178   :  { %2947 = vmatmul.mubr.f32.vlgmr.msra.gmra.mrb[36].mxu0 %v7305_v7  ;;  %5907 = vmatprep.mubr.f32.mxu1 %v7305_v7  ;;  %v2653_v3 = vmul.f32 %v5333_v34, %v2645_v40 }
0x1179   :  { %2952 = vmatprep.mubr.f32.mxu0 %v6771_v4 }
0x117a   :  { %v7311_v52 = vadd.f32 %v5334_v28, %v2653_v3 }
0x117c   :  { %2953 = vmatmul.mubr.f32.gmra.mrb[38].mxu0 %v7311_v52  ;;  %5908 = vmatmul.mubr.f32.vlgmr.msra.gmra.mrb[22].mxu1 %v7311_v52 }
0x117d   :  { %5912 = vmatprep.mubr.msk.f32.mxu0 %vm6772_vm0, %v6771_v4  ;;  %5917 = vmatprep.mubr.msk.f32.mxu1 %vm6772_vm0, %v6771_v4 }
0x124b   :  { %v2948_v8 = vpop.f32.mrb[36].mxu0 }
0x124c   :  { %v2950_v43 = vpop.f32.mrb[37].mxu0  ;;  %v7329_v17 = vadd.f32 %v2948_v8, %v2870_v42 }
0x124d   :  { %v7324_v21 = vadd.f32 %v2950_v43, %v2874_v31 }
0x124f   :  { %v2954_v22 = vpop.f32.mrb[38].mxu0  ;;  %v5909_v62 = vpop.f32.mrb[22].mxu1  ;;  %5911 = vmatpush3.xpose.msk.msra.mxu0 %vm509_vm1, %v7324_v21 }
0x1250   :  { %v2956_v46 = vpop.f32.mrb[39].mxu0  ;;  %v3025_v55 = vpop.f32.mrb[23].mxu1  ;;  %5920 = vmatprep.subr.mxu0 %v6771_v4  ;;  %v7341_v48 = vadd.f32 %v2954_v22, %v2870_v42  ;;  %v7346_v50 = vadd.f32 %v5909_v62, %v2878_v44 }
0x1251   :  { %v7332_v18 = vadd.f32 %v2956_v46, %v2874_v31  ;;  %v7334_v47 = vadd.f32 %v3025_v55, %v2878_v44 }
0x1252   :  { %5913 = vmatmul.mubr.msk.f32.vlgmr.msra.gmra.mrb[40].mxu0 %vm509_vm1, %v7329_v17 }
0x1253   :  { %5916 = vmatpush3.xpose.msk.msra.mxu1 %vm509_vm1, %v7332_v18  ;;  %5921 = vmatpush3.msra.mxu0 %v7334_v47 }
0x1254   :  { %5925 = vmatprep.subr.mxu1 %v6771_v4  ;;  %5922 = vmatprep.mubr.msk.f32.mxu0 %vm6772_vm0, %v6771_v4 }
0x1255   :  { %5930 = vmatprep.subr.mxu0 %v6771_v4 }
0x1256   :  { %5918 = vmatmul.mubr.msk.f32.vlgmr.msra.gmra.mrb[24].mxu1 %vm509_vm1, %v7341_v48 }
0x1257   :  { %5926 = vmatpush3.msra.mxu1 %v7346_v50  ;;  %5927 = vmatprep.mubr.msk.f32.mxu1 %vm6772_vm0, %v6771_v4 }
0x1258   :  { %5935 = vmatprep.subr.mxu1 %v6771_v4 }
0x1325   :  { %v3106_v51 = vpop.f32.mrb[40].mxu0 }
0x1326   :  { %v5914_v56 = vpop.f32.mrb[41].mxu0  ;;  %v3186_v20 = vmul.f32 0.17677669, %v3106_v51 }
0x1328   :  { %v3188_v36 = vadd.f32 %v7388_v30, %v3186_v20 }
0x1329   :  { %v3182_v58 = vpop.f32.mrb[24].mxu1 }
0x132a   :  { %v3187_v60 = vmul.f32 0.17677669, %v3182_v58  ;;  %v5919_v61 = vpop.f32.mrb[25].mxu1  ;;  %v3190_v23 = vsel %vm666_vm2, %v3188_v36, -inf }
0x132c   :  { %v3189_v54 = vadd.f32 %v7358_v49, %v3187_v60 }
0x132e   :  { %v3193_v63 = vsel %vm666_vm2, %v3189_v54, -inf }
0x132f   :  { %3194 = vmax.xlane.f32.xlu0 %v3193_v63 }
0x1345   :  { %3438 = vrot.lane.b32.xlu0 %v7332_v18, %s6773_s28 }
0x13bc   :  { %v3195_v0 = vpop.xlane.xlu0 %3194 }
0x13bd   :  { %v3197_v1 = vsub.f32 %v3189_v54, %v3195_v0 }
0x13bf   :  { %v3200_v2 = vmul.f32 1.442695, %v3197_v1 }
0x13c0   :  { %v3439_v13 = vpop.permute.xlu0 %3438 }
0x13c1   :  { %6634 = vpow2.f32 %v3200_v2 }
0x13cb   :  { %v6635_v5 = vpop.eup %6634 }
0x13cc   :  { %v3205_v6 = vsel %vm666_vm2, %v6635_v5, 0.0 }
0x13cd   :  { %3206 = vadd.xlane.f32.xlu1 %v3205_v6 }
0x13de   :  { %3436 = vrot.lane.b32.xlu1 %v7341_v48, %s6773_s28 }
0x145a   :  { %v3207_v9 = vpop.xlane.xlu1 %3206 }
0x145b   :  { %6636 = vrcp.f32 %v3207_v9 }
0x145e   :  { %v3437_v12 = vpop.permute.xlu1 %3436 }
0x1465   :  { %v6637_v10 = vpop.eup %6636 }
0x1466   :  { %v3211_v11 = vmul.f32 %v6637_v10, %v6635_v5 }
0x1468   :  { %5928 = vmatmul.mubr.msk.f32.vlgmr.msra.gmra.mrb[26].mxu1 %vm666_vm2, %v3211_v11 }
0x1469   :  { %5936 = vmatpush3.xpose.msk.msra.mxu1 %vm509_vm1, %v3439_v13  ;;  %5937 = vmatprep.mubr.msk.f32.mxu1 %vm6772_vm0, %v6771_v4 }
0x146a   :  { %5945 = vmatprep.subr.mxu1 %v6771_v4 }
0x146c   :  { %5938 = vmatmul.mubr.msk.f32.vlgmr.msra.gmra.mrb[28].mxu1 %vm509_vm1, %v3437_v12 }
0x146d   :  { %5947 = vmatprep.mubr.msk.f32.mxu1 %vm6772_vm0, %v6771_v4 }
0x153b   :  { %v7375_v59 = vpop.f32.mrb[26].mxu1 }
0x153c   :  { %v5929_v53 = vpop.f32.mrb[27].mxu1 }
0x153f   :  { %v3510_v14 = vpop.f32.mrb[28].mxu1 }
0x1540   :  { %v3515_v15 = vmul.f32 0.17677669, %v3510_v14  ;;  %v5939_v16 = vpop.f32.mrb[29].mxu1 }
0x1542   :  { %v3517_v29 = vadd.f32 %v7358_v49, %v3515_v15 }
0x1544   :  { %v3521_v19 = vsel %vm666_vm2, %v3517_v29, -inf }
0x1545   :  { %3522 = vmax.xlane.f32.xlu1 %v3521_v19 }
0x1556   :  { %3858 = vrot.lane.b32.xlu1 %v7324_v21, %s6774_s2 }
0x155a   :  { %3856 = vrot.lane.b32.xlu1 %v7329_v17, %s6774_s2 }
0x155e   :  { %3936 = vrot.lane.b32.xlu1 %v7332_v18, %s6774_s2 }
0x1582   :  { %3191 = vmax.xlane.f32.xlu1 %v3190_v23 }
0x1593   :  { %3358 = vrot.lane.b32.xlu1 %v7329_v17, %s6773_s28 }
0x15d2   :  { %v3523_v33 = vpop.xlane.xlu1 %3522 }
0x15d3   :  { %v3525_v25 = vsub.f32 %v3517_v29, %v3523_v33 }
0x15d5   :  { %v3528_v26 = vmul.f32 1.442695, %v3525_v25 }
0x15d6   :  { %v3859_v35 = vpop.permute.xlu1 %3858 }
0x15d7   :  { %6638 = vpow2.f32 %v3528_v26 }
0x15da   :  { %v3857_v28 = vpop.permute.xlu1 %3856 }
0x15de   :  { %v3937_v38 = vpop.permute.xlu1 %3936 }
0x15e1   :  { %v6639_v27 = vpop.eup %6638 }
0x15e2   :  { %v3533_v34 = vsel %vm666_vm2, %v6639_v27, 0.0 }
0x15e3   :  { %3534 = vadd.xlane.f32.xlu0 %v3533_v34 }
0x15f9   :  { %3618 = vrot.lane.b32.xlu0 %v7346_v50, %s6773_s28 }
0x15fd   :  { %3934 = vrot.lane.b32.xlu0 %v7341_v48, %s6774_s2 }
0x160f   :  { %v3192_v57 = vpop.xlane.xlu1 %3191 }
0x1610   :  { %v3196_v40 = vsub.f32 %v3188_v36, %v3192_v57 }
0x1612   :  { %v3198_v3 = vmul.f32 1.442695, %v3196_v40 }
0x1613   :  { %v3359_v56 = vpop.permute.xlu1 %3358 }
0x1614   :  { %6640 = vpow2.f32 %v3198_v3 }
0x161e   :  { %v6641_v24 = vpop.eup %6640 }
0x161f   :  { %v3202_v31 = vsel %vm666_vm2, %v6641_v24, 0.0 }
0x1620   :  { %3203 = vadd.xlane.f32.xlu0 %v3202_v31 }
0x1636   :  { %3360 = vrot.lane.b32.xlu0 %v7324_v21, %s6773_s28 }
0x1670   :  { %v3535_v8 = vpop.xlane.xlu0 %3534 }
0x1671   :  { %6642 = vrcp.f32 %v3535_v8 }
0x1674   :  { %v3619_v42 = vpop.permute.xlu0 %3618 }
0x1675   :  { %5946 = vmatpush3.msra.mxu1 %v3619_v42 }
0x1676   :  { %5972 = vmatprep.subr.mxu1 %v6771_v4 }
0x1678   :  { %v3935_v22 = vpop.permute.xlu0 %3934 }
0x167b   :  { %v6643_v43 = vpop.eup %6642 }
0x167c   :  { %v3539_v44 = vmul.f32 %v6643_v43, %v6639_v27 }
0x167e   :  { %5948 = vmatmul.mubr.msk.f32.vlgmr.msra.gmra.mrb[30].mxu1 %vm666_vm2, %v3539_v44 }
0x167f   :  { %5973 = vmatpush3.xpose.msk.msra.mxu1 %vm509_vm1, %v3859_v35  ;;  %5974 = vmatprep.mubr.msk.f32.mxu1 %vm6772_vm0, %v6771_v4 }
0x1680   :  { %5977 = vmatprep.subr.mxu1 %v6771_v4 }
0x1682   :  { %5975 = vmatmul.mubr.msk.f32.vlgmr.msra.gmra.mrb[32].mxu1 %vm509_vm1, %v3857_v28 }
0x1683   :  { %5978 = vmatpush3.xpose.msk.msra.mxu1 %vm509_vm1, %v3937_v38  ;;  %5979 = vmatprep.mubr.msk.f32.mxu1 %vm6772_vm0, %v6771_v4 }
0x1684   :  { %5982 = vmatprep.subr.mxu1 %v6771_v4 }
0x1686   :  { %5980 = vmatmul.mubr.msk.f32.vlgmr.msra.gmra.mrb[34].mxu1 %vm509_vm1, %v3935_v22 }
0x1687   :  { %5984 = vmatprep.mubr.msk.f32.mxu1 %vm6772_vm0, %v6771_v4 }
0x16ad   :  { %v3204_v62 = vpop.xlane.xlu0 %3203 }
0x16ae   :  { %6644 = vrcp.f32 %v3204_v62 }
0x16b1   :  { %v3361_v51 = vpop.permute.xlu0 %3360 }
0x16b8   :  { %v6645_v46 = vpop.eup %6644 }
0x16b9   :  { %v3210_v55 = vmul.f32 %v6645_v46, %v6641_v24 }
0x16bb   :  { %5923 = vmatmul.mubr.msk.f32.vlgmr.msra.gmra.mrb[42].mxu0 %vm666_vm2, %v3210_v55 }
0x16bc   :  { %5931 = vmatpush3.xpose.msk.msra.mxu0 %vm509_vm1, %v3361_v51  ;;  %5932 = vmatprep.mubr.msk.f32.mxu0 %vm6772_vm0, %v6771_v4 }
0x16bd   :  { %5940 = vmatprep.subr.mxu0 %v6771_v4 }
0x16bf   :  { %5933 = vmatmul.mubr.msk.f32.vlgmr.msra.gmra.mrb[44].mxu0 %vm509_vm1, %v3359_v56  ;;  %v5340_v56 = vld [vmem:[%s7715_s6 + $0xa0] sm:$0xff] }
0x16c0   :  { %5942 = vmatprep.mubr.msk.f32.mxu0 %vm6772_vm0, %v6771_v4 }
0x1751   :  { %v7424_v58 = vpop.f32.mrb[30].mxu1 }
0x1752   :  { %v5949_v60 = vpop.f32.mrb[31].mxu1 }
0x1753   :  { %v5341_v60 = vld [vmem:[%s7715_s6 + $0xa8] sm:$0xff] }
0x1755   :  { %v3930_v61 = vpop.f32.mrb[32].mxu1 }
0x1756   :  { %v4012_v54 = vmul.f32 0.17677669, %v3930_v61  ;;  %v5976_v63 = vpop.f32.mrb[33].mxu1  ;;  %v5342_v61 = vld [vmem:[%s7715_s6 + $0xb0] sm:$0xff] }
0x1757   :  { %v5343_v63 = vld [vmem:[%s7715_s6 + $0xb8] sm:$0xff] }
0x1758   :  { %v4014_v0 = vadd.f32 %v7388_v30, %v4012_v54  ;;  %v6357_v54 = vpack.c.bf16 %v5341_v60, %v5340_v56 }
0x1759   :  { %v4008_v1 = vpop.f32.mrb[34].mxu1 }
0x175a   :  { %v4013_v2 = vmul.f32 0.17677669, %v4008_v1  ;;  %v5981_v5 = vpop.f32.mrb[35].mxu1  ;;  %v4016_v6 = vsel %vm666_vm2, %v4014_v0, -inf  ;;  %v5336_v1 = vld [vmem:[%s7715_s6 + $0x80] sm:$0xff] }
0x175b   :  { %4017 = vmax.xlane.f32.xlu1 %v4016_v6 }
0x175c   :  { %v4015_v9 = vadd.f32 %v7358_v49, %v4013_v2  ;;  %v5337_v2 = vld [vmem:[%s7715_s6 + $0x88] sm:$0xff] }
0x175d   :  { %v6365_v5 = vpack.c.bf16 %v5337_v2, %v5336_v1 }
0x175e   :  { %v4019_v10 = vsel %vm666_vm2, %v4015_v9, -inf }
0x175f   :  { %4020 = vmax.xlane.f32.xlu0 %v4019_v10 }
0x176c   :  { %4038 = vrot.lane.b32.xlu1 %v7334_v47, %s6774_s2 }
0x1770   :  { %4275 = vrot.lane.b32.xlu1 %v7324_v21, %s6764_s23 }
0x1774   :  { %4273 = vrot.lane.b32.xlu1 %v7329_v17, %s6764_s23 }
0x1778   :  { %4353 = vrot.lane.b32.xlu1 %v7332_v18, %s6764_s23 }
0x178e   :  { %v7438_v11 = vpop.f32.mrb[42].mxu0 }
0x178f   :  { %v5924_v13 = vpop.f32.mrb[43].mxu0 }
0x1792   :  { %v3432_v12 = vpop.f32.mrb[44].mxu0 }
0x1793   :  { %v3514_v53 = vmul.f32 0.17677669, %v3432_v12  ;;  %v5934_v14 = vpop.f32.mrb[45].mxu0 }
0x1795   :  { %v3516_v15 = vadd.f32 %v7388_v30, %v3514_v53 }
0x1797   :  { %v3518_v16 = vsel %vm666_vm2, %v3516_v15, -inf }
0x179c   :  { %3519 = vmax.xlane.f32.xlu1 %v3518_v16 }
0x17e8   :  { %v4018_v29 = vpop.xlane.xlu1 %4017 }
0x17e9   :  { %v4022_v19 = vsub.f32 %v4014_v0, %v4018_v29  ;;  %v6361_v0 = vpack.c.bf16 %v5343_v63, %v5342_v61 }
0x17eb   :  { %v4024_v21 = vmul.f32 1.442695, %v4022_v19 }
0x17ec   :  { %v4021_v20 = vpop.xlane.xlu0 %4020  ;;  %v4039_v36 = vpop.permute.xlu1 %4038 }
0x17ed   :  { %6646 = vpow2.f32 %v4024_v21  ;;  %v4023_v17 = vsub.f32 %v4015_v9, %v4021_v20  ;;  %5983 = vmatpush3.msra.mxu1 %v4039_v36 }
0x17ee   :  { %5987 = vmatprep.subr.mxu1 %v6771_v4 }
0x17ef   :  { %v4026_v18 = vmul.f32 1.442695, %v4023_v17  ;;  %v5338_v17 = vld [vmem:[%s7715_s6 + $0x90] sm:$0xff] }
0x17f0   :  { %v4276_v27 = vpop.permute.xlu1 %4275 }
0x17f1   :  { %6648 = vpow2.f32 %v4026_v18  ;;  %v5339_v18 = vld [vmem:[%s7715_s6 + $0x98] sm:$0xff] }
0x17f4   :  { %v4274_v34 = vpop.permute.xlu1 %4273 }
0x17f7   :  { %v6647_v23 = vpop.eup %6646 }
0x17f8   :  { %v4028_v33 = vsel %vm666_vm2, %v6647_v23, 0.0  ;;  %v4354_v35 = vpop.permute.xlu1 %4353 }
0x17f9   :  { %4029 = vadd.xlane.f32.xlu0 %v4028_v33 }
0x17fb   :  { %v6649_v25 = vpop.eup %6648 }
0x17fc   :  { %v4031_v26 = vsel %vm666_vm2, %v6649_v25, 0.0 }
0x17fd   :  { %4032 = vadd.xlane.f32.xlu0 %v4031_v26 }
0x1813   :  { %4114 = vrot.lane.b32.xlu0 %v7346_v50, %s6774_s2 }
0x1817   :  { %4351 = vrot.lane.b32.xlu0 %v7341_v48, %s6764_s23 }
0x1829   :  { %v3520_v28 = vpop.xlane.xlu1 %3519 }
0x182a   :  { %v3524_v38 = vsub.f32 %v3516_v15, %v3520_v28 }
0x182c   :  { %v3526_v57 = vmul.f32 1.442695, %v3524_v38 }
0x182e   :  { %6650 = vpow2.f32 %v3526_v57 }
0x1838   :  { %v6651_v40 = vpop.eup %6650 }
0x1839   :  { %v3530_v3 = vsel %vm666_vm2, %v6651_v40, 0.0 }
0x183a   :  { %3531 = vadd.xlane.f32.xlu0 %v3530_v3 }
0x1850   :  { %3541 = vrot.lane.b32.xlu0 %v7334_v47, %s6773_s28 }
0x1854   :  { %4531 = vrot.lane.b32.xlu0 %v7346_v50, %s6764_s23 }
0x1886   :  { %v4030_v24 = vpop.xlane.xlu0 %4029 }
0x1887   :  { %6652 = vrcp.f32 %v4030_v24 }
0x188a   :  { %v4033_v48 = vpop.xlane.xlu0 %4032 }
0x188b   :  { %6654 = vrcp.f32 %v4033_v48 }
0x188e   :  { %v4115_v42 = vpop.permute.xlu0 %4114 }
0x1891   :  { %v6653_v31 = vpop.eup %6652 }
0x1892   :  { %v4036_v8 = vmul.f32 %v6653_v31, %v6647_v23  ;;  %v4352_v50 = vpop.permute.xlu0 %4351  ;;  %v6369_v23 = vpack.c.bf16 %v5339_v18, %v5338_v17  ;;  %v2742_v17 = vld [vmem:[#allocation4 + $0x248] sm:$0xff] }
0x1894   :  { %5985 = vmatmul.mubr.msk.f32.vlgmr.msra.gmra.mrb[36].mxu1 %vm666_vm2, %v4036_v8  ;;  %v5348_v8 = vld [vmem:[%s7715_s6 + $0xe0] sm:$0xff] }
0x1895   :  { %v6655_v43 = vpop.eup %6654  ;;  %5988 = vmatpush3.msra.mxu1 %v4115_v42  ;;  %5989 = vmatprep.mubr.msk.f32.mxu1 %vm6772_vm0, %v6771_v4  ;;  %v5349_v42 = vld [vmem:[%s7715_s6 + $0xe8] sm:$0xff] }
0x1896   :  { %v4037_v44 = vmul.f32 %v6655_v43, %v6649_v25  ;;  %6003 = vmatprep.subr.mxu1 %v6771_v4  ;;  %v5345_v25 = vld [vmem:[%s7715_s6 + $0xc8] sm:$0xff] }
0x1898   :  { %5990 = vmatmul.mubr.msk.f32.vlgmr.msra.gmra.mrb[38].mxu1 %vm666_vm2, %v4037_v44  ;;  %v6381_v44 = vpack.c.bf16 %v5349_v42, %v5348_v8 }
0x1899   :  { %6005 = vmatprep.mubr.msk.f32.mxu1 %vm6772_vm0, %v6771_v4 }
0x189c   :  { %6004 = vmatpush3.xpose.msk.msra.mxu1 %vm509_vm1, %v4276_v27  ;;  %v5346_v27 = vld [vmem:[%s7715_s6 + $0xd0] sm:$0xff] }
0x189d   :  { %6008 = vmatprep.subr.mxu1 %v6771_v4 }
0x189f   :  { %6006 = vmatmul.mubr.msk.f32.vlgmr.msra.gmra.mrb[40].mxu1 %vm509_vm1, %v4274_v34  ;;  %v5347_v34 = vld [vmem:[%s7715_s6 + $0xd8] sm:$0xff] }
0x18a0   :  { %6009 = vmatpush3.xpose.msk.msra.mxu1 %vm509_vm1, %v4354_v35  ;;  %6010 = vmatprep.mubr.msk.f32.mxu1 %vm6772_vm0, %v6771_v4  ;;  %v6377_v35 = vpack.c.bf16 %v5347_v34, %v5346_v27  ;;  %v2747_v34 = vld [vmem:[#allocation4 + $0x270] sm:$0xff] }
0x18a1   :  { %6018 = vmatprep.subr.mxu1 %v6771_v4 }
0x18a3   :  { %6011 = vmatmul.mubr.msk.f32.vlgmr.msra.gmra.mrb[42].mxu1 %vm509_vm1, %v4352_v50 }
0x18a4   :  { %6020 = vmatprep.mubr.msk.f32.mxu1 %vm6772_vm0, %v6771_v4 }
0x18c7   :  { %v3532_v22 = vpop.xlane.xlu0 %3531 }
0x18c8   :  { %6656 = vrcp.f32 %v3532_v22 }
0x18cb   :  { %v3542_v62 = vpop.permute.xlu0 %3541 }
0x18cc   :  { %5941 = vmatpush3.msra.mxu0 %v3542_v62 }
0x18cd   :  { %6358 = vmatprep.subr.bf16.mxu0 %v6357_v54 }
0x18cf   :  { %v4532_v46 = vpop.permute.xlu0 %4531 }
0x18d0   :  { %6019 = vmatpush3.msra.mxu1 %v4532_v46 }
0x18d2   :  { %v6657_v55 = vpop.eup %6656 }
0x18d3   :  { %v3538_v51 = vmul.f32 %v6657_v55, %v6651_v40  ;;  %v5350_v55 = vld [vmem:[%s7715_s6 + $0xf0] sm:$0xff] }
0x18d5   :  { %5943 = vmatmul.mubr.msk.f32.vlgmr.msra.gmra.mrb[46].mxu0 %vm666_vm2, %v3538_v51  ;;  %v5351_v51 = vld [vmem:[%s7715_s6 + $0xf8] sm:$0xff] }
0x18d6   :  { %6360 = vmatpush3.bf16.msra.mxu0 %v6357_v54  ;;  %v6385_v56 = vpack.c.bf16 %v5351_v51, %v5350_v55  ;;  %v2758_v55 = vld [vmem:[#allocation4 + $0x2c8] sm:$0xff] }
0x18d7   :  { %6362 = vmatprep.subr.bf16.mxu0 %v6361_v0  ;;  %v2762_v51 = vld [vmem:[#allocation4 + $0x2e8] sm:$0xff] }
0x18da   :  { %6364 = vmatpush3.bf16.msra.mxu0 %v6361_v0  ;;  %v5387_v0 = vld [vmem:[%s7716_s7 + $0x1] ss:$0 sm:$0xff] }
0x18db   :  { %6366 = vmatprep.subr.bf16.mxu0 %v6365_v5 }
0x1967   :  { %v4110_v6 = vpop.f32.mrb[36].mxu1 }
0x1968   :  { %v5986_v9 = vpop.f32.mrb[37].mxu1 }
0x196b   :  { %v4186_v10 = vpop.f32.mrb[38].mxu1 }
0x196c   :  { %v5991_v13 = vpop.f32.mrb[39].mxu1 }
0x196d   :  { %v2734_v13 = vld [vmem:[#allocation4 + $0x208] sm:$0xff] }
0x1972   :  { %v4347_v12 = vpop.f32.mrb[40].mxu1 }
0x1973   :  { %v4429_v53 = vmul.f32 0.17677669, %v4347_v12  ;;  %v6007_v14 = vpop.f32.mrb[41].mxu1  ;;  %v2738_v12 = vld [vmem:[#allocation4 + $0x228] sm:$0xff] }
0x1974   :  { %v6389_v14 = vpack.c.bf16 %v2738_v12, %v2734_v13  ;;  %v2768_v13 = vld [vmem:[#allocation4 + $0x318] sm:$0xff] }
0x1975   :  { %v4431_v15 = vadd.f32 %v7388_v30, %v4429_v53  ;;  %v2736_v53 = vld [vmem:[#allocation4 + $0x218] sm:$0xff] }
0x1976   :  { %v4425_v16 = vpop.f32.mrb[42].mxu1  ;;  %6390 = vmatprep.subr.bf16.mxu1 %v6389_v14  ;;  %v2765_v14 = vld [vmem:[#allocation4 + $0x300] sm:$0xff] }
0x1977   :  { %v4430_v29 = vmul.f32 0.17677669, %v4425_v16  ;;  %v6012_v19 = vpop.f32.mrb[43].mxu1  ;;  %v4433_v21 = vsel %vm666_vm2, %v4431_v15, -inf  ;;  %v2733_v16 = vld [vmem:[#allocation4 + $0x200] sm:$0xff] }
0x1978   :  { %4434 = vmax.xlane.f32.xlu1 %v4433_v21 }
0x1979   :  { %v4432_v20 = vadd.f32 %v7358_v49, %v4430_v29  ;;  %v5344_v49 = vld [vmem:[%s7715_s6 + $0xc0] sm:$0xff] }
0x197a   :  { %v6373_v26 = vpack.c.bf16 %v5345_v25, %v5344_v49  ;;  %v2737_v29 = vld [vmem:[#allocation4 + $0x220] sm:$0xff] }
0x197b   :  { %v4436_v36 = vsel %vm666_vm2, %v4432_v20, -inf  ;;  %v6391_v21 = vpack.c.bf16 %v2737_v29, %v2733_v16  ;;  %v2741_v49 = vld [vmem:[#allocation4 + $0x240] sm:$0xff] }
0x197c   :  { %4437 = vmax.xlane.f32.xlu1 %v4436_v36  ;;  %v2739_v36 = vld [vmem:[#allocation4 + $0x230] sm:$0xff]  ;;  %v2745_v25 = vld [vmem:[#allocation4 + $0x260] sm:$0xff] }
0x197d   :  { %v6395_v27 = vpack.c.bf16 %v2745_v25, %v2741_v49  ;;  %v2775_v25 = vld [vmem:[#allocation4 + $0x350] sm:$0xff] }
0x19a8   :  { %v3613_v30 = vpop.f32.mrb[46].mxu0 }
0x19a9   :  { %v5944_v33 = vpop.f32.mrb[47].mxu0  ;;  %5958 = vmatprep.mubr.msk.f32.mxu0 %vm509_vm1, %v3613_v30  ;;  %v2746_v30 = vld [vmem:[#allocation4 + $0x268] sm:$0xff] }
0x19aa   :  { %5959 = vmatmul.mubr.msk.f32.vlgmr.msra.gmra.mrb[48].mxu0 %vm509_vm1, %v7424_v58 }
0x19ab   :  { %6368 = vmatpush3.bf16.msra.mxu0 %v6365_v5  ;;  %5969 = vmatprep.mubr.msk.f32.mxu0 %vm509_vm1, %v7438_v11 }
0x19ac   :  { %6370 = vmatprep.subr.bf16.mxu0 %v6369_v23 }
0x19af   :  { %6372 = vmatpush3.bf16.msra.mxu0 %v6369_v23  ;;  %v2748_v23 = vld [vmem:[#allocation4 + $0x278] sm:$0xff] }
0x19b0   :  { %6374 = vmatprep.subr.bf16.mxu0 %v6373_v26 }
0x19b2   :  { %5970 = vmatmul.mubr.msk.f32.vlgmr.msra.gmra.mrb[48].mxu0 %vm509_vm1, %v7375_v59 }
0x19b3   :  { %6376 = vmatpush3.bf16.msra.mxu0 %v6373_v26  ;;  %6000 = vmatprep.mubr.msk.f32.mxu0 %vm509_vm1, %v4110_v6  ;;  %v2743_v26 = vld [vmem:[#allocation4 + $0x250] sm:$0xff] }
0x19b4   :  { %6378 = vmatprep.subr.bf16.mxu0 %v6377_v35 }
0x19b7   :  { %6380 = vmatpush3.bf16.msra.mxu0 %v6377_v35  ;;  %v2750_v35 = vld [vmem:[#allocation4 + $0x288] sm:$0xff] }
0x19b8   :  { %6013 = vmatprep.subr.mxu0 %v6771_v4 }
0x19ba   :  { %6001 = vmatmul.mubr.msk.f32.vlgmr.msra.gmra.mrb[48].mxu0 %vm509_vm1, %v4186_v10 }
0x19bb   :  { %6015 = vmatprep.mubr.msk.f32.mxu0 %vm6772_vm0, %v6771_v4 }
0x1a05   :  { %v4435_v58 = vpop.xlane.xlu1 %4434 }
0x1a06   :  { %v4439_v11 = vsub.f32 %v4431_v15, %v4435_v58  ;;  %v2740_v15 = vld [vmem:[#allocation4 + $0x238] sm:$0xff]  ;;  %v2754_v58 = vld [vmem:[#allocation4 + $0x2a8] sm:$0xff] }
0x1a07   :  { %v6421_v19 = vpack.c.bf16 %v2740_v15, %v2736_v53  ;;  %v2772_v53 = vld [vmem:[#allocation4 + $0x338] sm:$0xff]  ;;  %v2769_v15 = vld [vmem:[#allocation4 + $0x320] sm:$0xff] }
0x1a08   :  { %v4441_v28 = vmul.f32 1.442695, %v4439_v11  ;;  %v6427_v11 = vpack.c.bf16 %v2747_v34, %v2743_v26  ;;  %v6437_v16 = vpack.c.bf16 %v2772_v53, %v2768_v13  ;;  %v6407_v29 = vpack.c.bf16 %v2769_v15, %v2765_v14  ;;  %v2779_v26 = vld [vmem:[#allocation4 + $0x370] sm:$0xff] }
0x1a09   :  { %v4438_v38 = vpop.xlane.xlu1 %4437  ;;  %v6443_v34 = vpack.c.bf16 %v2779_v26, %v2775_v25  ;;  %v2851_v25 = vld [vmem:[#allocation6 + $0x398] sm:$0xff]  ;;  %v2802_v26 = vld [vmem:[#allocation6 + $0x210] sm:$0xff] }
0x1a0a   :  { %6658 = vpow2.f32 %v4441_v28  ;;  %v4440_v57 = vsub.f32 %v4432_v20, %v4438_v38  ;;  %v2735_v20 = vld [vmem:[#allocation4 + $0x210] sm:$0xff]  ;;  %v6397_v28 = vpack.c.bf16 %v2754_v58, %v2750_v35  ;;  %v2752_v38 = vld [vmem:[#allocation4 + $0x298] sm:$0xff]  ;;  %v2786_v35 = vld [vmem:[#allocation4 + $0x3a8] sm:$0xff] }
0x1a0b   :  { %v6423_v18 = vpack.c.bf16 %v2739_v36, %v2735_v20  ;;  %v2774_v36 = vld [vmem:[#allocation4 + $0x348] sm:$0xff]  ;;  %v2784_v58 = vld [vmem:[#allocation4 + $0x398] sm:$0xff] }
0x1a0c   :  { %v4443_v40 = vmul.f32 1.442695, %v4440_v57  ;;  %v2756_v57 = vld [vmem:[#allocation4 + $0x2b8] sm:$0xff] }
0x1a0e   :  { %6660 = vpow2.f32 %v4443_v40  ;;  %v2749_v40 = vld [vmem:[#allocation4 + $0x280] sm:$0xff] }
0x1a14   :  { %v6659_v59 = vpop.eup %6658 }
0x1a15   :  { %v4445_v3 = vsel %vm666_vm2, %v6659_v59, 0.0 }
0x1a16   :  { %4446 = vadd.xlane.f32.xlu1 %v4445_v3  ;;  %v2753_v3 = vld [vmem:[#allocation4 + $0x2a0] sm:$0xff] }
0x1a18   :  { %v6661_v24 = vpop.eup %6660 }
0x1a19   :  { %v4448_v48 = vsel %vm666_vm2, %v6661_v24, 0.0 }
0x1a1a   :  { %4449 = vadd.xlane.f32.xlu1 %v4448_v48  ;;  %v2755_v48 = vld [vmem:[#allocation4 + $0x2b0] sm:$0xff] }
0x1a2b   :  { %4455 = vrot.lane.b32.xlu1 %v7334_v47, %s6764_s23 }
0x1aa3   :  { %v4447_v31 = vpop.xlane.xlu1 %4446 }
0x1aa4   :  { %6662 = vrcp.f32 %v4447_v31  ;;  %v6399_v31 = vpack.c.bf16 %v2753_v3, %v2749_v40  ;;  %v2785_v40 = vld [vmem:[#allocation4 + $0x3a0] sm:$0xff] }
0x1aa7   :  { %v4450_v43 = vpop.xlane.xlu1 %4449 }
0x1aa8   :  { %6664 = vrcp.f32 %v4450_v43 }
0x1aab   :  { %v4456_v50 = vpop.permute.xlu1 %4455 }
0x1aac   :  { %6014 = vmatpush3.msra.mxu0 %v4456_v50 }
0x1aad   :  { %6382 = vmatprep.subr.bf16.mxu0 %v6381_v44 }
0x1aae   :  { %v6663_v22 = vpop.eup %6662 }
0x1aaf   :  { %v4453_v62 = vmul.f32 %v6663_v22, %v6659_v59  ;;  %v6429_v59 = vpack.c.bf16 %v2756_v57, %v2752_v38  ;;  %v2781_v57 = vld [vmem:[#allocation4 + $0x380] sm:$0xff] }
0x1ab0   :  { %v6415_v3 = vpack.c.bf16 %v2785_v40, %v2781_v57  ;;  %v2821_v57 = vld [vmem:[#allocation6 + $0x2a8] sm:$0xff]  ;;  %v2852_v40 = vld [vmem:[#allocation6 + $0x3a0] sm:$0xff] }
0x1ab1   :  { %6016 = vmatmul.mubr.msk.f32.vlgmr.msra.gmra.mrb[50].mxu0 %vm666_vm2, %v4453_v62 }
0x1ab2   :  { %v6665_v47 = vpop.eup %6664  ;;  %6384 = vmatpush3.bf16.msra.mxu0 %v6381_v44 }
0x1ab3   :  { %v4454_v46 = vmul.f32 %v6665_v47, %v6661_v24  ;;  %6386 = vmatprep.subr.bf16.mxu0 %v6385_v56  ;;  %v2751_v24 = vld [vmem:[#allocation4 + $0x290] sm:$0xff] }
0x1ab4   :  { %v6431_v8 = vpack.c.bf16 %v2755_v48, %v2751_v24  ;;  %v2787_v24 = vld [vmem:[#allocation4 + $0x3b0] sm:$0xff]  ;;  %v2790_v48 = vld [vmem:[#allocation4 + $0x3c8] sm:$0xff] }
0x1ab5   :  { %6021 = vmatmul.mubr.msk.f32.vlgmr.msra.gmra.mrb[44].mxu1 %vm666_vm2, %v4454_v46 }
0x1ab6   :  { %4827 = vmatprep.mubr.f32.mxu1 %v6771_v4  ;;  %6388 = vmatpush3.bf16.msra.mxu0 %v6385_v56  ;;  %v2760_v56 = vld [vmem:[#allocation4 + $0x2d8] sm:$0xff] }
0x1ab7   :  { %6422 = vmatprep.subr.bf16.mxu0 %v6421_v19  ;;  %6392 = vmatpush1.bf16.msra.mxu1 %v6391_v21  ;;  %v2767_v19 = vld [vmem:[#allocation4 + $0x310] sm:$0xff] }
0x1ab8   :  { %v2771_v21 = vld [vmem:[#allocation4 + $0x330] sm:$0xff] }
0x1ab9   :  { %v6439_v20 = vpack.c.bf16 %v2771_v21, %v2767_v19  ;;  %v2848_v19 = vld [vmem:[#allocation6 + $0x380] sm:$0xff] }
0x1b84   :  { %v4527_v60 = vpop.f32.mrb[50].mxu0 }
0x1b85   :  { %v6017_v61 = vpop.f32.mrb[51].mxu0  ;;  %6031 = vmatprep.mubr.msk.f32.mxu0 %vm509_vm1, %v4527_v60  ;;  %v6401_v60 = vpack.c.bf16 %v2762_v51, %v2758_v55  ;;  %v2791_v55 = vld [vmem:[#allocation4 + $0x3d0] sm:$0xff] }
0x1b86   :  { %v2764_v61 = vld [vmem:[#allocation4 + $0x2f8] sm:$0xff]  ;;  %v2795_v51 = vld [vmem:[#allocation4 + $0x3f0] sm:$0xff] }
0x1b88   :  { %v4603_v54 = vpop.f32.mrb[44].mxu1 }
0x1b89   :  { %v6022_v63 = vpop.f32.mrb[45].mxu1  ;;  %6032 = vmatmul.mubr.msk.f32.vlgmr.msra.gmra.mrb[48].mxu0 %vm509_vm1, %v4603_v54  ;;  %v2757_v54 = vld [vmem:[#allocation4 + $0x2c0] sm:$0xff] }
0x1b8a   :  { %4904 = vmatprep.mubr.f32.mxu0 %v6771_v4  ;;  %6424 = vmatpush1.bf16.msra.mxu0 %v6423_v18  ;;  %v2761_v63 = vld [vmem:[#allocation4 + $0x2e0] sm:$0xff]  ;;  %v2776_v18 = vld [vmem:[#allocation4 + $0x358] sm:$0xff] }
0x1c5c   :  { %v6033_v1 = vpop.f32.mrb[48].mxu0 }
0x1c5d   :  { %v4697_v2 = vadd.f32 %v6033_v1, %v5387_v0  ;;  %v4679_v5 = vpop.f32.mrb[49].mxu0  ;;  %v6403_v1 = vpack.c.bf16 %v2761_v63, %v2757_v54 }
0x1c5e   :  { %v4696_v6 = vadd.f32 %v5387_v0, %v4679_v5  ;;  %v6433_v0 = vpack.c.bf16 %v2764_v61, %v2760_v56  ;;  %v2763_v5 = vld [vmem:[#allocation4 + $0x2f0] sm:$0xff] }
0x1c5f   :  { %v4699_v9 = vadd.f32 %v4697_v2, %v7311_v52  ;;  %v2744_v52 = vld [vmem:[#allocation4 + $0x258] sm:$0xff]  ;;  %v2759_v2 = vld [vmem:[#allocation4 + $0x2d0] sm:$0xff] }
0x1c60   :  { %v4698_v10 = vadd.f32 %v4696_v6, %v7305_v7  ;;  %v6393_v7 = vpack.c.bf16 %v2746_v30, %v2742_v17  ;;  %v6425_v33 = vpack.c.bf16 %v2748_v23, %v2744_v52  ;;  %v6435_v6 = vpack.c.bf16 %v2763_v5, %v2759_v2  ;;  %v2778_v17 = vld [vmem:[#allocation4 + $0x368] sm:$0xff]  ;;  %v2780_v52 = vld [vmem:[#allocation4 + $0x378] sm:$0xff]  ;;  %v2773_v23 = vld [vmem:[#allocation4 + $0x340] sm:$0xff] }
0x1c61   :  { %4706 = vadd.xlane.f32.xlu1 %v4699_v9  ;;  %v6409_v30 = vpack.c.bf16 %v2778_v17, %v2774_v36  ;;  %v2801_v36 = vld [vmem:[#allocation6 + $0x208] sm:$0xff] }
0x1c62   :  { %4704 = vadd.xlane.f32.xlu0 %v4698_v10  ;;  %6394 = vmatprep.subr.bf16.mxu1 %v6393_v7  ;;  %v2777_v7 = vld [vmem:[#allocation4 + $0x360] sm:$0xff] }
0x1c63   :  { %6426 = vmatprep.subr.bf16.mxu0 %v6425_v33  ;;  %6396 = vmatpush1.bf16.msra.mxu1 %v6395_v27  ;;  %v6441_v33 = vpack.c.bf16 %v2780_v52, %v2776_v18  ;;  %v6411_v49 = vpack.c.bf16 %v2777_v7, %v2773_v23  ;;  %v2782_v27 = vld [vmem:[#allocation4 + $0x388] sm:$0xff]  ;;  %v2819_v7 = vld [vmem:[#allocation6 + $0x298] sm:$0xff] }
0x1c64   :  { %6428 = vmatpush1.bf16.msra.mxu0 %v6427_v11  ;;  %6398 = vmatprep.subr.bf16.mxu1 %v6397_v28  ;;  %v2788_v11 = vld [vmem:[#allocation4 + $0x3b8] sm:$0xff]  ;;  %v6413_v28 = vpack.c.bf16 %v2786_v35, %v2782_v27  ;;  %v2833_v52 = vld [vmem:[#allocation6 + $0x308] sm:$0xff] }
0x1c65   :  { %6430 = vmatprep.subr.bf16.mxu0 %v6429_v59  ;;  %v6445_v38 = vpack.c.bf16 %v2788_v11, %v2784_v58  ;;  %v2783_v59 = vld [vmem:[#allocation4 + $0x390] sm:$0xff]  ;;  %v2803_v27 = vld [vmem:[#allocation6 + $0x218] sm:$0xff] }
0x1c66   :  { %v6459_v35 = vpack.c.bf16 %v2803_v27, %v2802_v26  ;;  %v2834_v58 = vld [vmem:[#allocation6 + $0x310] sm:$0xff]  ;;  %v2835_v11 = vld [vmem:[#allocation6 + $0x318] sm:$0xff]  ;;  %v2860_v26 = vld [vmem:[#allocation6 + $0x3e0] sm:$0xff] }
0x1c67   :  { %6400 = vmatpush1.bf16.msra.mxu1 %v6399_v31  ;;  %v2794_v31 = vld [vmem:[#allocation4 + $0x3e8] sm:$0xff] }
0x1c68   :  { %6432 = vmatpush1.bf16.msra.mxu0 %v6431_v8  ;;  %6402 = vmatprep.subr.bf16.mxu1 %v6401_v60  ;;  %v6447_v8 = vpack.c.bf16 %v2787_v24, %v2783_v59  ;;  %v6451_v60 = vpack.c.bf16 %v2795_v51, %v2791_v55  ;;  %v2804_v24 = vld [vmem:[#allocation6 + $0x220] sm:$0xff]  ;;  %v2855_v51 = vld [vmem:[#allocation6 + $0x3b8] sm:$0xff] }
0x1c69   :  { %6434 = vmatprep.subr.bf16.mxu0 %v6433_v0 }
0x1c6b   :  { %6404 = vmatpush1.bf16.msra.mxu1 %v6403_v1 }
0x1c6c   :  { %6436 = vmatpush1.bf16.msra.mxu0 %v6435_v6  ;;  %v5390_v6 = vld [vmem:[%s7717_s8 + $0x1] ss:$0 sm:$0xff] }
0x1c6d   :  { %6438 = vmatprep.subr.bf16.mxu0 %v6437_v16  ;;  %v2816_v16 = vld [vmem:[#allocation6 + $0x280] sm:$0xff] }
0x1c70   :  { %6440 = vmatpush1.bf16.msra.mxu0 %v6439_v20  ;;  %v2800_v20 = vld [vmem:[#allocation6 + $0x200] sm:$0xff] }
0x1c71   :  { %6442 = vmatprep.subr.bf16.mxu0 %v6441_v33  ;;  %v6455_v18 = vpack.c.bf16 %v2801_v36, %v2800_v20  ;;  %v2850_v33 = vld [vmem:[#allocation6 + $0x390] sm:$0xff] }
0x1c72   :  { %v2858_v20 = vld [vmem:[#allocation6 + $0x3d0] sm:$0xff] }
0x1c74   :  { %6444 = vmatpush1.bf16.msra.mxu0 %v6443_v34  ;;  %v6489_v34 = vpack.c.bf16 %v2851_v25, %v2850_v33  ;;  %v2829_v25 = vld [vmem:[#allocation6 + $0x2e8] sm:$0xff] }
0x1c75   :  { %6446 = vmatprep.subr.bf16.mxu0 %v6445_v38  ;;  %v2820_v38 = vld [vmem:[#allocation6 + $0x2a0] sm:$0xff] }
0x1c76   :  { %v6461_v59 = vpack.c.bf16 %v2821_v57, %v2820_v38  ;;  %v2844_v38 = vld [vmem:[#allocation6 + $0x360] sm:$0xff]  ;;  %v2845_v57 = vld [vmem:[#allocation6 + $0x368] sm:$0xff] }
0x1c78   :  { %6448 = vmatpush1.bf16.msra.mxu0 %v6447_v8 }
0x1cee   :  { %v4707_v42 = vpop.xlane.xlu1 %4706 }
0x1cef   :  { %v4705_v43 = vpop.xlane.xlu0 %4704  ;;  %v4709_v44 = vmul.f32 0.0078125, %v4707_v42  ;;  %v6417_v42 = vpack.c.bf16 %v2794_v31, %v2790_v48  ;;  %v2805_v48 = vld [vmem:[#allocation6 + $0x228] sm:$0xff] }
0x1cf0   :  { %v4708_v50 = vmul.f32 0.0078125, %v4705_v43  ;;  %v2792_v43 = vld [vmem:[#allocation4 + $0x3d8] sm:$0xff]  ;;  %v6463_v8 = vpack.c.bf16 %v2805_v48, %v2804_v24  ;;  %v2862_v24 = vld [vmem:[#allocation6 + $0x3f0] sm:$0xff] }
0x1cf1   :  { %v7553_v62 = vsub.f32 %v4699_v9, %v4709_v44  ;;  %v2766_v9 = vld [vmem:[#allocation4 + $0x308] sm:$0xff]  ;;  %v2796_v44 = vld [vmem:[#allocation4 + $0x3f8] sm:$0xff] }
0x1cf2   :  { %v7551_v22 = vsub.f32 %v4698_v10, %v4708_v50  ;;  %v2770_v10 = vld [vmem:[#allocation4 + $0x328] sm:$0xff]  ;;  %v2789_v50 = vld [vmem:[#allocation4 + $0x3c0] sm:$0xff] }
0x1cf3   :  { %v4713_v46 = vmul.f32 %v7553_v62, %v7553_v62  ;;  %v6405_v12 = vpack.c.bf16 %v2770_v10, %v2766_v9  ;;  %v5391_v10 = vld [vmem:[%s7718_s9 + $0x1] ss:$0 sm:$0xff] }
0x1cf4   :  { %v4712_v47 = vmul.f32 %v7551_v22, %v7551_v22 }
0x1cf5   :  { %6406 = vmatprep.subr.bf16.mxu1 %v6405_v12 }
0x1cf6   :  { %4714 = vadd.xlane.f32.xlu0 %v4712_v47  ;;  %6408 = vmatpush1.bf16.msra.mxu1 %v6407_v29  ;;  %v6449_v47 = vpack.c.bf16 %v2796_v44, %v2792_v43  ;;  %v2817_v29 = vld [vmem:[#allocation6 + $0x288] sm:$0xff] }
0x1cf7   :  { %6410 = vmatprep.subr.bf16.mxu1 %v6409_v30  ;;  %v6453_v21 = vpack.c.bf16 %v2817_v29, %v2816_v16  ;;  %v2832_v30 = vld [vmem:[#allocation6 + $0x300] sm:$0xff]  ;;  %v2837_v43 = vld [vmem:[#allocation6 + $0x328] sm:$0xff] }
0x1cf8   :  { %6450 = vmatprep.subr.bf16.mxu0 %v6449_v47  ;;  %v6487_v23 = vpack.c.bf16 %v2833_v52, %v2832_v30  ;;  %v2823_v47 = vld [vmem:[#allocation6 + $0x2b8] sm:$0xff]  ;;  %v2840_v16 = vld [vmem:[#allocation6 + $0x340] sm:$0xff]  ;;  %v2841_v29 = vld [vmem:[#allocation6 + $0x348] sm:$0xff] }
0x1cf9   :  { %6452 = vmatpush1.bf16.msra.mxu0 %v6451_v60  ;;  %v2807_v60 = vld [vmem:[#allocation6 + $0x238] sm:$0xff] }
0x1cfa   :  { %4716 = vadd.xlane.f32.xlu0 %v4713_v46  ;;  %6412 = vmatpush1.bf16.msra.mxu1 %v6411_v49  ;;  %v2793_v46 = vld [vmem:[#allocation4 + $0x3e0] sm:$0xff]  ;;  %v2811_v30 = vld [vmem:[#allocation6 + $0x258] sm:$0xff] }
0x1cfb   :  { %6414 = vmatprep.subr.bf16.mxu1 %v6413_v28  ;;  %v6419_v56 = vpack.c.bf16 %v2793_v46, %v2789_v50  ;;  %v6491_v28 = vpack.c.bf16 %v2835_v11, %v2834_v58  ;;  %v2822_v50 = vld [vmem:[#allocation6 + $0x2b0] sm:$0xff]  ;;  %v2813_v58 = vld [vmem:[#allocation6 + $0x268] sm:$0xff] }
0x1cfc   :  { %v2854_v46 = vld [vmem:[#allocation6 + $0x3b0] sm:$0xff]  ;;  %v6465_v55 = vpack.c.bf16 %v2823_v47, %v2822_v50  ;;  %v2847_v47 = vld [vmem:[#allocation6 + $0x378] sm:$0xff] }
0x1cfd   :  { %v2846_v50 = vld [vmem:[#allocation6 + $0x370] sm:$0xff] }
0x1cfe   :  { %6416 = vmatpush1.bf16.msra.mxu1 %v6415_v3  ;;  %v2853_v3 = vld [vmem:[#allocation6 + $0x3a8] sm:$0xff] }
0x1cff   :  { %6418 = vmatprep.subr.bf16.mxu1 %v6417_v42  ;;  %v6493_v31 = vpack.c.bf16 %v2853_v3, %v2852_v40  ;;  %v2836_v42 = vld [vmem:[#allocation6 + $0x320] sm:$0xff]  ;;  %v6511_v40 = vpack.c.bf16 %v2845_v57, %v2844_v38  ;;  %v2831_v3 = vld [vmem:[#allocation6 + $0x2f8] sm:$0xff] }
0x1d00   :  { %v6495_v44 = vpack.c.bf16 %v2837_v43, %v2836_v42  ;;  %v2815_v42 = vld [vmem:[#allocation6 + $0x278] sm:$0xff] }
0x1d02   :  { %6420 = vmatpush1.bf16.msra.mxu1 %v6419_v56  ;;  %v2806_v56 = vld [vmem:[#allocation6 + $0x230] sm:$0xff] }
0x1d03   :  { %6454 = vmatprep.subr.bf16.mxu1 %v6453_v21  ;;  %v2826_v21 = vld [vmem:[#allocation6 + $0x2d0] sm:$0xff] }
0x1d83   :  { %v4715_v61 = vpop.xlane.xlu0 %4714 }
0x1d84   :  { %v4718_v54 = vmul.f32 0.0078125, %v4715_v61  ;;  %v6497_v61 = vpack.c.bf16 %v2855_v51, %v2854_v46  ;;  %v6515_v46 = vpack.c.bf16 %v2847_v47, %v2846_v50 }
0x1d86   :  { %v4720_v63 = vadd.f32 1e-12, %v4718_v54  ;;  %v6467_v54 = vpack.c.bf16 %v2807_v60, %v2806_v56 }
0x1d87   :  { %v4717_v0 = vpop.xlane.xlu0 %4716 }
0x1d88   :  { %6666 = vrsqrt.f32 %v4720_v63  ;;  %v4719_v1 = vmul.f32 0.0078125, %v4717_v0  ;;  %v2838_v63 = vld [vmem:[#allocation6 + $0x330] sm:$0xff]  ;;  %v2839_v0 = vld [vmem:[#allocation6 + $0x338] sm:$0xff] }
0x1d8a   :  { %v4721_v2 = vadd.f32 1e-12, %v4719_v1  ;;  %v6499_v1 = vpack.c.bf16 %v2839_v0, %v2838_v63 }
0x1d8c   :  { %6668 = vrsqrt.f32 %v4721_v2  ;;  %v2824_v2 = vld [vmem:[#allocation6 + $0x2c0] sm:$0xff] }
0x1d92   :  { %v6667_v5 = vpop.eup %6666 }
0x1d93   :  { %v4724_v9 = vmul.f32 %v6667_v5, %v7551_v22  ;;  %v2825_v5 = vld [vmem:[#allocation6 + $0x2c8] sm:$0xff] }
0x1d95   :  { %v4732_v13 = vmul.f32 %v5390_v6, %v4724_v9  ;;  %v6469_v9 = vpack.c.bf16 %v2825_v5, %v2824_v2 }
0x1d96   :  { %v6669_v12 = vpop.eup %6668 }
0x1d97   :  { %v7566_v53 = vadd.f32 %v5391_v10, %v4732_v13  ;;  %v4725_v14 = vmul.f32 %v6669_v12, %v7553_v62  ;;  %v2849_v62 = vld [vmem:[#allocation6 + $0x388] sm:$0xff]  ;;  %v2808_v13 = vld [vmem:[#allocation6 + $0x240] sm:$0xff] }
0x1d98   :  { %v6485_v17 = vpack.c.bf16 %v2849_v62, %v2848_v19  ;;  %v2809_v12 = vld [vmem:[#allocation6 + $0x248] sm:$0xff]  ;;  %v6503_v19 = vpack.c.bf16 %v2841_v29, %v2840_v16  ;;  %v2827_v62 = vld [vmem:[#allocation6 + $0x2d8] sm:$0xff] }
0x1d99   :  { %4828 = vmatmul.mubr.f32.vlgmr.msra.gmra.mrb[46].mxu1 %v7566_v53  ;;  %4905 = vmatmul.mubr.f32.vlgmr.msra.gmra.mrb[52].mxu0 %v7566_v53  ;;  %v4733_v15 = vmul.f32 %v5390_v6, %v4725_v14  ;;  %v2856_v6 = vld [vmem:[#allocation6 + $0x3c0] sm:$0xff]  ;;  %v6473_v36 = vpack.c.bf16 %v2827_v62, %v2826_v21 }
0x1d9a   :  { %4833 = vmatprep.mubr.f32.mxu1 %v6771_v4  ;;  %4910 = vmatprep.mubr.f32.mxu0 %v6771_v4  ;;  %v2818_v4 = vld [vmem:[#allocation6 + $0x290] sm:$0xff] }
0x1d9b   :  { %v7573_v22 = vadd.f32 %v5391_v10, %v4733_v15  ;;  %6486 = vmatprep.subr.bf16.mxu0 %v6485_v17  ;;  %6456 = vmatpush3.bf16.msra.mxu1 %v6455_v18  ;;  %v6457_v49 = vpack.c.bf16 %v2819_v7, %v2818_v4  ;;  %v2857_v10 = vld [vmem:[#allocation6 + $0x3c8] sm:$0xff]  ;;  %v6471_v15 = vpack.c.bf16 %v2809_v12, %v2808_v13  ;;  %v2859_v17 = vld [vmem:[#allocation6 + $0x3d8] sm:$0xff]  ;;  %v2810_v18 = vld [vmem:[#allocation6 + $0x250] sm:$0xff] }
0x1d9c   :  { %6488 = vmatpush3.bf16.msra.mxu0 %v6487_v23  ;;  %v6501_v14 = vpack.c.bf16 %v2857_v10, %v2856_v6  ;;  %v6505_v52 = vpack.c.bf16 %v2859_v17, %v2858_v20  ;;  %v6475_v23 = vpack.c.bf16 %v2811_v30, %v2810_v18  ;;  %v2842_v4 = vld [vmem:[#allocation6 + $0x350] sm:$0xff]  ;;  %v2843_v7 = vld [vmem:[#allocation6 + $0x358] sm:$0xff] }
0x1d9d   :  { %4834 = vmatmul.mubr.f32.gmra.mrb[48].mxu1 %v7573_v22  ;;  %4911 = vmatmul.mubr.f32.gmra.mrb[54].mxu0 %v7573_v22  ;;  %v6507_v33 = vpack.c.bf16 %v2843_v7, %v2842_v4 }
0x1d9e   :  { %6458 = vmatprep.subr.bf16.mxu1 %v6457_v49  ;;  %6490 = vmatprep.subr.bf16.mxu0 %v6489_v34  ;;  %v2828_v49 = vld [vmem:[#allocation6 + $0x2e0] sm:$0xff]  ;;  %v2861_v34 = vld [vmem:[#allocation6 + $0x3e8] sm:$0xff] }
0x1d9f   :  { %6460 = vmatpush3.bf16.msra.mxu1 %v6459_v35  ;;  %v6477_v27 = vpack.c.bf16 %v2829_v25, %v2828_v49  ;;  %v2812_v35 = vld [vmem:[#allocation6 + $0x260] sm:$0xff]  ;;  %v6509_v11 = vpack.c.bf16 %v2861_v34, %v2860_v26 }
0x1da0   :  { %6492 = vmatpush3.bf16.msra.mxu0 %v6491_v28  ;;  %6462 = vmatprep.subr.bf16.mxu1 %v6461_v59  ;;  %v6479_v28 = vpack.c.bf16 %v2813_v58, %v2812_v35  ;;  %v2830_v59 = vld [vmem:[#allocation6 + $0x2f0] sm:$0xff] }
0x1da1   :  { %6494 = vmatprep.subr.bf16.mxu0 %v6493_v31  ;;  %v6481_v48 = vpack.c.bf16 %v2831_v3, %v2830_v59  ;;  %v2863_v31 = vld [vmem:[#allocation6 + $0x3f8] sm:$0xff] }
0x1da2   :  { %v6513_v43 = vpack.c.bf16 %v2863_v31, %v2862_v24 }
0x1da3   :  { %6464 = vmatpush3.bf16.msra.mxu1 %v6463_v8  ;;  %v2814_v8 = vld [vmem:[#allocation6 + $0x270] sm:$0xff] }
0x1da4   :  { %6496 = vmatpush3.bf16.msra.mxu0 %v6495_v44  ;;  %6466 = vmatprep.subr.bf16.mxu1 %v6465_v55  ;;  %v6483_v44 = vpack.c.bf16 %v2815_v42, %v2814_v8  ;;  %v5353_v55 = vld [vmem:[%s7720_s11 + $0x4] sm:$0xf] }
0x1da5   :  { %6498 = vmatprep.subr.bf16.mxu0 %v6497_v61  ;;  %v4746_v51 = vrot.slane %v5353_v55, %v6954_v39  ;;  %v4754_v56 = vrot.slane %v5353_v55, %v6958_v41  ;;  %v4750_v60 = vrot.slane %v5353_v55, %v6948_v37  ;;  %v4758_v61 = vrot.slane %v5353_v55, %v2232_v45 }
0x1da7   :  { %6468 = vmatpush3.bf16.msra.mxu1 %v6467_v54 }
0x1da8   :  { %6500 = vmatpush3.bf16.msra.mxu0 %v6499_v1  ;;  %6470 = vmatprep.subr.bf16.mxu1 %v6469_v9 }
0x1da9   :  { %6502 = vmatprep.subr.bf16.mxu0 %v6501_v14 }
0x1dab   :  { %6472 = vmatpush3.bf16.msra.mxu1 %v6471_v15 }
0x1dac   :  { %6504 = vmatpush3.bf16.msra.mxu0 %v6503_v19  ;;  %6474 = vmatprep.subr.bf16.mxu1 %v6473_v36 }
0x1dad   :  { %6506 = vmatprep.subr.bf16.mxu0 %v6505_v52 }
0x1daf   :  { %6476 = vmatpush3.bf16.msra.mxu1 %v6475_v23 }
0x1db0   :  { %6508 = vmatpush3.bf16.msra.mxu0 %v6507_v33  ;;  %6478 = vmatprep.subr.bf16.mxu1 %v6477_v27 }
0x1db1   :  { %6510 = vmatprep.subr.bf16.mxu0 %v6509_v11 }
0x1db3   :  { %6480 = vmatpush3.bf16.msra.mxu1 %v6479_v28 }
0x1db4   :  { %6512 = vmatpush3.bf16.msra.mxu0 %v6511_v40  ;;  %6482 = vmatprep.subr.bf16.mxu1 %v6481_v48 }
0x1db5   :  { %6514 = vmatprep.subr.bf16.mxu0 %v6513_v43 }
0x1db7   :  { %6484 = vmatpush3.bf16.msra.mxu1 %v6483_v44 }
0x1db8   :  { %6516 = vmatpush3.bf16.msra.mxu0 %v6515_v46 }
0x1e6c   :  { %v4829_v54 = vpop.f32.mrb[46].mxu1  ;;  %v4906_v63 = vpop.f32.mrb[52].mxu0 }
0x1e6d   :  { %v7585_v0 = vadd.f32 %v4829_v54, %v4746_v51  ;;  %v7587_v1 = vadd.f32 %v4906_v63, %v4754_v56  ;;  %v4831_v2 = vpop.f32.mrb[47].mxu1  ;;  %v4908_v5 = vpop.f32.mrb[53].mxu0 }
0x1e6e   :  { %v7589_v6 = vadd.f32 %v4831_v2, %v4750_v60  ;;  %v7591_v9 = vadd.f32 %v4908_v5, %v4758_v61 }
0x1e6f   :  { %v4917_v39 = vmul.f32 %v7585_v0, %v7585_v0  ;;  %v4919_v37 = vmul.f32 %v7587_v1, %v7587_v1 }
0x1e70   :  { %v4918_v32 = vmul.f32 %v7589_v6, %v7589_v6  ;;  %v4920_v41 = vmul.f32 %v7591_v9, %v7591_v9  ;;  %v4835_v45 = vpop.f32.mrb[48].mxu1  ;;  %v4912_v10 = vpop.f32.mrb[54].mxu0 }
0x1e71   :  { %v4925_v13 = vmul.f32 %v4917_v39, %v7585_v0  ;;  %v4927_v12 = vmul.f32 %v4919_v37, %v7587_v1  ;;  %v7603_v14 = vadd.f32 %v4835_v45, %v4746_v51  ;;  %v7605_v15 = vadd.f32 %v4912_v10, %v4754_v56  ;;  %v4837_v16 = vpop.f32.mrb[49].mxu1  ;;  %v4914_v29 = vpop.f32.mrb[55].mxu0 }
0x1e72   :  { %v4926_v19 = vmul.f32 %v4918_v32, %v7589_v6  ;;  %v4928_v21 = vmul.f32 %v4920_v41, %v7591_v9  ;;  %v7609_v62 = vadd.f32 %v4837_v16, %v4750_v60  ;;  %v7611_v20 = vadd.f32 %v4914_v29, %v4758_v61 }
0x1e73   :  { %v4933_v36 = vmul.f32 0.044715, %v4925_v13  ;;  %v4935_v17 = vmul.f32 0.044715, %v4927_v12  ;;  %v4921_v18 = vmul.f32 %v7603_v14, %v7603_v14  ;;  %v4923_v30 = vmul.f32 %v7605_v15, %v7605_v15 }
0x1e74   :  { %v4934_v52 = vmul.f32 0.044715, %v4926_v19  ;;  %v4936_v23 = vmul.f32 0.044715, %v4928_v21  ;;  %v4922_v4 = vmul.f32 %v7609_v62, %v7609_v62  ;;  %v4924_v7 = vmul.f32 %v7611_v20, %v7611_v20 }
0x1e75   :  { %v4941_v33 = vadd.f32 %v4933_v36, %v7585_v0  ;;  %v4943_v49 = vadd.f32 %v4935_v17, %v7587_v1  ;;  %v4929_v25 = vmul.f32 %v4921_v18, %v7603_v14  ;;  %v4931_v26 = vmul.f32 %v4923_v30, %v7605_v15 }
0x1e76   :  { %v4942_v27 = vadd.f32 %v4934_v52, %v7589_v6  ;;  %v4944_v34 = vadd.f32 %v4936_v23, %v7591_v9  ;;  %v4930_v35 = vmul.f32 %v4922_v4, %v7609_v62  ;;  %v4932_v58 = vmul.f32 %v4924_v7, %v7611_v20 }
0x1e77   :  { %v4949_v11 = vmul.f32 0.7978846, %v4941_v33  ;;  %v4951_v28 = vmul.f32 0.7978846, %v4943_v49  ;;  %v4937_v38 = vmul.f32 0.044715, %v4929_v25 }
0x1e78   :  { %v4950_v57 = vmul.f32 0.7978846, %v4942_v27  ;;  %v4952_v40 = vmul.f32 0.7978846, %v4944_v34  ;;  %v4939_v59 = vmul.f32 0.044715, %v4931_v26 }
0x1e79   :  { %6670 = vtanh.f32 %v4949_v11  ;;  %v4945_v3 = vadd.f32 %v4937_v38, %v7603_v14  ;;  %v4938_v24 = vmul.f32 0.044715, %v4930_v35  ;;  %v4940_v48 = vmul.f32 0.044715, %v4932_v58  ;;  %v5392_v33 = vld [vmem:[%s7722_s13 + $0x1] ss:$0 sm:$0xff] }
0x1e7a   :  { %6672 = vtanh.f32 %v4951_v28  ;;  %v4947_v31 = vadd.f32 %v4939_v59, %v7605_v15  ;;  %v5189_v59 = vld [vmem:[%s7725_s16] sm:$0xff] }
0x1e7b   :  { %v4953_v8 = vmul.f32 0.7978846, %v4945_v3  ;;  %v4946_v42 = vadd.f32 %v4938_v24, %v7609_v62  ;;  %v4948_v43 = vadd.f32 %v4940_v48, %v7611_v20  ;;  %6674 = vtanh.f32 %v4950_v57  ;;  %v5190_v3 = vld [vmem:[%s7725_s16 + $0x8] sm:$0xff]  ;;  %v5191_v24 = vld [vmem:[%s7725_s16 + $0x10] sm:$0xff] }
0x1e7c   :  { %v4955_v44 = vmul.f32 0.7978846, %v4947_v31  ;;  %6676 = vtanh.f32 %v4952_v40  ;;  %v6517_v48 = vpack.c.bf16 %v5190_v3, %v5189_v59 }
0x1e7d   :  { %v4954_v50 = vmul.f32 0.7978846, %v4946_v42  ;;  %v4956_v47 = vmul.f32 0.7978846, %v4948_v43  ;;  %6678 = vtanh.f32 %v4953_v8 }
0x1e7e   :  { %6680 = vtanh.f32 %v4955_v44  ;;  %6518 = vmatprep.subr.bf16.mxu1 %v6517_v48 }
0x1e7f   :  { %6682 = vtanh.f32 %v4954_v50 }
0x1e80   :  { %6684 = vtanh.f32 %v4956_v47 }
0x1e83   :  { %v6671_v46 = vpop.eup %6670 }
0x1e84   :  { %v6673_v55 = vpop.eup %6672  ;;  %v4965_v51 = vadd.f32 1.0, %v6671_v46 }
0x1e85   :  { %v6675_v56 = vpop.eup %6674  ;;  %v4967_v60 = vadd.f32 1.0, %v6673_v55  ;;  %v5193_v55 = vld [vmem:[%s7725_s16 + $0x20] sm:$0xff] }
0x1e86   :  { %v6677_v61 = vpop.eup %6676  ;;  %v4966_v54 = vadd.f32 1.0, %v6675_v56  ;;  %v4973_v2 = vmul.f32 0.5, %v4965_v51  ;;  %v5194_v51 = vld [vmem:[%s7725_s16 + $0x28] sm:$0xff] }
0x1e87   :  { %v6679_v63 = vpop.eup %6678  ;;  %v4968_v5 = vadd.f32 1.0, %v6677_v61  ;;  %v4975_v37 = vmul.f32 0.5, %v4967_v60  ;;  %v6525_v56 = vpack.c.bf16 %v5194_v51, %v5193_v55  ;;  %v5195_v60 = vld [vmem:[%s7725_s16 + $0x30] sm:$0xff]  ;;  %v5196_v61 = vld [vmem:[%s7725_s16 + $0x38] sm:$0xff] }
0x1e88   :  { %v6681_v39 = vpop.eup %6680  ;;  %v4974_v32 = vmul.f32 0.5, %v4966_v54  ;;  %v4969_v41 = vadd.f32 1.0, %v6679_v63  ;;  %v4981_v19 = vmul.f32 %v4973_v2, %v7585_v0  ;;  %v6529_v54 = vpack.c.bf16 %v5196_v61, %v5195_v60  ;;  %v5197_v63 = vld [vmem:[%s7725_s16 + $0x40] sm:$0xff]  ;;  %v5198_v2 = vld [vmem:[%s7725_s16 + $0x48] sm:$0xff] }
0x1e89   :  { %v6683_v45 = vpop.eup %6682  ;;  %v4976_v10 = vmul.f32 0.5, %v4968_v5  ;;  %v4971_v13 = vadd.f32 1.0, %v6681_v39  ;;  %v4983_v18 = vmul.f32 %v4975_v37, %v7587_v1  ;;  %v6533_v5 = vpack.c.bf16 %v5198_v2, %v5197_v63  ;;  %v5199_v39 = vld [vmem:[%s7725_s16 + $0x50] sm:$0xff]  ;;  %v5200_v37 = vld [vmem:[%s7725_s16 + $0x58] sm:$0xff] }
0x1e8a   :  { %v6685_v12 = vpop.eup %6684  ;;  %v4982_v16 = vmul.f32 %v4974_v32, %v7589_v6  ;;  %v4970_v29 = vadd.f32 1.0, %v6683_v45  ;;  %v4977_v17 = vmul.f32 0.5, %v4969_v41  ;;  %v6537_v32 = vpack.c.bf16 %v5200_v37, %v5199_v39  ;;  %v5201_v41 = vld [vmem:[%s7725_s16 + $0x60] sm:$0xff]  ;;  %v5202_v45 = vld [vmem:[%s7725_s16 + $0x68] sm:$0xff] }
0x1e8b   :  { %v4984_v21 = vmul.f32 %v4976_v10, %v7591_v9  ;;  %v4972_v36 = vadd.f32 1.0, %v6685_v12  ;;  %v4979_v52 = vmul.f32 0.5, %v4971_v13  ;;  %v6541_v10 = vpack.c.bf16 %v5202_v45, %v5201_v41  ;;  %v5203_v13 = vld [vmem:[%s7725_s16 + $0x70] sm:$0xff]  ;;  %v5204_v12 = vld [vmem:[%s7725_s16 + $0x78] sm:$0xff] }
0x1e8c   :  { %5059 = vmatprep.mubr.f32.mxu1 %v4982_v16  ;;  %v4978_v30 = vmul.f32 0.5, %v4970_v29  ;;  %v4985_v7 = vmul.f32 %v4977_v17, %v7603_v14  ;;  %v6545_v16 = vpack.c.bf16 %v5204_v12, %v5203_v13 }
0x1e8d   :  { %5134 = vmatprep.mubr.f32.mxu0 %v4984_v21  ;;  %5060 = vmatmul.mubr.f32.vlgmr.msra.gmra.mrb[50].mxu1 %v4981_v19  ;;  %v4980_v23 = vmul.f32 0.5, %v4972_v36  ;;  %v4987_v0 = vmul.f32 %v4979_v52, %v7605_v15  ;;  %v5395_v52 = vld [vmem:[%s7723_s14 + $0x1] ss:$0 sm:$0xff] }
0x1e8e   :  { %5135 = vmatmul.mubr.f32.vlgmr.msra.gmra.mrb[56].mxu0 %v4983_v18  ;;  %v4986_v4 = vmul.f32 %v4978_v30, %v7609_v62  ;;  %6520 = vmatpush3.bf16.msra.mxu1 %v6517_v48 }
0x1e8f   :  { %v4988_v6 = vmul.f32 %v4980_v23, %v7611_v20 }
0x1e90   :  { %5064 = vmatprep.mubr.f32.mxu1 %v4986_v4  ;;  %v5396_v4 = vld [vmem:[%s7724_s15 + $0x1] ss:$0 sm:$0xff] }
0x1e91   :  { %5139 = vmatprep.mubr.f32.mxu0 %v4988_v6  ;;  %5065 = vmatmul.mubr.f32.gmra.mrb[52].mxu1 %v4985_v7 }
0x1e92   :  { %5140 = vmatmul.mubr.f32.gmra.mrb[58].mxu0 %v4987_v0 }
0x1f60   :  { %v5654_v1 = vpop.f32.mrb[50].mxu1 }
0x1f61   :  { %v5692_v9 = vpop.f32.mrb[56].mxu0  ;;  %v5655_v49 = vpop.f32.mrb[51].mxu1 }
0x1f62   :  { %v5656_v25 = vadd.f32 %v5655_v49, %v5654_v1  ;;  %v5693_v26 = vpop.f32.mrb[57].mxu0  ;;  %v5397_v49 = vld [vmem:[%s7726_s17] ss:$0 sm:$0xff] }
0x1f63   :  { %v5694_v62 = vadd.f32 %v5693_v26, %v5692_v9 }
0x1f64   :  { %v5062_v27 = vadd.f32 %v5656_v25, %v5392_v33  ;;  %v5657_v20 = vpop.f32.mrb[52].mxu1 }
0x1f65   :  { %v5695_v34 = vpop.f32.mrb[58].mxu0  ;;  %v5658_v14 = vpop.f32.mrb[53].mxu1 }
0x1f66   :  { %v5137_v35 = vadd.f32 %v5694_v62, %v5062_v27  ;;  %v5659_v58 = vadd.f32 %v5658_v14, %v5657_v20  ;;  %v5696_v15 = vpop.f32.mrb[59].mxu0 }
0x1f67   :  { %v5697_v11 = vadd.f32 %v5696_v15, %v5695_v34 }
0x1f68   :  { %v5067_v28 = vadd.f32 %v5659_v58, %v5392_v33  ;;  %v5145_v38 = vadd.f32 %v5137_v35, %v7566_v53  ;;  %v5192_v53 = vld [vmem:[%s7725_s16 + $0x18] sm:$0xff] }
0x1f69   :  { %v6521_v31 = vpack.c.bf16 %v5192_v53, %v5191_v24 }
0x1f6a   :  { %v5142_v57 = vadd.f32 %v5697_v11, %v5067_v28  ;;  %5151 = vadd.xlane.f32.xlu0 %v5145_v38 }
0x1f6b   :  { %6522 = vmatprep.subr.bf16.mxu1 %v6521_v31 }
0x1f6c   :  { %v5146_v40 = vadd.f32 %v5142_v57, %v7573_v22  ;;  %6524 = vmatpush3.bf16.msra.mxu1 %v6521_v31 }
0x1f6d   :  { %6526 = vmatprep.subr.bf16.mxu1 %v6525_v56 }
0x1f6e   :  { %5153 = vadd.xlane.f32.xlu0 %v5146_v40 }
0x1f70   :  { %6528 = vmatpush3.bf16.msra.mxu1 %v6525_v56 }
0x1f71   :  { %6530 = vmatprep.subr.bf16.mxu1 %v6529_v54 }
0x1f74   :  { %6532 = vmatpush3.bf16.msra.mxu1 %v6529_v54 }
0x1f75   :  { %6534 = vmatprep.subr.bf16.mxu1 %v6533_v5 }
0x1f78   :  { %6536 = vmatpush3.bf16.msra.mxu1 %v6533_v5 }
0x1f79   :  { %6538 = vmatprep.subr.bf16.mxu1 %v6537_v32 }
0x1f7c   :  { %6540 = vmatpush3.bf16.msra.mxu1 %v6537_v32 }
0x1f7d   :  { %6542 = vmatprep.subr.bf16.mxu1 %v6541_v10 }
0x1f80   :  { %6544 = vmatpush3.bf16.msra.mxu1 %v6541_v10 }
0x1f81   :  { %6546 = vmatprep.subr.bf16.mxu1 %v6545_v16 }
0x1f84   :  { %6548 = vmatpush3.bf16.msra.mxu1 %v6545_v16 }
0x1ff7   :  { %v5152_v22 = vpop.xlane.xlu0 %5151 }
0x1ff8   :  { %v5155_v8 = vmul.f32 0.0078125, %v5152_v22 }
0x1ffa   :  { %v5157_v42 = vsub.f32 %v5145_v38, %v5155_v8 }
0x1ffb   :  { %v5154_v43 = vpop.xlane.xlu0 %5153 }
0x1ffc   :  { %v5156_v44 = vmul.f32 0.0078125, %v5154_v43  ;;  %v5159_v50 = vmul.f32 %v5157_v42, %v5157_v42 }
0x1ffe   :  { %v5158_v47 = vsub.f32 %v5146_v40, %v5156_v44  ;;  %5161 = vadd.xlane.f32.xlu0 %v5159_v50 }
0x2000   :  { %v5160_v46 = vmul.f32 %v5158_v47, %v5158_v47 }
0x2002   :  { %5163 = vadd.xlane.f32.xlu1 %v5160_v46 }
0x208b   :  { %v5162_v29 = vpop.xlane.xlu0 %5161 }
0x208c   :  { %v5165_v19 = vmul.f32 0.0078125, %v5162_v29 }
0x208e   :  { %v5167_v21 = vadd.f32 1e-12, %v5165_v19 }
0x208f   :  { %v5164_v36 = vpop.xlane.xlu1 %5163 }
0x2090   :  { %6686 = vrsqrt.f32 %v5167_v21  ;;  %v5166_v17 = vmul.f32 0.0078125, %v5164_v36 }
0x2092   :  { %v5168_v18 = vadd.f32 1e-12, %v5166_v17 }
0x2094   :  { %6688 = vrsqrt.f32 %v5168_v18 }
0x209a   :  { %v6687_v30 = vpop.eup %6686 }
0x209b   :  { %v5171_v23 = vmul.f32 %v6687_v30, %v5157_v42 }
0x209d   :  { %v5179_v6 = vmul.f32 %v5395_v52, %v5171_v23 }
0x209e   :  { %v6689_v7 = vpop.eup %6688 }
0x209f   :  { %v5172_v0 = vmul.f32 %v6689_v7, %v5158_v47  ;;  %v5187_v1 = vadd.f32 %v5396_v4, %v5179_v6 }
0x20a1   :  { %v5180_v9 = vmul.f32 %v5395_v52, %v5172_v0  ;;  %6066 = vmatprep.mubr.f32.mxu1 %v5187_v1 }
0x20a3   :  { %v5188_v33 = vadd.f32 %v5396_v4, %v5180_v9 }
0x20a5   :  { %6067 = vmatmul.mubr.f32.vlgmr.msra.gmra.mrb[54].mxu1 %v5188_v33 }
0x2178   :  { %v6068_v25 = vpop.f32.mrb[54].mxu1 }
0x2179   :  { %v5284_v26 = vadd.f32 %v6068_v25, %v5397_v49  ;;  %v5278_v62 = vpop.f32.mrb[55].mxu1 }
0x217a   :  { %v5279_v27 = vadd.f32 %v5397_v49, %v5278_v62 }
0x217b   :  { %5288 = vst [vmem:[%s7727_s18 + $0x8] sm:$0xff] %v5284_v26 }
0x217c   :  { %5287 = vst [vmem:[%s7727_s18] sm:$0xff] %v5279_v27 }
0x217d   :  { %5293 = vsyncpa [#allocation3], 1 }
0x217e   :  { %5294 = vsyncpa [#allocation5], 1 }

</bundles_post_ra>
